<compile_context>
chip_gen: v7x
topology: tpu7x:2x2x1
jax: 0.10.0
libtpu: 0.0.40
codegen_flags: <defaults>
</compile_context>

<pallas_src>
import jax
import jax.numpy as jnp
import numpy as np
from jax.experimental import pallas as pl
from jax.experimental.pallas import tpu as pltpu


# ----------------------------------------------------------------------------
# offline weight packing
# ----------------------------------------------------------------------------
def _gate_dest_cols(H, d):
    """Destination columns of one direction's (i,f,g,o) gates in the fused
    [i_f i_r | f_f f_r | o_f o_r | g_f g_r] layout (sigmoid gates first)."""
    block = (0, 1, 3, 2)                         # i, f, g, o -> i, f, o, g
    return np.concatenate(
        [np.arange(H) + (block[g] * 2 * H + d * H) for g in range(4)])


def pack_rbp_params(p, eps=1e-5):
    """One-time packing of all weights into one (rows, CW) matrix slab and one
    (8, CW) vector slab (2 weight DMAs per grid step)."""
    f32 = np.float32
    w1 = np.asarray(p["w1"], f32)                # (K, ED, C1)
    K, ED, C1 = w1.shape
    wdr = np.asarray(p["wdr"], f32)              # (C1, CDR)
    CDR = wdr.shape[1]
    w2 = np.asarray(p["w2"], f32)                # (K, CDR, NK)
    NK = w2.shape[2]
    wih_f = np.asarray(p["wih_f"], f32)          # (NK, 4H)
    wih_r = np.asarray(p["wih_r"], f32)
    whh_f = np.asarray(p["whh_f"], f32)          # (H, 4H)
    whh_r = np.asarray(p["whh_r"], f32)
    H = whh_f.shape[0]
    V = 8                                        # vocab (5) padded to 8 sublanes
    CW = int(-(-max(32, C1, CDR, NK, 8 * H) // 8) * 8)   # slab lane width

    def fold_bn(gamma, beta, mean, var):
        g, b = np.asarray(gamma, f32), np.asarray(beta, f32)
        m, v = np.asarray(mean, f32), np.asarray(var, f32)
        s = g / np.sqrt(v + eps)
        return s, b - m * s

    # NOTE: the module applies ReLU BEFORE BatchNorm1 (conv1->relu->bn1), so
    # folding BN1's affine into the following 1x1 conv is exact in eval mode.
    s1, t1 = fold_bn(p["gamma1"], p["beta1"], p["rm1"], p["rv1"])
    s2, t2 = fold_bn(p["gamma2"], p["beta2"], p["rm2"], p["rv2"])

    # conv1 taps with the 5x4 embedding table folded in (vocab padded to V).
    emb = np.zeros((V, ED), f32)
    et = np.asarray(p["embed_table"], f32)
    emb[: et.shape[0]] = et
    w1f = np.einsum("vd,kdc->kvc", emb, w1)      # (K, V, C1)
    w1_seg = np.zeros((K * V, CW), f32)
    w1_seg[:, :C1] = w1f.reshape(K * V, C1)

    # dim_reduce (1x1 conv) with BN1 folded: scale -> weights, shift -> bias.
    wdr_seg = np.zeros((CW, CW), f32)
    wdr_seg[:C1, :CDR] = s1[:, None] * wdr
    bdr_eff = t1 @ wdr + np.asarray(p["bdr"], f32)

    # conv2 taps, input-channel dim padded to CW rows.
    w2_seg = np.zeros((K, CW, CW), f32)
    w2_seg[:, :CDR, :NK] = w2
    w2_seg = w2_seg.reshape(K * CW, CW)

    # fused bidirectional LSTM weights with reordered gate columns.
    dest_f, dest_r = _gate_dest_cols(H, 0), _gate_dest_cols(H, 1)
    wihf_seg = np.zeros((CW, CW), f32)
    wihf_seg[:NK, dest_f] = wih_f
    wihr_seg = np.zeros((CW, CW), f32)
    wihr_seg[:NK, dest_r] = wih_r
    whh_rows = int(-(-2 * H // 8) * 8)
    whh_seg = np.zeros((whh_rows, CW), f32)
    whh_seg[:H, dest_f] = whh_f
    whh_seg[H:2 * H, dest_r] = whh_r
    bcat = np.zeros((CW,), f32)
    bcat[dest_f] = np.asarray(p["bih_f"], f32) + np.asarray(p["bhh_f"], f32)
    bcat[dest_r] = np.asarray(p["bih_r"], f32) + np.asarray(p["bhh_r"], f32)

    segs = [("w1", w1_seg), ("wdr", wdr_seg), ("w2", w2_seg),
            ("wih_f", wihf_seg), ("wih_r", wihr_seg), ("whh", whh_seg)]
    offs, chunks, r = {}, [], 0
    for name, a in segs:                          # every segment is 8-row aligned
        offs[name] = r
        chunks.append(a)
        r += a.shape[0]
    wmat = np.concatenate(chunks, axis=0)         # (rows, CW)

    def vrow(v):
        out = np.zeros((1, CW), f32)
        v = np.asarray(v, f32).reshape(-1)
        out[0, : v.shape[0]] = v
        return out

    vvec = np.concatenate(
        [vrow(p["b1"]), vrow(bdr_eff), vrow(p["b2"]), vrow(s2), vrow(t2),
         vrow(bcat), np.zeros((2, CW), f32)], axis=0)          # (8, CW)

    return dict(wmat=jnp.asarray(wmat), vvec=jnp.asarray(vvec), offs=offs,
                K=K, C1=C1, CDR=CDR, NK=NK, H=H, V=V, CW=CW)


# ----------------------------------------------------------------------------
# kernel
# ----------------------------------------------------------------------------
def _make_kernel(*, L, TB, K, V, CW, H, Lp, OUTW, offs):
    N = TB * L                                   # rows per tile (batch stride L)
    PAD = (K - 1) // 2
    o_w1, o_wdr, o_w2 = offs["w1"], offs["wdr"], offs["w2"]
    o_wihf, o_wihr, o_whh = offs["wih_f"], offs["wih_r"], offs["whh"]

    def kernel(tok_ref, wmat_ref, vvec_ref, mask_ref, sel_ref, out_ref):
        f32 = jnp.float32
        b1 = vvec_ref[0:1, :]
        bdr = vvec_ref[1:2, :]
        b2 = vvec_ref[2:3, :]
        s2 = vvec_ref[3:4, :]
        t2 = vvec_ref[4:5, :]
        bcat = vvec_ref[5:6, :]

        def shift_up(x, k):
            # shift_up(x, k)[r] == x[(r + k) % N]  (fetch k rows ahead)
            k = k % N
            return x if k == 0 else pltpu.roll(x, (-k) % N, axis=0)

        # --- embedding lookup: one vectorized one-hot compare ---------------
        tok = tok_ref[...]                                     # (N, 1) int32
        onehot = (tok == jax.lax.broadcasted_iota(jnp.int32, (N, V), 1)
                  ).astype(f32)                                # (N, V)

        # --- conv1 (valid): K-tap accumulate over sublane-rolled one-hots ---
        acc = jnp.dot(onehot, wmat_ref[o_w1:o_w1 + V, :],
                      preferred_element_type=f32)
        for k in range(1, K):
            acc = acc + jnp.dot(
                shift_up(onehot, k),
                wmat_ref[o_w1 + k * V:o_w1 + (k + 1) * V, :],
                preferred_element_type=f32)
        h1 = jnp.maximum(acc + b1, 0.0)
        # Dropout1d(p=0.05): identity in eval mode.

        # --- dim_reduce (1x1 conv, BatchNorm1 folded); zero dead tail rows --
        hdr = (jnp.dot(h1, wmat_ref[o_wdr:o_wdr + CW, :],
                       preferred_element_type=f32) + bdr) * mask_ref[...]

        # --- conv2 ('same', odd K): K-tap accumulate; the zeroed tail rows of
        #     the neighbouring batch block act as the zero padding.
        acc = None
        for k in range(K):
            prod = jnp.dot(shift_up(hdr, k - PAD),
                           wmat_ref[o_w2 + k * CW:o_w2 + (k + 1) * CW, :],
                           preferred_element_type=f32)
            acc = prod if acc is None else acc + prod
        h2 = jnp.maximum(acc + b2, 0.0) * s2 + t2              # ReLU then BN2

        # --- MaxPool1d(3): max of 3 sublane-rolled copies, then one 0/1
        #     selector matmul picks the stride-3 rows, time-major, for BOTH
        #     the forward and the reversed direction.
        m = jnp.maximum(jnp.maximum(h2, shift_up(h2, 1)), shift_up(h2, 2))
        pooled = jnp.dot(sel_ref[...], m, preferred_element_type=f32)
        # pooled: (2*Lp*TB, CW); rows [0, Lp*TB) forward order, rest reversed.

        # --- fused bidirectional LSTM ----------------------------------------
        # Input projection hoisted out of the recurrence; forward and reverse
        # directions occupy disjoint gate columns, so their projections add.
        g_in = (jnp.dot(pooled[0:Lp * TB, :],
                        wmat_ref[o_wihf:o_wihf + CW, :],
                        preferred_element_type=f32)
                + jnp.dot(pooled[Lp * TB:2 * Lp * TB, :],
                          wmat_ref[o_wihr:o_wihr + CW, :],
                          preferred_element_type=f32)
                + bcat)                                        # (Lp*TB, 8H..CW)

        whh = wmat_ref[o_whh:o_whh + 2 * H, :]                 # (2H, 8H..CW)
        hcat = jnp.zeros((TB, 2 * H), f32)                     # [h_fwd | h_rev]
        ccat = jnp.zeros((TB, 2 * H), f32)
        for t in range(Lp):
            gates = g_in[t * TB:(t + 1) * TB, :] + jnp.dot(
                hcat, whh, preferred_element_type=f32)
            sig = jax.nn.sigmoid(gates[:, 0:6 * H])            # [i | f | o]
            g = jnp.tanh(gates[:, 6 * H:8 * H])
            ccat = sig[:, 2 * H:4 * H] * ccat + sig[:, 0:2 * H] * g
            hcat = sig[:, 4 * H:6 * H] * jnp.tanh(ccat)

        # --- lane-dense output store (padded to OUTW lanes) ------------------
        if OUTW == 2 * H:
            out_ref[...] = hcat
        else:
            out_ref[...] = jnp.concatenate(
                [hcat, jnp.zeros((TB, OUTW - 2 * H), f32)], axis=1)

    return kernel


# ----------------------------------------------------------------------------
# wrapper
# ----------------------------------------------------------------------------
def rbp_encoder_pallas(x_tokens, packed, *, tb=None):
    B, L = x_tokens.shape
    K, H, V, CW = packed["K"], packed["H"], packed["V"], packed["CW"]
    L1 = L - K + 1
    Lp = L1 // 3
    assert K % 2 == 1, "even kernel_size 'same' padding not supported"
    assert L1 >= 1 and Lp >= 1

    if tb is None:
        # Batch tile is always a multiple of 8 sublanes.  For large batches the
        # cap can be raised (v6e: 32-128; on v7x keep the grid >= 2 so both
        # TensorCores are used, and re-derive VMEM headroom for 64 MiB).
        tb = max(8, min(64, -(-B // 8) * 8))
    assert tb % 8 == 0
    B_pad = -(-B // tb) * tb
    grid = B_pad // tb
    N = tb * L

    tok = jnp.asarray(x_tokens, jnp.int32)
    if B_pad != B:
        tok = jnp.pad(tok, ((0, B_pad - B), (0, 0)))
    tok = tok.reshape(B_pad * L, 1)              # row b*L + t == (batch b, pos t)

    # Per-tile constant side tables (identical for every grid step).
    pos = np.arange(N) % L
    rowmask = (pos < L1).astype(np.float32).reshape(N, 1)

    sel = np.zeros((2 * Lp * tb, N), np.float32)
    for t in range(Lp):
        for b in range(tb):
            sel[t * tb + b, b * L + 3 * t] = 1.0                       # forward
            sel[Lp * tb + t * tb + b, b * L + 3 * (Lp - 1 - t)] = 1.0  # reverse
    rowmask = jnp.asarray(rowmask)
    sel = jnp.asarray(sel)

    OUTW = max(128, -(-2 * H // 128) * 128)
    kernel = _make_kernel(L=L, TB=tb, K=K, V=V, CW=CW, H=H, Lp=Lp,
                          OUTW=OUTW, offs=packed["offs"])

    out = pl.pallas_call(
        kernel,
        out_shape=jax.ShapeDtypeStruct((B_pad, OUTW), jnp.float32),
        grid=(grid,),
        in_specs=[
            pl.BlockSpec((N, 1), lambda i: (i, 0)),
            pl.BlockSpec(packed["wmat"].shape, lambda i: (0, 0)),
            pl.BlockSpec(packed["vvec"].shape, lambda i: (0, 0)),
            pl.BlockSpec(rowmask.shape, lambda i: (0, 0)),
            pl.BlockSpec(sel.shape, lambda i: (0, 0)),
        ],
        out_specs=pl.BlockSpec((tb, OUTW), lambda i: (i, 0)),
        compiler_params=pltpu.CompilerParams(
            dimension_semantics=("parallel",)),
    )(tok, packed["wmat"], packed["vvec"], rowmask, sel)
    return out[:B, :2 * H]                       # (B, num_kernels)


# ----------------------------------------------------------------------------
# pure-JAX reference (identical math, for the correctness check)
# ----------------------------------------------------------------------------
def _fold_bn(gamma, beta, mean, var, eps=1e-5):
    s = gamma / jnp.sqrt(var + eps)
    return s, beta - mean * s


def rbp_encoder_reference(x_tokens, p):
    emb = jnp.asarray(p["embed_table"])[x_tokens].astype(jnp.float32)
    B, L, _ = emb.shape
    K = p["w1"].shape[0]
    L1 = L - K + 1
    s1, t1 = _fold_bn(p["gamma1"], p["beta1"], p["rm1"], p["rv1"])
    s2, t2 = _fold_bn(p["gamma2"], p["beta2"], p["rm2"], p["rv2"])

    acc1 = sum(jnp.einsum("blc,co->blo", emb[:, t:t + L1, :], p["w1"][t])
               for t in range(K))
    h1 = jnp.maximum(acc1 + p["b1"], 0.0) * s1 + t1
    hdr = jnp.einsum("blc,co->blo", h1, p["wdr"]) + p["bdr"]
    pad = (K - 1) // 2
    hp = jnp.pad(hdr, ((0, 0), (pad, pad), (0, 0)))
    acc2 = sum(jnp.einsum("blc,co->blo", hp[:, t:t + L1, :], p["w2"][t])
               for t in range(K))
    h2 = jnp.maximum(acc2 + p["b2"], 0.0) * s2 + t2

    Lp = L1 // 3
    NK = h2.shape[-1]
    feats = jnp.max(h2[:, :3 * Lp, :].reshape(B, Lp, 3, NK), axis=2)
    H = p["whh_f"].shape[0]

    def run_dir(seq, wih, whh, b):
        h = jnp.zeros((B, H)); c = jnp.zeros((B, H))
        for x_t in seq:
            gates = x_t @ wih + h @ whh + b
            i = jax.nn.sigmoid(gates[:, :H]); f = jax.nn.sigmoid(gates[:, H:2 * H])
            g = jnp.tanh(gates[:, 2 * H:3 * H]); o = jax.nn.sigmoid(gates[:, 3 * H:])
            c = f * c + i * g; h = o * jnp.tanh(c)
        return h

    bf = p["bih_f"] + p["bhh_f"]; br = p["bih_r"] + p["bhh_r"]
    h_f = run_dir([feats[:, t, :] for t in range(Lp)], p["wih_f"], p["whh_f"], bf)
    h_r = run_dir([feats[:, Lp - 1 - t, :] for t in range(Lp)],
                  p["wih_r"], p["whh_r"], br)
    return jnp.concatenate([h_f, h_r], axis=-1)


def init_params(key, *, kernel_size=5, num_kernels=16):
    ED, C1, CDR = 4, 32, 4          # embedding dim fixed to alphabet-1=4
    H = num_kernels // 2
    K = kernel_size
    ks = jax.random.split(key, 22)
    n = lambda k, shape, s=0.2: s * jax.random.normal(k, shape, jnp.float32)

    # embedding table: eye(5, 4) with row 0 = ones/4 (padding token)
    embed_table = jnp.eye(5, ED, dtype=jnp.float32).at[0].set(1.0 / ED)

    return dict(
        embed_table=embed_table,
        w1=n(ks[0], (K, ED, C1)), b1=n(ks[1], (C1,), 0.1),
        gamma1=1.0 + n(ks[2], (C1,), 0.1), beta1=n(ks[3], (C1,), 0.1),
        rm1=n(ks[4], (C1,), 0.1),
        rv1=jax.random.uniform(ks[5], (C1,), jnp.float32, 0.5, 1.5),
        wdr=n(ks[6], (C1, CDR)), bdr=n(ks[7], (CDR,), 0.1),
        w2=n(ks[8], (K, CDR, num_kernels)), b2=n(ks[9], (num_kernels,), 0.1),
        gamma2=1.0 + n(ks[10], (num_kernels,), 0.1),
        beta2=n(ks[11], (num_kernels,), 0.1),
        rm2=n(ks[12], (num_kernels,), 0.1),
        rv2=jax.random.uniform(ks[13], (num_kernels,), jnp.float32, 0.5, 1.5),
        wih_f=n(ks[14], (num_kernels, 4 * H)), whh_f=n(ks[15], (H, 4 * H)),
        bih_f=n(ks[16], (4 * H,), 0.1), bhh_f=n(ks[17], (4 * H,), 0.1),
        wih_r=n(ks[18], (num_kernels, 4 * H)), whh_r=n(ks[19], (H, 4 * H)),
        bih_r=n(ks[20], (4 * H,), 0.1), bhh_r=n(ks[21], (4 * H,), 0.1),
    )


if __name__ == "__main__":
    root = jax.random.PRNGKey(0)
    kp, kx = jax.random.split(root)

    B, L = 2, 24                    # batch, max_rna_size
    K, NK = 5, 16                   # kernel_size (odd, for 'same'), num_kernels
    params = init_params(kp, kernel_size=K, num_kernels=NK)
    x_tokens = jax.random.randint(kx, (B, L), 0, 5, dtype=jnp.int32)

    packed = pack_rbp_params(params)   # one-time packing (embedding + BN folded)

    out = jax.block_until_ready(rbp_encoder_pallas(x_tokens, packed))
    ref = jax.block_until_ready(rbp_encoder_reference(x_tokens, params))

    assert out.shape == (B, NK), out.shape
    assert bool(jnp.all(jnp.isfinite(out)))
    np.testing.assert_allclose(np.asarray(out), np.asarray(ref),
                               rtol=5e-2, atol=5e-2)
    print("KERNEL_OK")
</pallas_src>

<mosaic_0001>
module attributes {stable_mosaic.version = 11 : i64} {
  func.func @kernel(%arg0: i32, %arg1: memref<192x1xi32, #tpu.memory_space<vmem>>, %arg2: memref<568x64xf32, #tpu.memory_space<vmem>>, %arg3: memref<8x64xf32, #tpu.memory_space<vmem>>, %arg4: memref<192x1xf32, #tpu.memory_space<vmem>>, %arg5: memref<96x192xf32, #tpu.memory_space<vmem>>, %arg6: memref<8x128xf32, #tpu.memory_space<vmem>>) attributes {dimension_semantics = [#tpu.dimension_semantics<parallel>], iteration_bounds = array<i64: 1>, scalar_prefetch = 0 : i64, scratch_operands = 0 : i64, tpu.core_type = #tpu.core_type<tc>, window_params = [{transform_indices = @transform_0, window_bounds = array<i64: 192, 1>}, {pipeline_mode = #tpu.pipeline_mode<synchronous>, transform_indices = @transform_1, window_bounds = array<i64: 568, 64>}, {pipeline_mode = #tpu.pipeline_mode<synchronous>, transform_indices = @transform_2, window_bounds = array<i64: 8, 64>}, {pipeline_mode = #tpu.pipeline_mode<synchronous>, transform_indices = @transform_3, window_bounds = array<i64: 192, 1>}, {pipeline_mode = #tpu.pipeline_mode<synchronous>, transform_indices = @transform_4, window_bounds = array<i64: 96, 192>}, {transform_indices = @transform_5, window_bounds = array<i64: 8, 128>}]} {
    %c0 = arith.constant 0 : index
    %c0_0 = arith.constant 0 : index
    %0 = vector.load %arg3[%c0, %c0_0] : memref<8x64xf32, #tpu.memory_space<vmem>>, vector<1x64xf32>
    %c1 = arith.constant 1 : index
    %c0_1 = arith.constant 0 : index
    %1 = vector.load %arg3[%c1, %c0_1] : memref<8x64xf32, #tpu.memory_space<vmem>>, vector<1x64xf32>
    %c2 = arith.constant 2 : index
    %c0_2 = arith.constant 0 : index
    %2 = vector.load %arg3[%c2, %c0_2] : memref<8x64xf32, #tpu.memory_space<vmem>>, vector<1x64xf32>
    %c3 = arith.constant 3 : index
    %c0_3 = arith.constant 0 : index
    %3 = vector.load %arg3[%c3, %c0_3] : memref<8x64xf32, #tpu.memory_space<vmem>>, vector<1x64xf32>
    %c4 = arith.constant 4 : index
    %c0_4 = arith.constant 0 : index
    %4 = vector.load %arg3[%c4, %c0_4] : memref<8x64xf32, #tpu.memory_space<vmem>>, vector<1x64xf32>
    %c5 = arith.constant 5 : index
    %c0_5 = arith.constant 0 : index
    %5 = vector.load %arg3[%c5, %c0_5] : memref<8x64xf32, #tpu.memory_space<vmem>>, vector<1x64xf32>
    %c0_6 = arith.constant 0 : index
    %c0_7 = arith.constant 0 : index
    %6 = vector.load %arg1[%c0_6, %c0_7] : memref<192x1xi32, #tpu.memory_space<vmem>>, vector<192x1xi32>
    %7 = tpu.iota {dimensions = array<i32: 1>} : vector<192x8xi32>
    %8 = vector.broadcast %6 : vector<192x1xi32> to vector<192x8xi32>
    %9 = arith.cmpi eq, %8, %7 : vector<192x8xi32>
    %10 = arith.extui %9 : vector<192x8xi1> to vector<192x8xi32>
    %11 = arith.sitofp %10 : vector<192x8xi32> to vector<192x8xf32>
    %c0_8 = arith.constant 0 : index
    %c0_9 = arith.constant 0 : index
    %12 = vector.load %arg2[%c0_8, %c0_9] : memref<568x64xf32, #tpu.memory_space<vmem>>, vector<8x64xf32>
    %cst = arith.constant dense<0.000000e+00> : vector<192x64xf32>
    %13 = tpu.matmul %11, %12, %cst {dimension_numbers = #tpu.dot_dimension_numbers<[1], [0], [0], [1], [0, 0, 1, 1], [], []>} : vector<192x8xf32>, vector<8x64xf32>, vector<192x64xf32> -> vector<192x64xf32>
    %c191_i32 = arith.constant 191 : i32
    %14 = tpu.dynamic_rotate %11 by %c191_i32 dim 0 : vector<192x8xf32>, i32 -> vector<192x8xf32>
    %c8 = arith.constant 8 : index
    %c0_10 = arith.constant 0 : index
    %15 = vector.load %arg2[%c8, %c0_10] : memref<568x64xf32, #tpu.memory_space<vmem>>, vector<8x64xf32>
    %cst_11 = arith.constant dense<0.000000e+00> : vector<192x64xf32>
    %16 = tpu.matmul %14, %15, %cst_11 {dimension_numbers = #tpu.dot_dimension_numbers<[1], [0], [0], [1], [0, 0, 1, 1], [], []>} : vector<192x8xf32>, vector<8x64xf32>, vector<192x64xf32> -> vector<192x64xf32>
    %17 = arith.addf %13, %16 : vector<192x64xf32>
    %c190_i32 = arith.constant 190 : i32
    %18 = tpu.dynamic_rotate %11 by %c190_i32 dim 0 : vector<192x8xf32>, i32 -> vector<192x8xf32>
    %c16 = arith.constant 16 : index
    %c0_12 = arith.constant 0 : index
    %19 = vector.load %arg2[%c16, %c0_12] : memref<568x64xf32, #tpu.memory_space<vmem>>, vector<8x64xf32>
    %cst_13 = arith.constant dense<0.000000e+00> : vector<192x64xf32>
    %20 = tpu.matmul %18, %19, %cst_13 {dimension_numbers = #tpu.dot_dimension_numbers<[1], [0], [0], [1], [0, 0, 1, 1], [], []>} : vector<192x8xf32>, vector<8x64xf32>, vector<192x64xf32> -> vector<192x64xf32>
    %21 = arith.addf %17, %20 : vector<192x64xf32>
    %c189_i32 = arith.constant 189 : i32
    %22 = tpu.dynamic_rotate %11 by %c189_i32 dim 0 : vector<192x8xf32>, i32 -> vector<192x8xf32>
    %c24 = arith.constant 24 : index
    %c0_14 = arith.constant 0 : index
    %23 = vector.load %arg2[%c24, %c0_14] : memref<568x64xf32, #tpu.memory_space<vmem>>, vector<8x64xf32>
    %cst_15 = arith.constant dense<0.000000e+00> : vector<192x64xf32>
    %24 = tpu.matmul %22, %23, %cst_15 {dimension_numbers = #tpu.dot_dimension_numbers<[1], [0], [0], [1], [0, 0, 1, 1], [], []>} : vector<192x8xf32>, vector<8x64xf32>, vector<192x64xf32> -> vector<192x64xf32>
    %25 = arith.addf %21, %24 : vector<192x64xf32>
    %c188_i32 = arith.constant 188 : i32
    %26 = tpu.dynamic_rotate %11 by %c188_i32 dim 0 : vector<192x8xf32>, i32 -> vector<192x8xf32>
    %c32 = arith.constant 32 : index
    %c0_16 = arith.constant 0 : index
    %27 = vector.load %arg2[%c32, %c0_16] : memref<568x64xf32, #tpu.memory_space<vmem>>, vector<8x64xf32>
    %cst_17 = arith.constant dense<0.000000e+00> : vector<192x64xf32>
    %28 = tpu.matmul %26, %27, %cst_17 {dimension_numbers = #tpu.dot_dimension_numbers<[1], [0], [0], [1], [0, 0, 1, 1], [], []>} : vector<192x8xf32>, vector<8x64xf32>, vector<192x64xf32> -> vector<192x64xf32>
    %29 = arith.addf %25, %28 : vector<192x64xf32>
    %30 = vector.broadcast %0 : vector<1x64xf32> to vector<192x64xf32>
    %31 = arith.addf %29, %30 : vector<192x64xf32>
    %cst_18 = arith.constant 0.000000e+00 : f32
    %32 = vector.broadcast %cst_18 : f32 to vector<192x64xf32>
    %33 = arith.maximumf %31, %32 : vector<192x64xf32>
    %c40 = arith.constant 40 : index
    %c0_19 = arith.constant 0 : index
    %34 = vector.load %arg2[%c40, %c0_19] : memref<568x64xf32, #tpu.memory_space<vmem>>, vector<64x64xf32>
    %cst_20 = arith.constant dense<0.000000e+00> : vector<192x64xf32>
    %35 = tpu.matmul %33, %34, %cst_20 {dimension_numbers = #tpu.dot_dimension_numbers<[1], [0], [0], [1], [0, 0, 1, 1], [], []>} : vector<192x64xf32>, vector<64x64xf32>, vector<192x64xf32> -> vector<192x64xf32>
    %36 = vector.broadcast %1 : vector<1x64xf32> to vector<192x64xf32>
    %37 = arith.addf %35, %36 : vector<192x64xf32>
    %c0_21 = arith.constant 0 : index
    %c0_22 = arith.constant 0 : index
    %38 = vector.load %arg4[%c0_21, %c0_22] : memref<192x1xf32, #tpu.memory_space<vmem>>, vector<192x1xf32>
    %39 = vector.broadcast %38 : vector<192x1xf32> to vector<192x64xf32>
    %40 = arith.mulf %37, %39 : vector<192x64xf32>
    %c2_i32 = arith.constant 2 : i32
    %41 = tpu.dynamic_rotate %40 by %c2_i32 dim 0 : vector<192x64xf32>, i32 -> vector<192x64xf32>
    %c104 = arith.constant 104 : index
    %c0_23 = arith.constant 0 : index
    %42 = vector.load %arg2[%c104, %c0_23] : memref<568x64xf32, #tpu.memory_space<vmem>>, vector<64x64xf32>
    %cst_24 = arith.constant dense<0.000000e+00> : vector<192x64xf32>
    %43 = tpu.matmul %41, %42, %cst_24 {dimension_numbers = #tpu.dot_dimension_numbers<[1], [0], [0], [1], [0, 0, 1, 1], [], []>} : vector<192x64xf32>, vector<64x64xf32>, vector<192x64xf32> -> vector<192x64xf32>
    %c1_i32 = arith.constant 1 : i32
    %44 = tpu.dynamic_rotate %40 by %c1_i32 dim 0 : vector<192x64xf32>, i32 -> vector<192x64xf32>
    %c168 = arith.constant 168 : index
    %c0_25 = arith.constant 0 : index
    %45 = vector.load %arg2[%c168, %c0_25] : memref<568x64xf32, #tpu.memory_space<vmem>>, vector<64x64xf32>
    %cst_26 = arith.constant dense<0.000000e+00> : vector<192x64xf32>
    %46 = tpu.matmul %44, %45, %cst_26 {dimension_numbers = #tpu.dot_dimension_numbers<[1], [0], [0], [1], [0, 0, 1, 1], [], []>} : vector<192x64xf32>, vector<64x64xf32>, vector<192x64xf32> -> vector<192x64xf32>
    %47 = arith.addf %43, %46 : vector<192x64xf32>
    %c232 = arith.constant 232 : index
    %c0_27 = arith.constant 0 : index
    %48 = vector.load %arg2[%c232, %c0_27] : memref<568x64xf32, #tpu.memory_space<vmem>>, vector<64x64xf32>
    %cst_28 = arith.constant dense<0.000000e+00> : vector<192x64xf32>
    %49 = tpu.matmul %40, %48, %cst_28 {dimension_numbers = #tpu.dot_dimension_numbers<[1], [0], [0], [1], [0, 0, 1, 1], [], []>} : vector<192x64xf32>, vector<64x64xf32>, vector<192x64xf32> -> vector<192x64xf32>
    %50 = arith.addf %47, %49 : vector<192x64xf32>
    %c191_i32_29 = arith.constant 191 : i32
    %51 = tpu.dynamic_rotate %40 by %c191_i32_29 dim 0 : vector<192x64xf32>, i32 -> vector<192x64xf32>
    %c296 = arith.constant 296 : index
    %c0_30 = arith.constant 0 : index
    %52 = vector.load %arg2[%c296, %c0_30] : memref<568x64xf32, #tpu.memory_space<vmem>>, vector<64x64xf32>
    %cst_31 = arith.constant dense<0.000000e+00> : vector<192x64xf32>
    %53 = tpu.matmul %51, %52, %cst_31 {dimension_numbers = #tpu.dot_dimension_numbers<[1], [0], [0], [1], [0, 0, 1, 1], [], []>} : vector<192x64xf32>, vector<64x64xf32>, vector<192x64xf32> -> vector<192x64xf32>
    %54 = arith.addf %50, %53 : vector<192x64xf32>
    %c190_i32_32 = arith.constant 190 : i32
    %55 = tpu.dynamic_rotate %40 by %c190_i32_32 dim 0 : vector<192x64xf32>, i32 -> vector<192x64xf32>
    %c360 = arith.constant 360 : index
    %c0_33 = arith.constant 0 : index
    %56 = vector.load %arg2[%c360, %c0_33] : memref<568x64xf32, #tpu.memory_space<vmem>>, vector<64x64xf32>
    %cst_34 = arith.constant dense<0.000000e+00> : vector<192x64xf32>
    %57 = tpu.matmul %55, %56, %cst_34 {dimension_numbers = #tpu.dot_dimension_numbers<[1], [0], [0], [1], [0, 0, 1, 1], [], []>} : vector<192x64xf32>, vector<64x64xf32>, vector<192x64xf32> -> vector<192x64xf32>
    %58 = arith.addf %54, %57 : vector<192x64xf32>
    %59 = vector.broadcast %2 : vector<1x64xf32> to vector<192x64xf32>
    %60 = arith.addf %58, %59 : vector<192x64xf32>
    %cst_35 = arith.constant 0.000000e+00 : f32
    %61 = vector.broadcast %cst_35 : f32 to vector<192x64xf32>
    %62 = arith.maximumf %60, %61 : vector<192x64xf32>
    %63 = vector.broadcast %3 : vector<1x64xf32> to vector<192x64xf32>
    %64 = arith.mulf %62, %63 : vector<192x64xf32>
    %65 = vector.broadcast %4 : vector<1x64xf32> to vector<192x64xf32>
    %66 = arith.addf %64, %65 : vector<192x64xf32>
    %c191_i32_36 = arith.constant 191 : i32
    %67 = tpu.dynamic_rotate %66 by %c191_i32_36 dim 0 : vector<192x64xf32>, i32 -> vector<192x64xf32>
    %68 = arith.maximumf %66, %67 : vector<192x64xf32>
    %c190_i32_37 = arith.constant 190 : i32
    %69 = tpu.dynamic_rotate %66 by %c190_i32_37 dim 0 : vector<192x64xf32>, i32 -> vector<192x64xf32>
    %70 = arith.maximumf %68, %69 : vector<192x64xf32>
    %c0_38 = arith.constant 0 : index
    %c0_39 = arith.constant 0 : index
    %71 = vector.load %arg5[%c0_38, %c0_39] : memref<96x192xf32, #tpu.memory_space<vmem>>, vector<96x192xf32>
    %cst_40 = arith.constant dense<0.000000e+00> : vector<96x64xf32>
    %72 = tpu.matmul %71, %70, %cst_40 {dimension_numbers = #tpu.dot_dimension_numbers<[1], [0], [0], [1], [0, 0, 1, 1], [], []>} : vector<96x192xf32>, vector<192x64xf32>, vector<96x64xf32> -> vector<96x64xf32>
    %73 = vector.extract_strided_slice %72 {offsets = [0, 0], sizes = [48, 64], strides = [1, 1]} : vector<96x64xf32> to vector<48x64xf32>
    %c424 = arith.constant 424 : index
    %c0_41 = arith.constant 0 : index
    %74 = vector.load %arg2[%c424, %c0_41] : memref<568x64xf32, #tpu.memory_space<vmem>>, vector<64x64xf32>
    %cst_42 = arith.constant dense<0.000000e+00> : vector<48x64xf32>
    %75 = tpu.matmul %73, %74, %cst_42 {dimension_numbers = #tpu.dot_dimension_numbers<[1], [0], [0], [1], [0, 0, 1, 1], [], []>} : vector<48x64xf32>, vector<64x64xf32>, vector<48x64xf32> -> vector<48x64xf32>
    %76 = vector.extract_strided_slice %72 {offsets = [48, 0], sizes = [48, 64], strides = [1, 1]} : vector<96x64xf32> to vector<48x64xf32>
    %c488 = arith.constant 488 : index
    %c0_43 = arith.constant 0 : index
    %77 = vector.load %arg2[%c488, %c0_43] : memref<568x64xf32, #tpu.memory_space<vmem>>, vector<64x64xf32>
    %cst_44 = arith.constant dense<0.000000e+00> : vector<48x64xf32>
    %78 = tpu.matmul %76, %77, %cst_44 {dimension_numbers = #tpu.dot_dimension_numbers<[1], [0], [0], [1], [0, 0, 1, 1], [], []>} : vector<48x64xf32>, vector<64x64xf32>, vector<48x64xf32> -> vector<48x64xf32>
    %79 = arith.addf %75, %78 : vector<48x64xf32>
    %80 = vector.broadcast %5 : vector<1x64xf32> to vector<48x64xf32>
    %81 = arith.addf %79, %80 : vector<48x64xf32>
    %c552 = arith.constant 552 : index
    %c0_45 = arith.constant 0 : index
    %82 = vector.load %arg2[%c552, %c0_45] : memref<568x64xf32, #tpu.memory_space<vmem>>, vector<16x64xf32>
    %cst_46 = arith.constant 0.000000e+00 : f32
    %83 = vector.broadcast %cst_46 : f32 to vector<8x16xf32>
    %cst_47 = arith.constant 0.000000e+00 : f32
    %84 = vector.broadcast %cst_47 : f32 to vector<8x16xf32>
    %85 = vector.extract_strided_slice %81 {offsets = [0, 0], sizes = [8, 64], strides = [1, 1]} : vector<48x64xf32> to vector<8x64xf32>
    %cst_48 = arith.constant dense<0.000000e+00> : vector<8x64xf32>
    %86 = tpu.matmul %83, %82, %cst_48 {dimension_numbers = #tpu.dot_dimension_numbers<[1], [0], [0], [1], [0, 0, 1, 1], [], []>} : vector<8x16xf32>, vector<16x64xf32>, vector<8x64xf32> -> vector<8x64xf32>
    %87 = arith.addf %85, %86 : vector<8x64xf32>
    %88 = vector.extract_strided_slice %87 {offsets = [0, 0], sizes = [8, 48], strides = [1, 1]} : vector<8x64xf32> to vector<8x48xf32>
    %89 = arith.negf %88 : vector<8x48xf32>
    %90 = math.exp %89 : vector<8x48xf32>
    %cst_49 = arith.constant 1.000000e+00 : f32
    %91 = vector.broadcast %cst_49 : f32 to vector<8x48xf32>
    %92 = arith.addf %91, %90 : vector<8x48xf32>
    %93 = arith.divf %91, %92 : vector<8x48xf32>
    %94 = vector.extract_strided_slice %87 {offsets = [0, 48], sizes = [8, 16], strides = [1, 1]} : vector<8x64xf32> to vector<8x16xf32>
    %95 = math.tanh %94 : vector<8x16xf32>
    %96 = vector.extract_strided_slice %93 {offsets = [0, 16], sizes = [8, 16], strides = [1, 1]} : vector<8x48xf32> to vector<8x16xf32>
    %97 = arith.mulf %96, %84 : vector<8x16xf32>
    %98 = vector.extract_strided_slice %93 {offsets = [0, 0], sizes = [8, 16], strides = [1, 1]} : vector<8x48xf32> to vector<8x16xf32>
    %99 = arith.mulf %98, %95 : vector<8x16xf32>
    %100 = arith.addf %97, %99 : vector<8x16xf32>
    %101 = vector.extract_strided_slice %93 {offsets = [0, 32], sizes = [8, 16], strides = [1, 1]} : vector<8x48xf32> to vector<8x16xf32>
    %102 = math.tanh %100 : vector<8x16xf32>
    %103 = arith.mulf %101, %102 : vector<8x16xf32>
    %104 = vector.extract_strided_slice %81 {offsets = [8, 0], sizes = [8, 64], strides = [1, 1]} : vector<48x64xf32> to vector<8x64xf32>
    %cst_50 = arith.constant dense<0.000000e+00> : vector<8x64xf32>
    %105 = tpu.matmul %103, %82, %cst_50 {dimension_numbers = #tpu.dot_dimension_numbers<[1], [0], [0], [1], [0, 0, 1, 1], [], []>} : vector<8x16xf32>, vector<16x64xf32>, vector<8x64xf32> -> vector<8x64xf32>
    %106 = arith.addf %104, %105 : vector<8x64xf32>
    %107 = vector.extract_strided_slice %106 {offsets = [0, 0], sizes = [8, 48], strides = [1, 1]} : vector<8x64xf32> to vector<8x48xf32>
    %108 = arith.negf %107 : vector<8x48xf32>
    %109 = math.exp %108 : vector<8x48xf32>
    %cst_51 = arith.constant 1.000000e+00 : f32
    %110 = vector.broadcast %cst_51 : f32 to vector<8x48xf32>
    %111 = arith.addf %110, %109 : vector<8x48xf32>
    %112 = arith.divf %110, %111 : vector<8x48xf32>
    %113 = vector.extract_strided_slice %106 {offsets = [0, 48], sizes = [8, 16], strides = [1, 1]} : vector<8x64xf32> to vector<8x16xf32>
    %114 = math.tanh %113 : vector<8x16xf32>
    %115 = vector.extract_strided_slice %112 {offsets = [0, 16], sizes = [8, 16], strides = [1, 1]} : vector<8x48xf32> to vector<8x16xf32>
    %116 = arith.mulf %115, %100 : vector<8x16xf32>
    %117 = vector.extract_strided_slice %112 {offsets = [0, 0], sizes = [8, 16], strides = [1, 1]} : vector<8x48xf32> to vector<8x16xf32>
    %118 = arith.mulf %117, %114 : vector<8x16xf32>
    %119 = arith.addf %116, %118 : vector<8x16xf32>
    %120 = vector.extract_strided_slice %112 {offsets = [0, 32], sizes = [8, 16], strides = [1, 1]} : vector<8x48xf32> to vector<8x16xf32>
    %121 = math.tanh %119 : vector<8x16xf32>
    %122 = arith.mulf %120, %121 : vector<8x16xf32>
    %123 = vector.extract_strided_slice %81 {offsets = [16, 0], sizes = [8, 64], strides = [1, 1]} : vector<48x64xf32> to vector<8x64xf32>
    %cst_52 = arith.constant dense<0.000000e+00> : vector<8x64xf32>
    %124 = tpu.matmul %122, %82, %cst_52 {dimension_numbers = #tpu.dot_dimension_numbers<[1], [0], [0], [1], [0, 0, 1, 1], [], []>} : vector<8x16xf32>, vector<16x64xf32>, vector<8x64xf32> -> vector<8x64xf32>
    %125 = arith.addf %123, %124 : vector<8x64xf32>
    %126 = vector.extract_strided_slice %125 {offsets = [0, 0], sizes = [8, 48], strides = [1, 1]} : vector<8x64xf32> to vector<8x48xf32>
    %127 = arith.negf %126 : vector<8x48xf32>
    %128 = math.exp %127 : vector<8x48xf32>
    %cst_53 = arith.constant 1.000000e+00 : f32
    %129 = vector.broadcast %cst_53 : f32 to vector<8x48xf32>
    %130 = arith.addf %129, %128 : vector<8x48xf32>
    %131 = arith.divf %129, %130 : vector<8x48xf32>
    %132 = vector.extract_strided_slice %125 {offsets = [0, 48], sizes = [8, 16], strides = [1, 1]} : vector<8x64xf32> to vector<8x16xf32>
    %133 = math.tanh %132 : vector<8x16xf32>
    %134 = vector.extract_strided_slice %131 {offsets = [0, 16], sizes = [8, 16], strides = [1, 1]} : vector<8x48xf32> to vector<8x16xf32>
    %135 = arith.mulf %134, %119 : vector<8x16xf32>
    %136 = vector.extract_strided_slice %131 {offsets = [0, 0], sizes = [8, 16], strides = [1, 1]} : vector<8x48xf32> to vector<8x16xf32>
    %137 = arith.mulf %136, %133 : vector<8x16xf32>
    %138 = arith.addf %135, %137 : vector<8x16xf32>
    %139 = vector.extract_strided_slice %131 {offsets = [0, 32], sizes = [8, 16], strides = [1, 1]} : vector<8x48xf32> to vector<8x16xf32>
    %140 = math.tanh %138 : vector<8x16xf32>
    %141 = arith.mulf %139, %140 : vector<8x16xf32>
    %142 = vector.extract_strided_slice %81 {offsets = [24, 0], sizes = [8, 64], strides = [1, 1]} : vector<48x64xf32> to vector<8x64xf32>
    %cst_54 = arith.constant dense<0.000000e+00> : vector<8x64xf32>
    %143 = tpu.matmul %141, %82, %cst_54 {dimension_numbers = #tpu.dot_dimension_numbers<[1], [0], [0], [1], [0, 0, 1, 1], [], []>} : vector<8x16xf32>, vector<16x64xf32>, vector<8x64xf32> -> vector<8x64xf32>
    %144 = arith.addf %142, %143 : vector<8x64xf32>
    %145 = vector.extract_strided_slice %144 {offsets = [0, 0], sizes = [8, 48], strides = [1, 1]} : vector<8x64xf32> to vector<8x48xf32>
    %146 = arith.negf %145 : vector<8x48xf32>
    %147 = math.exp %146 : vector<8x48xf32>
    %cst_55 = arith.constant 1.000000e+00 : f32
    %148 = vector.broadcast %cst_55 : f32 to vector<8x48xf32>
    %149 = arith.addf %148, %147 : vector<8x48xf32>
    %150 = arith.divf %148, %149 : vector<8x48xf32>
    %151 = vector.extract_strided_slice %144 {offsets = [0, 48], sizes = [8, 16], strides = [1, 1]} : vector<8x64xf32> to vector<8x16xf32>
    %152 = math.tanh %151 : vector<8x16xf32>
    %153 = vector.extract_strided_slice %150 {offsets = [0, 16], sizes = [8, 16], strides = [1, 1]} : vector<8x48xf32> to vector<8x16xf32>
    %154 = arith.mulf %153, %138 : vector<8x16xf32>
    %155 = vector.extract_strided_slice %150 {offsets = [0, 0], sizes = [8, 16], strides = [1, 1]} : vector<8x48xf32> to vector<8x16xf32>
    %156 = arith.mulf %155, %152 : vector<8x16xf32>
    %157 = arith.addf %154, %156 : vector<8x16xf32>
    %158 = vector.extract_strided_slice %150 {offsets = [0, 32], sizes = [8, 16], strides = [1, 1]} : vector<8x48xf32> to vector<8x16xf32>
    %159 = math.tanh %157 : vector<8x16xf32>
    %160 = arith.mulf %158, %159 : vector<8x16xf32>
    %161 = vector.extract_strided_slice %81 {offsets = [32, 0], sizes = [8, 64], strides = [1, 1]} : vector<48x64xf32> to vector<8x64xf32>
    %cst_56 = arith.constant dense<0.000000e+00> : vector<8x64xf32>
    %162 = tpu.matmul %160, %82, %cst_56 {dimension_numbers = #tpu.dot_dimension_numbers<[1], [0], [0], [1], [0, 0, 1, 1], [], []>} : vector<8x16xf32>, vector<16x64xf32>, vector<8x64xf32> -> vector<8x64xf32>
    %163 = arith.addf %161, %162 : vector<8x64xf32>
    %164 = vector.extract_strided_slice %163 {offsets = [0, 0], sizes = [8, 48], strides = [1, 1]} : vector<8x64xf32> to vector<8x48xf32>
    %165 = arith.negf %164 : vector<8x48xf32>
    %166 = math.exp %165 : vector<8x48xf32>
    %cst_57 = arith.constant 1.000000e+00 : f32
    %167 = vector.broadcast %cst_57 : f32 to vector<8x48xf32>
    %168 = arith.addf %167, %166 : vector<8x48xf32>
    %169 = arith.divf %167, %168 : vector<8x48xf32>
    %170 = vector.extract_strided_slice %163 {offsets = [0, 48], sizes = [8, 16], strides = [1, 1]} : vector<8x64xf32> to vector<8x16xf32>
    %171 = math.tanh %170 : vector<8x16xf32>
    %172 = vector.extract_strided_slice %169 {offsets = [0, 16], sizes = [8, 16], strides = [1, 1]} : vector<8x48xf32> to vector<8x16xf32>
    %173 = arith.mulf %172, %157 : vector<8x16xf32>
    %174 = vector.extract_strided_slice %169 {offsets = [0, 0], sizes = [8, 16], strides = [1, 1]} : vector<8x48xf32> to vector<8x16xf32>
    %175 = arith.mulf %174, %171 : vector<8x16xf32>
    %176 = arith.addf %173, %175 : vector<8x16xf32>
    %177 = vector.extract_strided_slice %169 {offsets = [0, 32], sizes = [8, 16], strides = [1, 1]} : vector<8x48xf32> to vector<8x16xf32>
    %178 = math.tanh %176 : vector<8x16xf32>
    %179 = arith.mulf %177, %178 : vector<8x16xf32>
    %180 = vector.extract_strided_slice %81 {offsets = [40, 0], sizes = [8, 64], strides = [1, 1]} : vector<48x64xf32> to vector<8x64xf32>
    %cst_58 = arith.constant dense<0.000000e+00> : vector<8x64xf32>
    %181 = tpu.matmul %179, %82, %cst_58 {dimension_numbers = #tpu.dot_dimension_numbers<[1], [0], [0], [1], [0, 0, 1, 1], [], []>} : vector<8x16xf32>, vector<16x64xf32>, vector<8x64xf32> -> vector<8x64xf32>
    %182 = arith.addf %180, %181 : vector<8x64xf32>
    %183 = vector.extract_strided_slice %182 {offsets = [0, 0], sizes = [8, 48], strides = [1, 1]} : vector<8x64xf32> to vector<8x48xf32>
    %184 = arith.negf %183 : vector<8x48xf32>
    %185 = math.exp %184 : vector<8x48xf32>
    %cst_59 = arith.constant 1.000000e+00 : f32
    %186 = vector.broadcast %cst_59 : f32 to vector<8x48xf32>
    %187 = arith.addf %186, %185 : vector<8x48xf32>
    %188 = arith.divf %186, %187 : vector<8x48xf32>
    %189 = vector.extract_strided_slice %182 {offsets = [0, 48], sizes = [8, 16], strides = [1, 1]} : vector<8x64xf32> to vector<8x16xf32>
    %190 = math.tanh %189 : vector<8x16xf32>
    %191 = vector.extract_strided_slice %188 {offsets = [0, 16], sizes = [8, 16], strides = [1, 1]} : vector<8x48xf32> to vector<8x16xf32>
    %192 = arith.mulf %191, %176 : vector<8x16xf32>
    %193 = vector.extract_strided_slice %188 {offsets = [0, 0], sizes = [8, 16], strides = [1, 1]} : vector<8x48xf32> to vector<8x16xf32>
    %194 = arith.mulf %193, %190 : vector<8x16xf32>
    %195 = arith.addf %192, %194 : vector<8x16xf32>
    %196 = vector.extract_strided_slice %188 {offsets = [0, 32], sizes = [8, 16], strides = [1, 1]} : vector<8x48xf32> to vector<8x16xf32>
    %197 = math.tanh %195 : vector<8x16xf32>
    %198 = arith.mulf %196, %197 : vector<8x16xf32>
    %cst_60 = arith.constant 0.000000e+00 : f32
    %199 = vector.broadcast %cst_60 : f32 to vector<8x112xf32>
    %200 = tpu.concatenate %198, %199 in 1 : vector<8x16xf32>, vector<8x112xf32> -> vector<8x128xf32>
    %c0_61 = arith.constant 0 : index
    %c0_62 = arith.constant 0 : index
    %201 = vector.load %arg6[%c0_61, %c0_62] : memref<8x128xf32, #tpu.memory_space<vmem>>, vector<8x128xf32>
    tpu.vector_store %arg6[%c0_61, %c0_62], %200 {strides = array<i32>} : memref<8x128xf32, #tpu.memory_space<vmem>>, vector<8x128xf32>,
    return
  }
  func.func @transform_0(%arg0: i32) -> (i32, i32) {
    %c0_i32 = arith.constant 0 : i32
    %c0_i32_0 = arith.constant 0 : i32
    return %arg0, %c0_i32 : i32, i32
  }
  func.func @transform_1(%arg0: i32) -> (i32, i32) {
    %c0_i32 = arith.constant 0 : i32
    %c0_i32_0 = arith.constant 0 : i32
    %c0_i32_1 = arith.constant 0 : i32
    return %c0_i32, %c0_i32_0 : i32, i32
  }
  func.func @transform_2(%arg0: i32) -> (i32, i32) {
    %c0_i32 = arith.constant 0 : i32
    %c0_i32_0 = arith.constant 0 : i32
    %c0_i32_1 = arith.constant 0 : i32
    return %c0_i32, %c0_i32_0 : i32, i32
  }
  func.func @transform_3(%arg0: i32) -> (i32, i32) {
    %c0_i32 = arith.constant 0 : i32
    %c0_i32_0 = arith.constant 0 : i32
    %c0_i32_1 = arith.constant 0 : i32
    return %c0_i32, %c0_i32_0 : i32, i32
  }
  func.func @transform_4(%arg0: i32) -> (i32, i32) {
    %c0_i32 = arith.constant 0 : i32
    %c0_i32_0 = arith.constant 0 : i32
    %c0_i32_1 = arith.constant 0 : i32
    return %c0_i32, %c0_i32_0 : i32, i32
  }
  func.func @transform_5(%arg0: i32) -> (i32, i32) {
    %c0_i32 = arith.constant 0 : i32
    %c0_i32_0 = arith.constant 0 : i32
    return %arg0, %c0_i32 : i32, i32
  }
}

</mosaic_0001>

<bundles_post_ra>
// kernel: tpu_custom_call.1
= control target key start
LH: loop header
LB: loop body
LE: loop exit
PB: predicated region body
PF: predicated region fallthrough
CT: control target
= control target key end

     0   :  { %v6897_v2 = vmov 0   ;;  %s9525_s0 = inlined_call_operand.vmem [shape: s32[192,1], index: 0, kind: input, shape index: {}]   ;;  %s9526_s1 = inlined_call_operand.vmem [shape: f32[568,64], index: 1, kind: input, shape index: {}]   ;;  %s9527_s2 = inlined_call_operand.vmem [shape: f32[8,64], index: 2, kind: input, shape index: {}]   ;;  %s9528_s3 = inlined_call_operand.vmem [shape: f32[192,1], index: 3, kind: input, shape index: {}]   ;;  %s9529_s4 = inlined_call_operand.vmem [shape: f32[96,192], index: 4, kind: input, shape index: {}]   ;;  %s9530_s5 = inlined_call_operand.hbm [shape: f32[8,128], index: 5, kind: output, shape index: {}]  }
   0x1   :  { %v29_v0 = vld [vmem:[%s9525_s0 + $0x10] sm:$0xff]  ;;  %v27_v1 = vld [vmem:[%s9525_s0] sm:$0xff]  ;;  %6824 = vset.pattern.permute.xlu1 %v6897_v2  ;;  %6823 = vset.pattern.permute.xlu0 %v6897_v2  ;;  %v30_v3 = vld [vmem:[%s9525_s0 + $0x18] sm:$0xff] }
   0x2   :  { %60 = vperm.xlu1 %6824, %v29_v0   ;;  %54 = vperm.xlu0 %6823, %v27_v1   ;;  %v28_v4 = vld [vmem:[%s9525_s0 + $0x8] sm:$0xff]  ;;  %v31_v6 = vld [vmem:[%s9525_s0 + $0x20] sm:$0xff]  ;;  %v34_v7 = vld [vmem:[%s9525_s0 + $0x38] sm:$0xff] }
   0x3   :  { %v32_v5 = vld [vmem:[%s9525_s0 + $0x28] sm:$0xff]  ;;  %v33_v8 = vld [vmem:[%s9525_s0 + $0x30] sm:$0xff]  ;;  %v35_v10 = vld [vmem:[%s9525_s0 + $0x40] sm:$0xff] }
   0x4   :  { %v36_v9 = vld [vmem:[%s9525_s0 + $0x48] sm:$0xff] }
   0x5   :  { %v249_v11 = vld [vmem:[%s9526_s1 + $0x8] sm:$0xff] }
   0x6   :  { %63 = vperm.xlu1 %6824, %v30_v3   ;;  %57 = vperm.xlu0 %6823, %v28_v4  }
   0xa   :  { %69 = vperm.xlu1 %6824, %v32_v5   ;;  %66 = vperm.xlu0 %6823, %v31_v6  }
   0xe   :  { %75 = vperm.xlu1 %6824, %v34_v7   ;;  %72 = vperm.xlu0 %6823, %v33_v8  }
   0xf   :  { %10 = vsyncpa [#allocation3], 0  ;;  %5841 = vmatprep.subr.mxu0 %v249_v11  ;;  %v6971_v12 = vld [vmem:[%s9526_s1] sm:$0xff]  ;;  %v38_v13 = vld [vmem:[%s9525_s0 + $0x58] sm:$0xff]  ;;  %v51_v51 = vlaneseq  ;;  %v9531_v56 = vmov 0.0   ;;  %vm250_vm4 = vcmask 64512  }
  0x10   :  { %v37_v14 = vld [vmem:[%s9525_s0 + $0x50] sm:$0xff]  ;;  %5842 = vmatpush3.msra.mxu0 %v249_v11  ;;  %v40_v15 = vld [vmem:[%s9525_s0 + $0x68] sm:$0xff]  ;;  %v39_v16 = vld [vmem:[%s9525_s0 + $0x60] sm:$0xff]  ;;  %s6902_s22 = smov 16   ;;  %s6903_s23 = smov 96  }
  0x11   :  { %5879 = vmatprep.subr.mxu0 %v6971_v12  ;;  %v42_v17 = vld [vmem:[%s9525_s0 + $0x78] sm:$0xff]  ;;  %v41_v18 = vld [vmem:[%s9525_s0 + $0x70] sm:$0xff]  ;;  %v44_v19 = vld [vmem:[%s9525_s0 + $0x88] sm:$0xff]  ;;  %v7088_v52 = vand.u32 127, %v51_v51  ;;  %v7090_v53 = vshrl.u32 %v51_v51, 7  ;;  %s6904_s24 = smov [#allocation2]  }
  0x12   :  { %81 = vperm.xlu1 %6824, %v36_v9   ;;  %78 = vperm.xlu0 %6823, %v35_v10   ;;  %v43_v20 = vld [vmem:[%s9525_s0 + $0x80] sm:$0xff]  ;;  %v46_v21 = vld [vmem:[%s9525_s0 + $0x98] sm:$0xff]  ;;  %v45_v22 = vld [vmem:[%s9525_s0 + $0x90] sm:$0xff]  ;;  %s5141_s25 = sshll.u32 %s6904_s24, 4  ;;  %s5142_s25 = int_to_ptr.vmem [resolvable:$true] %s5141_s25 }
  0x13   :  { %v48_v23 = vld [vmem:[%s9525_s0 + $0xa8] sm:$0xff]  ;;  %v47_v24 = vld [vmem:[%s9525_s0 + $0xa0] sm:$0xff]  ;;  %v50_v25 = vld [vmem:[%s9525_s0 + $0xb8] sm:$0xff]  ;;  %vm224_vm2 = vcmp.lt.s32.totalorder %v7090_v53, 7  ;;  %vm789_vm3 = vcmp.lt.s32.totalorder %v7090_v53, 6  ;;  %s6873_s26 = scalar_lea.vmem %s5142_s25, 128  ;;  %p6878_p1 = scmp.lt.s32.totalorder %s5142_s25, %s5142_s25 }
  0x14   :  { %v49_v26 = vld [vmem:[%s9525_s0 + $0xb0] sm:$0xff]  ;;  %v2103_v27 = vld [vmem:[%s9528_s3 + $0xb8] sm:$0xff]  ;;  %v2080_v28 = vld [vmem:[%s9528_s3] sm:$0xff]  ;;  %p6874_p0 = scmp.ne.s32.totalorder %s5142_s25, %s6873_s26  ;;  %p6879_p2 = scmp.lt.s32.totalorder %s6873_s26, %s6873_s26 }
  0x15   :  { %v2082_v29 = vld [vmem:[%s9528_s3 + $0x10] sm:$0xff]  ;;  %v2081_v30 = vld [vmem:[%s9528_s3 + $0x8] sm:$0xff]  ;;  %v2084_v31 = vld [vmem:[%s9528_s3 + $0x20] sm:$0xff] }
  0x16   :  { %87 = vperm.xlu1 %6824, %v38_v13   ;;  %84 = vperm.xlu0 %6823, %v37_v14   ;;  %v2083_v32 = vld [vmem:[%s9528_s3 + $0x18] sm:$0xff]  ;;  %v2086_v33 = vld [vmem:[%s9528_s3 + $0x30] sm:$0xff]  ;;  %v2085_v34 = vld [vmem:[%s9528_s3 + $0x28] sm:$0xff]  ;;  %p6880_p3 = por %p6879_p2, %p6878_p1 }
  0x17   :  { %v2088_v35 = vld [vmem:[%s9528_s3 + $0x40] sm:$0xff]  ;;  %v2087_v36 = vld [vmem:[%s9528_s3 + $0x38] sm:$0xff]  ;;  %v2090_v37 = vld [vmem:[%s9528_s3 + $0x50] sm:$0xff] }
  0x18   :  { %v2089_v38 = vld [vmem:[%s9528_s3 + $0x48] sm:$0xff]  ;;  %v2092_v39 = vld [vmem:[%s9528_s3 + $0x60] sm:$0xff]  ;;  %v2091_v40 = vld [vmem:[%s9528_s3 + $0x58] sm:$0xff]  ;;  %p6881_p4 = pnand %p6880_p3, %p6874_p0 }
  0x19   :  { %v2094_v41 = vld [vmem:[%s9528_s3 + $0x70] sm:$0xff]  ;;  %v2093_v42 = vld [vmem:[%s9528_s3 + $0x68] sm:$0xff]  ;;  %v2096_v43 = vld [vmem:[%s9528_s3 + $0x80] sm:$0xff] }
  0x1a   :  { %93 = vperm.xlu1 %6824, %v40_v15   ;;  %90 = vperm.xlu0 %6823, %v39_v16   ;;  %v2095_v44 = vld [vmem:[%s9528_s3 + $0x78] sm:$0xff]  ;;  %v2098_v45 = vld [vmem:[%s9528_s3 + $0x90] sm:$0xff]  ;;  %v2097_v46 = vld [vmem:[%s9528_s3 + $0x88] sm:$0xff] }
  0x1b   :  { %v2100_v47 = vld [vmem:[%s9528_s3 + $0xa0] sm:$0xff]  ;;  %v2099_v48 = vld [vmem:[%s9528_s3 + $0x98] sm:$0xff]  ;;  %v2102_v49 = vld [vmem:[%s9528_s3 + $0xb0] sm:$0xff] }
  0x1c   :  { %v2101_v50 = vld [vmem:[%s9528_s3 + $0xa8] sm:$0xff] }
  0x1e   :  { %99 = vperm.xlu1 %6824, %v42_v17   ;;  %96 = vperm.xlu0 %6823, %v41_v18  }
  0x22   :  { %105 = vperm.xlu1 %6824, %v44_v19   ;;  %102 = vperm.xlu0 %6823, %v43_v20  }
  0x26   :  { %111 = vperm.xlu1 %6824, %v46_v21   ;;  %108 = vperm.xlu0 %6823, %v45_v22  }
  0x2a   :  { %117 = vperm.xlu1 %6824, %v48_v23   ;;  %114 = vperm.xlu0 %6823, %v47_v24  }
  0x2e   :  { %123 = vperm.xlu1 %6824, %v50_v25   ;;  %120 = vperm.xlu0 %6823, %v49_v26  }
  0x32   :  { %2221 = vperm.xlu1 %6824, %v2103_v27   ;;  %2106 = vperm.xlu0 %6823, %v2080_v28   ;;  %v7155_v27 = vld [vmem:[%s9526_s1 + $0x10] sm:$0xff] }
  0x36   :  { %2116 = vperm.xlu1 %6824, %v2082_v29   ;;  %2111 = vperm.xlu0 %6823, %v2081_v30  }
  0x3a   :  { %2126 = vperm.xlu1 %6824, %v2084_v31   ;;  %2121 = vperm.xlu0 %6823, %v2083_v32  }
  0x3e   :  { %2136 = vperm.xlu1 %6824, %v2086_v33   ;;  %2131 = vperm.xlu0 %6823, %v2085_v34  }
  0x42   :  { %2146 = vperm.xlu1 %6824, %v2088_v35   ;;  %2141 = vperm.xlu0 %6823, %v2087_v36  }
  0x46   :  { %2156 = vperm.xlu1 %6824, %v2090_v37   ;;  %2151 = vperm.xlu0 %6823, %v2089_v38  }
  0x4a   :  { %2166 = vperm.xlu1 %6824, %v2092_v39   ;;  %2161 = vperm.xlu0 %6823, %v2091_v40  }
  0x4e   :  { %2176 = vperm.xlu1 %6824, %v2094_v41   ;;  %2171 = vperm.xlu0 %6823, %v2093_v42  }
  0x52   :  { %2186 = vperm.xlu1 %6824, %v2096_v43   ;;  %2181 = vperm.xlu0 %6823, %v2095_v44  }
  0x56   :  { %2196 = vperm.xlu1 %6824, %v2098_v45   ;;  %2191 = vperm.xlu0 %6823, %v2097_v46  }
  0x5a   :  { %2206 = vperm.xlu1 %6824, %v2100_v47   ;;  %2201 = vperm.xlu0 %6823, %v2099_v48  }
  0x5e   :  { %2216 = vperm.xlu1 %6824, %v2102_v49   ;;  %2211 = vperm.xlu0 %6823, %v2101_v50  }
  0x81   :  { %v61_v54 = vpop.permute.xlu1 %60  ;;  %v55_v55 = vpop.permute.xlu0 %54 }
  0x82   :  { %vm127_vm0 = vcmp.eq.s32.totalorder %v61_v54, %v7088_v52  ;;  %vm125_vm1 = vcmp.eq.s32.totalorder %v55_v55, %v7088_v52 }
  0x83   :  { %v7095_v57 = vsel %vm127_vm0, 1.0, %v9531_v56  ;;  %v7098_v58 = vsel %vm125_vm1, 1.0, %v9531_v56 }
  0x84   :  { %v200_v59 = vrot.slane %v7095_v57, 1  ;;  %v767_v60 = vrot.slane %v7095_v57, 2  ;;  %v765_v1 = vrot.slane %v7098_v58, 2  ;;  %v198_v9 = vrot.slane %v7098_v58, 1 }
  0x85   :  { %v64_v62 = vpop.permute.xlu1 %63  ;;  %v58_v63 = vpop.permute.xlu0 %57 }
  0x86   :  { %vm128_vm5 = vcmp.eq.s32.totalorder %v64_v62, %v7088_v52  ;;  %vm126_vm6 = vcmp.eq.s32.totalorder %v58_v63, %v7088_v52 }
  0x87   :  { %v7112_v4 = vsel %vm128_vm5, 1.0, %v9531_v56  ;;  %v7115_v5 = vsel %vm126_vm6, 1.0, %v9531_v56 }
  0x88   :  { %v201_v6 = vrot.slane %v7112_v4, 1  ;;  %v768_v7 = vrot.slane %v7112_v4, 2  ;;  %v766_v11 = vrot.slane %v7115_v5, 2  ;;  %v199_v16 = vrot.slane %v7115_v5, 1 }
  0x89   :  { %v70_v14 = vpop.permute.xlu1 %69  ;;  %v67_v15 = vpop.permute.xlu0 %66 }
  0x8a   :  { %vm130_vm7 = vcmp.eq.s32.totalorder %v70_v14, %v7088_v52  ;;  %vm129_vm8 = vcmp.eq.s32.totalorder %v67_v15, %v7088_v52  ;;  %v7132_v18 = vsel %vm789_vm3, %v767_v60, %v768_v7  ;;  %v247_v21 = vsel %vm224_vm2, %v198_v9, %v199_v16 }
  0x8b   :  { %v7135_v19 = vsel %vm130_vm7, 1.0, %v9531_v56  ;;  %v7138_v20 = vsel %vm129_vm8, 1.0, %v9531_v56  ;;  %v246_v22 = vsel %vm224_vm2, %v199_v16, %v200_v59  ;;  %5843 = vmatprep.mubr.msk.f32.mxu0 %vm250_vm4, %v247_v21  ;;  %v245_v26 = vsel %vm224_vm2, %v200_v59, %v201_v6 }
  0x8c   :  { %v203_v23 = vrot.slane %v7135_v19, 1  ;;  %v770_v24 = vrot.slane %v7135_v19, 2  ;;  %v202_v29 = vrot.slane %v7138_v20, 1  ;;  %v769_v30 = vrot.slane %v7138_v20, 2  ;;  %5844 = vmatmul.mubr.msk.f32.vlgmr.msra.gmra.mrb[0].mxu0 %vm250_vm4, %v246_v22 }
  0x8d   :  { %v76_v32 = vpop.permute.xlu1 %75  ;;  %v73_v33 = vpop.permute.xlu0 %72  ;;  %5846 = vmatprep.mubr.msk.f32.mxu0 %vm250_vm4, %v245_v26  ;;  %5880 = vmatpush3.msra.mxu0 %v6971_v12  ;;  %v7171_v35 = vsel %vm789_vm3, %v765_v1, %v766_v11  ;;  %v7200_v49 = vsel %vm789_vm3, %v766_v11, %v767_v60 }
  0x8e   :  { %vm132_vm9 = vcmp.eq.s32.totalorder %v76_v32, %v7088_v52  ;;  %vm131_vm10 = vcmp.eq.s32.totalorder %v73_v33, %v7088_v52  ;;  %v244_v38 = vsel %vm224_vm2, %v201_v6, %v202_v29  ;;  %v243_v12 = vsel %vm224_vm2, %v202_v29, %v203_v23  ;;  %5917 = vmatprep.subr.mxu0 %v7155_v27 }
  0x8f   :  { %v7174_v36 = vsel %vm132_vm9, 1.0, %v9531_v56  ;;  %v7177_v37 = vsel %vm131_vm10, 1.0, %v9531_v56  ;;  %v7204_v50 = vsel %vm789_vm3, %v768_v7, %v769_v30  ;;  %v7230_v22 = vsel %vm789_vm3, %v769_v30, %v770_v24 }
  0x90   :  { %v205_v39 = vrot.slane %v7174_v36, 1  ;;  %v772_v40 = vrot.slane %v7174_v36, 2  ;;  %v204_v43 = vrot.slane %v7177_v37, 1  ;;  %v771_v44 = vrot.slane %v7177_v37, 2  ;;  %5847 = vmatmul.mubr.msk.f32.gmra.mrb[2].mxu0 %vm250_vm4, %v244_v38 }
  0x91   :  { %v82_v47 = vpop.permute.xlu1 %81  ;;  %v79_v48 = vpop.permute.xlu0 %78  ;;  %5849 = vmatprep.mubr.msk.f32.mxu0 %vm250_vm4, %v243_v12  ;;  %vm1120_vm10 = vcmp.lt.s32.totalorder %v7090_v53, 5 }
  0x92   :  { %vm134_vm11 = vcmp.eq.s32.totalorder %v82_v47, %v7088_v52  ;;  %vm133_vm12 = vcmp.eq.s32.totalorder %v79_v48, %v7088_v52  ;;  %v242_v55 = vsel %vm224_vm2, %v203_v23, %v204_v43  ;;  %v241_v59 = vsel %vm224_vm2, %v204_v43, %v205_v39 }
  0x93   :  { %v7207_v51 = vsel %vm134_vm11, 1.0, %v9531_v56  ;;  %v7210_v54 = vsel %vm133_vm12, 1.0, %v9531_v56  ;;  %v7234_v23 = vsel %vm789_vm3, %v770_v24, %v771_v44 }
  0x94   :  { %v207_v62 = vrot.slane %v7207_v51, 1  ;;  %v774_v60 = vrot.slane %v7207_v51, 2  ;;  %v206_v7 = vrot.slane %v7210_v54, 1  ;;  %v773_v11 = vrot.slane %v7210_v54, 2  ;;  %5850 = vmatmul.mubr.msk.f32.gmra.mrb[4].mxu0 %vm250_vm4, %v242_v55 }
  0x95   :  { %v88_v16 = vpop.permute.xlu1 %87  ;;  %v85_v21 = vpop.permute.xlu0 %84  ;;  %5852 = vmatprep.mubr.msk.f32.mxu0 %vm250_vm4, %v241_v59 }
  0x96   :  { %vm136_vm13 = vcmp.eq.s32.totalorder %v88_v16, %v7088_v52  ;;  %vm135_vm14 = vcmp.eq.s32.totalorder %v85_v21, %v7088_v52  ;;  %v240_v32 = vsel %vm224_vm2, %v205_v39, %v206_v7  ;;  %v239_v33 = vsel %vm224_vm2, %v206_v7, %v207_v62 }
  0x97   :  { %v7237_v26 = vsel %vm136_vm13, 1.0, %v9531_v56  ;;  %v7240_v29 = vsel %vm135_vm14, 1.0, %v9531_v56  ;;  %v7260_v7 = vsel %vm789_vm3, %v771_v44, %v772_v40  ;;  %v7264_v16 = vsel %vm789_vm3, %v772_v40, %v773_v11 }
  0x98   :  { %v209_v38 = vrot.slane %v7237_v26, 1  ;;  %v776_v30 = vrot.slane %v7237_v26, 2  ;;  %v208_v43 = vrot.slane %v7240_v29, 1  ;;  %v775_v47 = vrot.slane %v7240_v29, 2  ;;  %5853 = vmatmul.mubr.msk.f32.gmra.mrb[6].mxu0 %vm250_vm4, %v240_v32 }
  0x99   :  { %v94_v39 = vpop.permute.xlu1 %93  ;;  %v91_v59 = vpop.permute.xlu0 %90  ;;  %5855 = vmatprep.mubr.msk.f32.mxu0 %vm250_vm4, %v239_v33  ;;  %v7290_v40 = vsel %vm789_vm3, %v773_v11, %v774_v60 }
  0x9a   :  { %vm138_vm15 = vcmp.eq.s32.totalorder %v94_v39, %v7088_v52  ;;  %vm137_vm0 = vcmp.eq.s32.totalorder %v91_v59, %v7088_v52  ;;  %v238_v39 = vsel %vm224_vm2, %v207_v62, %v208_v43  ;;  %v237_v33 = vsel %vm224_vm2, %v208_v43, %v209_v38 }
  0x9b   :  { %v7267_v21 = vsel %vm138_vm15, 1.0, %v9531_v56  ;;  %v7270_v32 = vsel %vm137_vm0, 1.0, %v9531_v56  ;;  %v7294_v46 = vsel %vm789_vm3, %v774_v60, %v775_v47  ;;  %v7320_v60 = vsel %vm789_vm3, %v775_v47, %v776_v30 }
  0x9c   :  { %v211_v59 = vrot.slane %v7267_v21, 1  ;;  %v778_v44 = vrot.slane %v7267_v21, 2  ;;  %v210_v55 = vrot.slane %v7270_v32, 1  ;;  %v777_v6 = vrot.slane %v7270_v32, 2  ;;  %5856 = vmatmul.mubr.msk.f32.gmra.mrb[8].mxu0 %vm250_vm4, %v238_v39 }
  0x9d   :  { %v100_v62 = vpop.permute.xlu1 %99  ;;  %v97_v43 = vpop.permute.xlu0 %96  ;;  %5858 = vmatprep.mubr.msk.f32.mxu0 %vm250_vm4, %v237_v33  ;;  %vm1451_vm15 = vcmp.lt.s32.totalorder %v7090_v53, 4  ;;  %vm2329_vm0 = vcmp.lt.s32.totalorder %v7090_v53, 1 }
  0x9e   :  { %vm140_vm1 = vcmp.eq.s32.totalorder %v100_v62, %v7088_v52  ;;  %vm139_vm5 = vcmp.eq.s32.totalorder %v97_v43, %v7088_v52  ;;  %v236_v62 = vsel %vm224_vm2, %v209_v38, %v210_v55  ;;  %v235_v33 = vsel %vm224_vm2, %v210_v55, %v211_v59 }
  0x9f   :  { %v7297_v42 = vsel %vm140_vm1, 1.0, %v9531_v56  ;;  %v7300_v39 = vsel %vm139_vm5, 1.0, %v9531_v56  ;;  %v7324_v17 = vsel %vm789_vm3, %v776_v30, %v777_v6  ;;  %v7350_v30 = vsel %vm789_vm3, %v777_v6, %v778_v44 }
  0xa0   :  { %v213_v43 = vrot.slane %v7297_v42, 1  ;;  %v780_v11 = vrot.slane %v7297_v42, 2  ;;  %v212_v34 = vrot.slane %v7300_v39, 1  ;;  %v779_v10 = vrot.slane %v7300_v39, 2  ;;  %5859 = vmatmul.mubr.msk.f32.gmra.mrb[10].mxu0 %vm250_vm4, %v236_v62 }
  0xa1   :  { %v106_v38 = vpop.permute.xlu1 %105  ;;  %v103_v55 = vpop.permute.xlu0 %102  ;;  %5861 = vmatprep.mubr.msk.f32.mxu0 %vm250_vm4, %v235_v33  ;;  %vm2272_vm1 = vcmp.lt.s32.totalorder %v7090_v53, 2  ;;  %v4284_v53 = vld [vmem:[%s9526_s1 + $0x1e8] sm:$0xff] }
  0xa2   :  { %vm142_vm6 = vcmp.eq.s32.totalorder %v106_v38, %v7088_v52  ;;  %vm141_vm7 = vcmp.eq.s32.totalorder %v103_v55, %v7088_v52  ;;  %v234_v38 = vsel %vm224_vm2, %v211_v59, %v212_v34  ;;  %v233_v33 = vsel %vm224_vm2, %v212_v34, %v213_v43 }
  0xa3   :  { %v7327_v3 = vsel %vm142_vm6, 1.0, %v9531_v56  ;;  %v7330_v62 = vsel %vm141_vm7, 1.0, %v9531_v56  ;;  %v7354_v28 = vsel %vm789_vm3, %v778_v44, %v779_v10  ;;  %v7381_v44 = vsel %vm789_vm3, %v779_v10, %v780_v11 }
  0xa4   :  { %v215_v55 = vrot.slane %v7327_v3, 1  ;;  %v782_v47 = vrot.slane %v7327_v3, 2  ;;  %v214_v0 = vrot.slane %v7330_v62, 1  ;;  %v781_v24 = vrot.slane %v7330_v62, 2  ;;  %5862 = vmatmul.mubr.msk.f32.gmra.mrb[12].mxu0 %vm250_vm4, %v234_v38 }
  0xa5   :  { %v112_v59 = vpop.permute.xlu1 %111  ;;  %v109_v34 = vpop.permute.xlu0 %108  ;;  %5864 = vmatprep.mubr.msk.f32.mxu0 %vm250_vm4, %v233_v33 }
  0xa6   :  { %vm144_vm8 = vcmp.eq.s32.totalorder %v112_v59, %v7088_v52  ;;  %vm143_vm9 = vcmp.eq.s32.totalorder %v109_v34, %v7088_v52  ;;  %v232_v59 = vsel %vm224_vm2, %v213_v43, %v214_v0  ;;  %v231_v33 = vsel %vm224_vm2, %v214_v0, %v215_v55 }
  0xa7   :  { %v7357_v12 = vsel %vm144_vm8, 1.0, %v9531_v56  ;;  %v7360_v38 = vsel %vm143_vm9, 1.0, %v9531_v56  ;;  %v7385_v15 = vsel %vm789_vm3, %v780_v11, %v781_v24  ;;  %v7411_v11 = vsel %vm789_vm3, %v781_v24, %v782_v47 }
  0xa8   :  { %v217_v34 = vrot.slane %v7357_v12, 1  ;;  %v784_v6 = vrot.slane %v7357_v12, 2  ;;  %v216_v48 = vrot.slane %v7360_v38, 1  ;;  %v783_v63 = vrot.slane %v7360_v38, 2  ;;  %5865 = vmatmul.mubr.msk.f32.gmra.mrb[14].mxu0 %vm250_vm4, %v232_v59 }
  0xa9   :  { %v118_v43 = vpop.permute.xlu1 %117  ;;  %v115_v0 = vpop.permute.xlu0 %114  ;;  %5867 = vmatprep.mubr.msk.f32.mxu0 %vm250_vm4, %v231_v33 }
  0xaa   :  { %vm146_vm11 = vcmp.eq.s32.totalorder %v118_v43, %v7088_v52  ;;  %vm145_vm12 = vcmp.eq.s32.totalorder %v115_v0, %v7088_v52  ;;  %v230_v43 = vsel %vm224_vm2, %v215_v55, %v216_v48  ;;  %v229_v33 = vsel %vm224_vm2, %v216_v48, %v217_v34 }
  0xab   :  { %v7388_v59 = vsel %vm146_vm11, 1.0, %v9531_v56  ;;  %v7391_v41 = vsel %vm145_vm12, 1.0, %v9531_v56  ;;  %v7415_v14 = vsel %vm789_vm3, %v782_v47, %v783_v63 }
  0xac   :  { %v219_v0 = vrot.slane %v7388_v59, 1  ;;  %v786_v10 = vrot.slane %v7388_v59, 2  ;;  %v218_v45 = vrot.slane %v7391_v41, 1  ;;  %v785_v25 = vrot.slane %v7391_v41, 2  ;;  %5868 = vmatmul.mubr.msk.f32.gmra.mrb[16].mxu0 %vm250_vm4, %v230_v43 }
  0xad   :  { %v1116_v31 = vrot.slane %v7391_v41, 3  ;;  %v124_v55 = vpop.permute.xlu1 %123  ;;  %v121_v48 = vpop.permute.xlu0 %120  ;;  %5870 = vmatprep.mubr.msk.f32.mxu0 %vm250_vm4, %v229_v33 }
  0xae   :  { %vm148_vm13 = vcmp.eq.s32.totalorder %v124_v55, %v7088_v52  ;;  %vm147_vm14 = vcmp.eq.s32.totalorder %v121_v48, %v7088_v52  ;;  %v228_v55 = vsel %vm224_vm2, %v217_v34, %v218_v45  ;;  %v227_v52 = vsel %vm224_vm2, %v218_v45, %v219_v0 }
  0xaf   :  { %v7418_v8 = vsel %vm148_vm13, 1.0, %v9531_v56  ;;  %v7421_v43 = vsel %vm147_vm14, 1.0, %v9531_v56  ;;  %v7444_v48 = vsel %vm789_vm3, %v783_v63, %v784_v6  ;;  %v7448_v13 = vsel %vm789_vm3, %v784_v6, %v785_v25 }
  0xb0   :  { %v221_v24 = vrot.slane %v7418_v8, 1  ;;  %v788_v33 = vrot.slane %v7418_v8, 2  ;;  %v1119_v47 = vrot.slane %v7418_v8, 3  ;;  %v220_v61 = vrot.slane %v7421_v43, 1  ;;  %5871 = vmatmul.mubr.msk.f32.gmra.mrb[18].mxu0 %vm250_vm4, %v228_v55 }
  0xb1   :  { %v787_v56 = vrot.slane %v7421_v43, 2  ;;  %v1118_v2 = vrot.slane %v7421_v43, 3  ;;  %5873 = vmatprep.mubr.msk.f32.mxu0 %vm250_vm4, %v227_v52  ;;  %v7452_v34 = vsel %vm789_vm3, %v785_v25, %v786_v10  ;;  %v9534_v6 = vrot.slane %v7115_v5, 3 }
  0xb2   :  { %v248_v45 = vsel %vm224_vm2, %v221_v24, %v198_v9  ;;  %v226_v55 = vsel %vm224_vm2, %v219_v0, %v220_v61  ;;  %v225_v52 = vsel %vm224_vm2, %v220_v61, %v221_v24  ;;  %v7470_v25 = vsel %vm789_vm3, %v788_v33, %v765_v1 }
  0xb3   :  { %v7460_v9 = vsel %vm789_vm3, %v786_v10, %v787_v56  ;;  %v7464_v63 = vsel %vm789_vm3, %v787_v56, %v788_v33  ;;  %v9535_v0 = vrot.slane %v7098_v58, 3  ;;  %v9537_v10 = vrot.slane %v7095_v57, 3 }
  0xb4   :  { %9533 = vst [vmem:[#allocation5_spill] sm:$0xff] %v7464_v63  ;;  %v9538_v24 = vmov %v9534_v6  ;;  %v9540_v63 = vrot.slane %v7112_v4, 3  ;;  %5874 = vmatmul.mubr.msk.f32.gmra.mrb[20].mxu0 %vm250_vm4, %v226_v55 }
  0xb5   :  { %v7478_v61 = vsel %vm1120_vm10, %v9535_v0, %v9534_v6  ;;  %v7486_v56 = vsel %vm1120_vm10, %v9538_v24, %v9537_v10  ;;  %v9541_v1 = vmov %v9537_v10  ;;  %v9543_v6 = vrot.slane %v7138_v20, 3  ;;  %5876 = vmatprep.mubr.msk.f32.mxu0 %vm250_vm4, %v225_v52 }
  0xb6   :  { %9536 = vst [vmem:[#allocation6_spill] sm:$0xff] %v7478_v61  ;;  %9539 = vst [vmem:[#allocation7_spill] sm:$0xff] %v7486_v56  ;;  %v7494_v33 = vsel %vm1120_vm10, %v9541_v1, %v9540_v63  ;;  %v9544_v0 = vmov %v9540_v63  ;;  %v9545_v10 = vrot.slane %v7135_v19, 3  ;;  %v9548_v63 = vrot.slane %v7177_v37, 3 }
  0xb7   :  { %9542 = vst [vmem:[#allocation8_spill] sm:$0xff] %v7494_v33  ;;  %v7503_v61 = vsel %vm1120_vm10, %v9544_v0, %v9543_v6  ;;  %v9546_v24 = vmov %v9543_v6  ;;  %v9551_v33 = vrot.slane %v7174_v36, 3 }
  0xb8   :  { %v7511_v56 = vsel %vm1120_vm10, %v9546_v24, %v9545_v10  ;;  %v9549_v55 = vmov %v9545_v10  ;;  %v9552_v6 = vmov %v9548_v63  ;;  %v9554_v10 = vrot.slane %v7210_v54, 3  ;;  %5877 = vmatmul.mubr.msk.f32.gmra.mrb[22].mxu0 %vm250_vm4, %v248_v45 }
  0xb9   :  { %9547 = vst [vmem:[#allocation9_spill] sm:$0xff] %v7511_v56  ;;  %v7519_v1 = vsel %vm1120_vm10, %v9549_v55, %v9548_v63  ;;  %v7527_v0 = vsel %vm1120_vm10, %v9552_v6, %v9551_v33  ;;  %v9555_v24 = vmov %v9551_v33  ;;  %v9557_v63 = vrot.slane %v7207_v51, 3  ;;  %5881 = vmatprep.mubr.msk.f32.mxu0 %vm250_vm4, %v7098_v58 }
  0xba   :  { %9550 = vst [vmem:[#allocation10_spill] sm:$0xff] %v7519_v1  ;;  %9553 = vst [vmem:[#allocation11_spill] sm:$0xff] %v7527_v0  ;;  %v7536_v56 = vsel %vm1120_vm10, %v9555_v24, %v9554_v10  ;;  %v9558_v55 = vmov %v9554_v10  ;;  %v9560_v33 = vrot.slane %v7240_v29, 3  ;;  %v9563_v0 = vrot.slane %v7237_v26, 3 }
  0xbb   :  { %9556 = vst [vmem:[#allocation12_spill] sm:$0xff] %v7536_v56  ;;  %v7544_v1 = vsel %vm1120_vm10, %v9558_v55, %v9557_v63  ;;  %v9561_v52 = vmov %v9557_v63  ;;  %v9566_v56 = vrot.slane %v7270_v32, 3  ;;  %v7647_v45 = vsel %vm1120_vm10, %v1118_v2, %v1119_v47 }
  0xbc   :  { %9559 = vst [vmem:[#allocation13_spill] sm:$0xff] %v7544_v1  ;;  %v7552_v6 = vsel %vm1120_vm10, %v9561_v52, %v9560_v33  ;;  %v9564_v10 = vmov %v9560_v33  ;;  %v9567_v63 = vmov %v9563_v0  ;;  %v9569_v1 = vrot.slane %v7267_v21, 3  ;;  %9593 = vst [vmem:[#allocation24_spill] sm:$0xff] %v7647_v45  ;;  %5882 = vmatmul.mubr.msk.f32.vlgmr.msra.gmra.mrb[0].mxu0 %vm250_vm4, %v7115_v5 }
  0xbd   :  { %9562 = vst [vmem:[#allocation14_spill] sm:$0xff] %v7552_v6  ;;  %v7560_v24 = vsel %vm1120_vm10, %v9564_v10, %v9563_v0  ;;  %v7568_v55 = vsel %vm1120_vm10, %v9567_v63, %v9566_v56  ;;  %v9570_v33 = vmov %v9566_v56  ;;  %v9572_v6 = vrot.slane %v7300_v39, 3  ;;  %5884 = vmatprep.mubr.msk.f32.mxu0 %vm250_vm4, %v7095_v57  ;;  %5918 = vmatpush3.msra.mxu0 %v7155_v27 }
  0xbe   :  { %9565 = vst [vmem:[#allocation15_spill] sm:$0xff] %v7560_v24  ;;  %9568 = vst [vmem:[#allocation16_spill] sm:$0xff] %v7568_v55  ;;  %v7576_v52 = vsel %vm1120_vm10, %v9570_v33, %v9569_v1  ;;  %v9573_v0 = vmov %v9569_v1  ;;  %v9575_v24 = vrot.slane %v7297_v42, 3  ;;  %v9578_v55 = vrot.slane %v7330_v62, 3 }
  0xbf   :  { %9571 = vst [vmem:[#allocation17_spill] sm:$0xff] %v7576_v52  ;;  %v7584_v10 = vsel %vm1120_vm10, %v9573_v0, %v9572_v6  ;;  %v9576_v56 = vmov %v9572_v6  ;;  %v9580_v52 = vrot.slane %v7327_v3, 3 }
  0xc0   :  { %9574 = vst [vmem:[#allocation18_spill] sm:$0xff] %v7584_v10  ;;  %v7592_v63 = vsel %vm1120_vm10, %v9576_v56, %v9575_v24  ;;  %v9579_v1 = vmov %v9575_v24  ;;  %v9581_v6 = vmov %v9578_v55  ;;  %v9583_v10 = vrot.slane %v7360_v38, 3  ;;  %5885 = vmatmul.mubr.msk.f32.gmra.mrb[2].mxu0 %vm250_vm4, %v7112_v4 }
  0xc1   :  { %9577 = vst [vmem:[#allocation19_spill] sm:$0xff] %v7592_v63  ;;  %v7600_v33 = vsel %vm1120_vm10, %v9579_v1, %v9578_v55  ;;  %v7608_v0 = vsel %vm1120_vm10, %v9581_v6, %v9580_v52  ;;  %v9584_v24 = vmov %v9580_v52  ;;  %v9585_v63 = vrot.slane %v7357_v12, 3  ;;  %5887 = vmatprep.mubr.msk.f32.mxu0 %vm250_vm4, %v7138_v20 }
  0xc2   :  { %9582 = vst [vmem:[#allocation20_spill] sm:$0xff] %v7608_v0  ;;  %v7616_v56 = vsel %vm1120_vm10, %v9584_v24, %v9583_v10  ;;  %v9586_v55 = vmov %v9583_v10  ;;  %v9589_v0 = vrot.slane %v7388_v59, 3 }
  0xc3   :  { %v7624_v1 = vsel %vm1120_vm10, %v9586_v55, %v9585_v63  ;;  %v9587_v52 = vmov %v9585_v63  ;;  %v9594_v55 = vrot.slane %v7098_v58, 3 }
  0xc4   :  { %v7631_v6 = vsel %vm1120_vm10, %v9587_v52, %v1116_v31  ;;  %v7637_v10 = vsel %vm1120_vm10, %v1116_v31, %v9589_v0  ;;  %v9591_v24 = vmov %v9589_v0  ;;  %v9596_v31 = vrot.slane %v7115_v5, 4  ;;  %5888 = vmatmul.mubr.msk.f32.gmra.mrb[4].mxu0 %vm250_vm4, %v7135_v19 }
  0xc5   :  { %9588 = vst [vmem:[#allocation21_spill] sm:$0xff] %v7631_v6  ;;  %9590 = vst [vmem:[#allocation22_spill] sm:$0xff] %v7637_v10  ;;  %v7643_v63 = vsel %vm1120_vm10, %v9591_v24, %v1118_v2  ;;  %v7655_v52 = vsel %vm1120_vm10, %v1119_v47, %v9594_v55  ;;  %v9597_v0 = vrot.slane %v7098_v58, 4  ;;  %v9599_v2 = vrot.slane %v7095_v57, 4  ;;  %5890 = vmatprep.mubr.msk.f32.mxu0 %vm250_vm4, %v7177_v37 }
  0xc6   :  { %9592 = vst [vmem:[#allocation23_spill] sm:$0xff] %v7643_v63  ;;  %9595 = vst [vmem:[#allocation25_spill] sm:$0xff] %v7655_v52  ;;  %v9600_v45 = vmov %v9596_v31  ;;  %v9602_v10 = vrot.slane %v7112_v4, 4  ;;  %v9605_v52 = vrot.slane %v7138_v20, 4  ;;  %v9625_v6 = vrot.slane %v7237_v26, 4  ;;  %v1811_v4 = vld [vmem:[%s9526_s1 + $0x30] sm:$0xff] }
  0xc7   :  { %v7663_v24 = vsel %vm1451_vm15, %v9597_v0, %v9596_v31  ;;  %v7671_v63 = vsel %vm1451_vm15, %v9600_v45, %v9599_v2  ;;  %v9603_v47 = vmov %v9599_v2  ;;  %v9644_v57 = vrot.slane %v7360_v38, 4 }
  0xc8   :  { %9598 = vst [vmem:[#allocation26_spill] sm:$0xff] %v7663_v24  ;;  %9601 = vst [vmem:[#allocation27_spill] sm:$0xff] %v7671_v63  ;;  %v7679_v55 = vsel %vm1451_vm15, %v9603_v47, %v9602_v10  ;;  %v9606_v31 = vmov %v9602_v10  ;;  %v9608_v24 = vrot.slane %v7135_v19, 4  ;;  %v9609_v45 = vmov %v9605_v52  ;;  %5891 = vmatmul.mubr.msk.f32.gmra.mrb[6].mxu0 %vm250_vm4, %v7174_v36  ;;  %v1813_v19 = vld [vmem:[%s9526_s1 + $0x40] sm:$0xff] }
  0xc9   :  { %9604 = vst [vmem:[#allocation28_spill] sm:$0xff] %v7679_v55  ;;  %v7687_v0 = vsel %vm1451_vm15, %v9606_v31, %v9605_v52  ;;  %v9611_v63 = vrot.slane %v7177_v37, 4  ;;  %v9614_v55 = vrot.slane %v7174_v36, 4  ;;  %5893 = vmatprep.mubr.msk.f32.mxu0 %vm250_vm4, %v7210_v54  ;;  %v1815_v36 = vld [vmem:[%s9526_s1 + $0x50] sm:$0xff] }
  0xca   :  { %9607 = vst [vmem:[#allocation29_spill] sm:$0xff] %v7687_v0  ;;  %v7695_v2 = vsel %vm1451_vm15, %v9609_v45, %v9608_v24  ;;  %v9612_v10 = vmov %v9608_v24  ;;  %v1145_v24 = vld [vmem:[%s9526_s1 + $0x18] sm:$0xff]  ;;  %v9617_v45 = vrot.slane %v7210_v54, 4  ;;  %v9670_v54 = vld [vmem:[#allocation14_spill] sm:$0xff] }
  0xcb   :  { %9610 = vst [vmem:[#allocation30_spill] sm:$0xff] %v7695_v2  ;;  %v7703_v47 = vsel %vm1451_vm15, %v9612_v10, %v9611_v63  ;;  %v9615_v52 = vmov %v9611_v63  ;;  %v9618_v2 = vmov %v9614_v55  ;;  %v9619_v10 = vrot.slane %v7207_v51, 4  ;;  %5955 = vmatprep.subr.mxu0 %v1145_v24 }
  0xcc   :  { %9613 = vst [vmem:[#allocation31_spill] sm:$0xff] %v7703_v47  ;;  %v7711_v31 = vsel %vm1451_vm15, %v9615_v52, %v9614_v55  ;;  %v7722_v63 = vsel %vm1451_vm15, %v9618_v2, %v9617_v45  ;;  %v9620_v47 = vmov %v9617_v45  ;;  %v9622_v52 = vrot.slane %v7240_v29, 4  ;;  %5894 = vmatmul.mubr.msk.f32.gmra.mrb[8].mxu0 %vm250_vm4, %v7207_v51  ;;  %v9669_v51 = vld [vmem:[#allocation13_spill] sm:$0xff] }
  0xcd   :  { %9616 = vst [vmem:[#allocation32_spill] sm:$0xff] %v7711_v31  ;;  %v7730_v55 = vsel %vm1451_vm15, %v9620_v47, %v9619_v10  ;;  %v9623_v31 = vmov %v9619_v10  ;;  %v9628_v47 = vrot.slane %v7270_v32, 4  ;;  %v9629_v10 = vmov %v9625_v6  ;;  %5896 = vmatprep.mubr.msk.f32.mxu0 %vm250_vm4, %v7240_v29  ;;  %v9676_v29 = vld [vmem:[#allocation20_spill] sm:$0xff] }
  0xce   :  { %9621 = vst [vmem:[#allocation33_spill] sm:$0xff] %v7730_v55  ;;  %v7738_v0 = vsel %vm1451_vm15, %v9623_v31, %v9622_v52  ;;  %v9626_v2 = vmov %v9622_v52  ;;  %v9630_v31 = vrot.slane %v7267_v21, 4 }
  0xcf   :  { %9624 = vst [vmem:[#allocation34_spill] sm:$0xff] %v7738_v0  ;;  %v7746_v45 = vsel %vm1451_vm15, %v9626_v2, %v9625_v6  ;;  %v7756_v55 = vsel %vm1451_vm15, %v9629_v10, %v9628_v47  ;;  %v9631_v52 = vmov %v9628_v47  ;;  %v9632_v6 = vrot.slane %v7300_v39, 4 }
  0xd0   :  { %9627 = vst [vmem:[#allocation35_spill] sm:$0xff] %v7746_v45  ;;  %v7764_v0 = vsel %vm1451_vm15, %v9631_v52, %v9630_v31  ;;  %v9633_v5 = vmov %v9630_v31  ;;  %v9635_v45 = vrot.slane %v7297_v42, 4  ;;  %v9638_v31 = vrot.slane %v7330_v62, 4  ;;  %5897 = vmatmul.mubr.msk.f32.gmra.mrb[10].mxu0 %vm250_vm4, %v7237_v26  ;;  %v9675_v26 = vld [vmem:[#allocation19_spill] sm:$0xff] }
  0xd1   :  { %v7772_v2 = vsel %vm1451_vm15, %v9633_v5, %v9632_v6  ;;  %v9636_v47 = vmov %v9632_v6  ;;  %v9641_v5 = vrot.slane %v7327_v3, 4  ;;  %5899 = vmatprep.mubr.msk.f32.mxu0 %vm250_vm4, %v7270_v32  ;;  %v9681_v32 = vld [vmem:[#allocation25_spill] sm:$0xff] }
  0xd2   :  { %9634 = vst [vmem:[#allocation36_spill] sm:$0xff] %v7772_v2  ;;  %v7780_v10 = vsel %vm1451_vm15, %v9636_v47, %v9635_v45  ;;  %v9639_v52 = vmov %v9635_v45  ;;  %v9642_v2 = vmov %v9638_v31 }
  0xd3   :  { %9637 = vst [vmem:[#allocation37_spill] sm:$0xff] %v7780_v10  ;;  %v7791_v6 = vsel %vm1451_vm15, %v9639_v52, %v9638_v31  ;;  %v7799_v45 = vsel %vm1451_vm15, %v9642_v2, %v9641_v5  ;;  %v9645_v27 = vmov %v9641_v5  ;;  %v9647_v31 = vrot.slane %v7357_v12, 4 }
  0xd4   :  { %9640 = vst [vmem:[#allocation38_spill] sm:$0xff] %v7791_v6  ;;  %9643 = vst [vmem:[#allocation39_spill] sm:$0xff] %v7799_v45  ;;  %v7807_v47 = vsel %vm1451_vm15, %v9645_v27, %v9644_v57  ;;  %v9648_v52 = vmov %v9644_v57  ;;  %v9650_v2 = vrot.slane %v7391_v41, 4  ;;  %v9653_v57 = vrot.slane %v7388_v59, 4  ;;  %5900 = vmatmul.mubr.msk.f32.gmra.mrb[12].mxu0 %vm250_vm4, %v7267_v21  ;;  %v9680_v21 = vld [vmem:[#allocation24_spill] sm:$0xff] }
  0xd5   :  { %9646 = vst [vmem:[#allocation40_spill] sm:$0xff] %v7807_v47  ;;  %v7815_v6 = vsel %vm1451_vm15, %v9648_v52, %v9647_v31  ;;  %v9651_v5 = vmov %v9647_v31  ;;  %v9655_v10 = vrot.slane %v7421_v43, 4  ;;  %5902 = vmatprep.mubr.msk.f32.mxu0 %vm250_vm4, %v7300_v39  ;;  %v9683_v39 = vld [vmem:[#allocation27_spill] sm:$0xff] }
  0xd6   :  { %9649 = vst [vmem:[#allocation41_spill] sm:$0xff] %v7815_v6  ;;  %v7823_v45 = vsel %vm1451_vm15, %v9651_v5, %v9650_v2  ;;  %v9654_v27 = vmov %v9650_v2  ;;  %v9656_v31 = vmov %v9653_v57  ;;  %v9657_v6 = vrot.slane %v7418_v8, 4 }
  0xd7   :  { %9652 = vst [vmem:[#allocation42_spill] sm:$0xff] %v7823_v45  ;;  %v7831_v47 = vsel %vm1451_vm15, %v9654_v27, %v9653_v57  ;;  %v7839_v52 = vsel %vm1451_vm15, %v9656_v31, %v9655_v10  ;;  %v9658_v2 = vmov %v9655_v10  ;;  %v9659_v45 = vrot.slane %v7098_v58, 4  ;;  %v1476_v58 = vld [vmem:[%s9526_s1 + $0x20] sm:$0xff] }
  0xd8   :  { %v7847_v5 = vsel %vm1451_vm15, %v9658_v2, %v9657_v6  ;;  %v9660_v57 = vmov %v9657_v6  ;;  %5903 = vmatmul.mubr.msk.f32.gmra.mrb[14].mxu0 %vm250_vm4, %v7297_v42  ;;  %v9664_v42 = vld [vmem:[#allocation8_spill] sm:$0xff] }
  0xd9   :  { %v7855_v27 = vsel %vm1451_vm15, %v9660_v57, %v9659_v45  ;;  %5905 = vmatprep.mubr.msk.f32.mxu0 %vm250_vm4, %v7330_v62  ;;  %v9685_v62 = vld [vmem:[#allocation29_spill] sm:$0xff] }
  0xdc   :  { %5906 = vmatmul.mubr.msk.f32.gmra.mrb[16].mxu0 %vm250_vm4, %v7327_v3  ;;  %v1810_v3 = vld [vmem:[%s9526_s1 + $0x28] sm:$0xff] }
  0xdd   :  { %5908 = vmatprep.mubr.msk.f32.mxu0 %vm250_vm4, %v7360_v38  ;;  %v9687_v38 = vld [vmem:[#allocation31_spill] sm:$0xff] }
  0xe0   :  { %5909 = vmatmul.mubr.msk.f32.gmra.mrb[18].mxu0 %vm250_vm4, %v7357_v12  ;;  %v9677_v12 = vld [vmem:[#allocation21_spill] sm:$0xff] }
  0xe1   :  { %5911 = vmatprep.mubr.msk.f32.mxu0 %vm250_vm4, %v7391_v41  ;;  %v9663_v41 = vld [vmem:[#allocation7_spill] sm:$0xff] }
  0xe4   :  { %5912 = vmatmul.mubr.msk.f32.gmra.mrb[20].mxu0 %vm250_vm4, %v7388_v59  ;;  %v9689_v59 = vld [vmem:[#allocation33_spill] sm:$0xff] }
  0xe5   :  { %5914 = vmatprep.mubr.msk.f32.mxu0 %vm250_vm4, %v7421_v43  ;;  %v9691_v43 = vld [vmem:[#allocation35_spill] sm:$0xff] }
  0xe8   :  { %5915 = vmatmul.mubr.msk.f32.gmra.mrb[22].mxu0 %vm250_vm4, %v7418_v8  ;;  %v1812_v8 = vld [vmem:[%s9526_s1 + $0x38] sm:$0xff] }
  0xe9   :  { %5919 = vmatprep.mubr.msk.f32.mxu0 %vm250_vm4, %v7171_v35  ;;  %v6439_v20 = vpack.c.bf16 %v1813_v19, %v1812_v8  ;;  %v1814_v35 = vld [vmem:[%s9526_s1 + $0x48] sm:$0xff] }
  0xea   :  { %v6443_v37 = vpack.c.bf16 %v1815_v36, %v1814_v35 }
  0xec   :  { %5920 = vmatmul.mubr.msk.f32.vlgmr.msra.gmra.mrb[0].mxu0 %vm250_vm4, %v7200_v49  ;;  %v9667_v49 = vld [vmem:[#allocation11_spill] sm:$0xff] }
  0xed   :  { %5922 = vmatprep.mubr.msk.f32.mxu0 %vm250_vm4, %v7132_v18  ;;  %5956 = vmatpush3.msra.mxu0 %v1145_v24  ;;  %v6435_v18 = vpack.c.bf16 %v1811_v4, %v1810_v3 }
  0xee   :  { %5993 = vmatprep.subr.mxu0 %v1476_v58 }
  0xef   :  { %6436 = vmatprep.subr.bf16.mxu1 %v6435_v18 }
  0xf0   :  { %5923 = vmatmul.mubr.msk.f32.gmra.mrb[2].mxu0 %vm250_vm4, %v7204_v50  ;;  %6438 = vmatpush3.bf16.msra.mxu1 %v6435_v18  ;;  %v9668_v50 = vld [vmem:[#allocation12_spill] sm:$0xff] }
  0xf1   :  { %5925 = vmatprep.mubr.msk.f32.mxu0 %vm250_vm4, %v7230_v22  ;;  %6440 = vmatprep.subr.bf16.mxu1 %v6439_v20  ;;  %v9673_v22 = vld [vmem:[#allocation17_spill] sm:$0xff] }
  0xf4   :  { %5926 = vmatmul.mubr.msk.f32.gmra.mrb[4].mxu0 %vm250_vm4, %v7234_v23  ;;  %6442 = vmatpush3.bf16.msra.mxu1 %v6439_v20  ;;  %v9674_v23 = vld [vmem:[#allocation18_spill] sm:$0xff] }
  0xf5   :  { %5928 = vmatprep.mubr.msk.f32.mxu0 %vm250_vm4, %v7260_v7  ;;  %6444 = vmatprep.subr.bf16.mxu1 %v6443_v37  ;;  %v9678_v7 = vld [vmem:[#allocation22_spill] sm:$0xff] }
  0xf8   :  { %5929 = vmatmul.mubr.msk.f32.gmra.mrb[6].mxu0 %vm250_vm4, %v7264_v16  ;;  %6446 = vmatpush3.bf16.msra.mxu1 %v6443_v37  ;;  %v9679_v16 = vld [vmem:[#allocation23_spill] sm:$0xff] }
  0xf9   :  { %5931 = vmatprep.mubr.msk.f32.mxu0 %vm250_vm4, %v7290_v40  ;;  %v9682_v40 = vld [vmem:[#allocation26_spill] sm:$0xff] }
  0xfc   :  { %5932 = vmatmul.mubr.msk.f32.gmra.mrb[8].mxu0 %vm250_vm4, %v7294_v46  ;;  %v9666_v46 = vld [vmem:[#allocation10_spill] sm:$0xff] }
  0xfd   :  { %5934 = vmatprep.mubr.msk.f32.mxu0 %vm250_vm4, %v7320_v60  ;;  %v9684_v60 = vld [vmem:[#allocation28_spill] sm:$0xff] }
 0x100   :  { %5935 = vmatmul.mubr.msk.f32.gmra.mrb[10].mxu0 %vm250_vm4, %v7324_v17  ;;  %v9661_v17 = vld [vmem:[#allocation5_spill] sm:$0xff] }
 0x101   :  { %5937 = vmatprep.mubr.msk.f32.mxu0 %vm250_vm4, %v7350_v30  ;;  %v9686_v30 = vld [vmem:[#allocation30_spill] sm:$0xff] }
 0x104   :  { %5938 = vmatmul.mubr.msk.f32.gmra.mrb[12].mxu0 %vm250_vm4, %v7354_v28  ;;  %v9662_v28 = vld [vmem:[#allocation6_spill] sm:$0xff] }
 0x105   :  { %5940 = vmatprep.mubr.msk.f32.mxu0 %vm250_vm4, %v7381_v44  ;;  %v9688_v44 = vld [vmem:[#allocation32_spill] sm:$0xff] }
 0x108   :  { %5941 = vmatmul.mubr.msk.f32.gmra.mrb[14].mxu0 %vm250_vm4, %v7385_v15  ;;  %v9672_v15 = vld [vmem:[#allocation16_spill] sm:$0xff] }
 0x109   :  { %5943 = vmatprep.mubr.msk.f32.mxu0 %vm250_vm4, %v7411_v11  ;;  %v9690_v11 = vld [vmem:[#allocation34_spill] sm:$0xff] }
 0x10c   :  { %5944 = vmatmul.mubr.msk.f32.gmra.mrb[16].mxu0 %vm250_vm4, %v7415_v14  ;;  %v9671_v14 = vld [vmem:[#allocation15_spill] sm:$0xff] }
 0x10d   :  { %5946 = vmatprep.mubr.msk.f32.mxu0 %vm250_vm4, %v7444_v48  ;;  %v9692_v48 = vld [vmem:[#allocation36_spill] sm:$0xff] }
 0x110   :  { %5947 = vmatmul.mubr.msk.f32.gmra.mrb[18].mxu0 %vm250_vm4, %v7448_v13  ;;  %v9665_v13 = vld [vmem:[#allocation9_spill] sm:$0xff] }
 0x111   :  { %5949 = vmatprep.mubr.msk.f32.mxu0 %vm250_vm4, %v7452_v34  ;;  %v9693_v34 = vld [vmem:[#allocation37_spill] sm:$0xff] }
 0x114   :  { %5950 = vmatmul.mubr.msk.f32.gmra.mrb[20].mxu0 %vm250_vm4, %v7460_v9  ;;  %v9694_v9 = vld [vmem:[#allocation38_spill] sm:$0xff] }
 0x115   :  { %5952 = vmatprep.mubr.msk.f32.mxu0 %vm250_vm4, %v9661_v17 }
 0x118   :  { %5953 = vmatmul.mubr.msk.f32.gmra.mrb[22].mxu0 %vm250_vm4, %v7470_v25  ;;  %v9695_v25 = vld [vmem:[#allocation39_spill] sm:$0xff] }
 0x119   :  { %5957 = vmatprep.mubr.msk.f32.mxu0 %vm250_vm4, %v9662_v28 }
 0x11c   :  { %5958 = vmatmul.mubr.msk.f32.vlgmr.msra.gmra.mrb[0].mxu0 %vm250_vm4, %v9663_v41 }
 0x11d   :  { %5960 = vmatprep.mubr.msk.f32.mxu0 %vm250_vm4, %v9664_v42  ;;  %5994 = vmatpush3.msra.mxu0 %v1476_v58 }
 0x120   :  { %5961 = vmatmul.mubr.msk.f32.gmra.mrb[2].mxu0 %vm250_vm4, %v7503_v61  ;;  %v9696_v61 = vld [vmem:[#allocation40_spill] sm:$0xff] }
 0x121   :  { %5963 = vmatprep.mubr.msk.f32.mxu0 %vm250_vm4, %v9665_v13 }
 0x124   :  { %5964 = vmatmul.mubr.msk.f32.gmra.mrb[4].mxu0 %vm250_vm4, %v9666_v46 }
 0x125   :  { %5966 = vmatprep.mubr.msk.f32.mxu0 %vm250_vm4, %v9667_v49 }
 0x128   :  { %5967 = vmatmul.mubr.msk.f32.gmra.mrb[6].mxu0 %vm250_vm4, %v9668_v50 }
 0x129   :  { %5969 = vmatprep.mubr.msk.f32.mxu0 %vm250_vm4, %v9669_v51 }
 0x12c   :  { %5970 = vmatmul.mubr.msk.f32.gmra.mrb[8].mxu0 %vm250_vm4, %v9670_v54 }
 0x12d   :  { %5972 = vmatprep.mubr.msk.f32.mxu0 %vm250_vm4, %v9671_v14 }
 0x130   :  { %5973 = vmatmul.mubr.msk.f32.gmra.mrb[10].mxu0 %vm250_vm4, %v9672_v15 }
 0x131   :  { %5975 = vmatprep.mubr.msk.f32.mxu0 %vm250_vm4, %v9673_v22 }
 0x134   :  { %5976 = vmatmul.mubr.msk.f32.gmra.mrb[12].mxu0 %vm250_vm4, %v9674_v23 }
 0x135   :  { %5978 = vmatprep.mubr.msk.f32.mxu0 %vm250_vm4, %v9675_v26 }
 0x138   :  { %5979 = vmatmul.mubr.msk.f32.gmra.mrb[14].mxu0 %vm250_vm4, %v7600_v33  ;;  %v9697_v33 = vld [vmem:[#allocation41_spill] sm:$0xff] }
 0x139   :  { %5981 = vmatprep.mubr.msk.f32.mxu0 %vm250_vm4, %v9676_v29 }
 0x13c   :  { %5982 = vmatmul.mubr.msk.f32.gmra.mrb[16].mxu0 %vm250_vm4, %v7616_v56  ;;  %v9698_v56 = vld [vmem:[#allocation42_spill] sm:$0xff] }
 0x13d   :  { %5984 = vmatprep.mubr.msk.f32.mxu0 %vm250_vm4, %v7624_v1  ;;  %v1816_v1 = vld [vmem:[%s9526_s1 + $0x58] sm:$0xff] }
 0x140   :  { %5985 = vmatmul.mubr.msk.f32.gmra.mrb[18].mxu0 %vm250_vm4, %v9677_v12 }
 0x141   :  { %5987 = vmatprep.mubr.msk.f32.mxu0 %vm250_vm4, %v9678_v7 }
 0x144   :  { %5988 = vmatmul.mubr.msk.f32.gmra.mrb[20].mxu0 %vm250_vm4, %v9679_v16 }
 0x145   :  { %5990 = vmatprep.mubr.msk.f32.mxu0 %vm250_vm4, %v9680_v21 }
 0x148   :  { %5991 = vmatmul.mubr.msk.f32.gmra.mrb[22].mxu0 %vm250_vm4, %v9681_v32 }
 0x149   :  { %5995 = vmatprep.mubr.msk.f32.mxu0 %vm250_vm4, %v9682_v40 }
 0x14c   :  { %5996 = vmatmul.mubr.msk.f32.vlgmr.msra.gmra.mrb[0].mxu0 %vm250_vm4, %v9683_v39 }
 0x14d   :  { %5998 = vmatprep.mubr.msk.f32.mxu0 %vm250_vm4, %v9684_v60 }
 0x150   :  { %5999 = vmatmul.mubr.msk.f32.gmra.mrb[2].mxu0 %vm250_vm4, %v9685_v62 }
 0x151   :  { %6001 = vmatprep.mubr.msk.f32.mxu0 %vm250_vm4, %v9686_v30 }
 0x154   :  { %6002 = vmatmul.mubr.msk.f32.gmra.mrb[4].mxu0 %vm250_vm4, %v9687_v38 }
 0x155   :  { %6004 = vmatprep.mubr.msk.f32.mxu0 %vm250_vm4, %v9688_v44 }
 0x158   :  { %6005 = vmatmul.mubr.msk.f32.gmra.mrb[6].mxu0 %vm250_vm4, %v7722_v63  ;;  %v8073_v63 = vld [vmem:[%s9527_s2] ss:$0 sm:$0xff] }
 0x159   :  { %6007 = vmatprep.mubr.msk.f32.mxu0 %vm250_vm4, %v9689_v59 }
 0x15c   :  { %6008 = vmatmul.mubr.msk.f32.gmra.mrb[8].mxu0 %vm250_vm4, %v9690_v11 }
 0x15d   :  { %6010 = vmatprep.mubr.msk.f32.mxu0 %vm250_vm4, %v9691_v43 }
 0x160   :  { %6011 = vmatmul.mubr.msk.f32.gmra.mrb[10].mxu0 %vm250_vm4, %v7756_v55 }
 0x161   :  { %6013 = vmatprep.mubr.msk.f32.mxu0 %vm250_vm4, %v7764_v0  ;;  %v1817_v0 = vld [vmem:[%s9526_s1 + $0x60] sm:$0xff] }
 0x162   :  { %v6447_v24 = vpack.c.bf16 %v1817_v0, %v1816_v1 }
 0x164   :  { %6014 = vmatmul.mubr.msk.f32.gmra.mrb[12].mxu0 %vm250_vm4, %v9692_v48  ;;  %6448 = vmatprep.subr.bf16.mxu1 %v6447_v24 }
 0x165   :  { %6016 = vmatprep.mubr.msk.f32.mxu0 %vm250_vm4, %v9693_v34  ;;  %6450 = vmatpush3.bf16.msra.mxu1 %v6447_v24 }
 0x168   :  { %6017 = vmatmul.mubr.msk.f32.gmra.mrb[14].mxu0 %vm250_vm4, %v9694_v9 }
 0x169   :  { %6019 = vmatprep.mubr.msk.f32.mxu0 %vm250_vm4, %v9695_v25 }
 0x16c   :  { %6020 = vmatmul.mubr.msk.f32.gmra.mrb[16].mxu0 %vm250_vm4, %v9696_v61 }
 0x16d   :  { %6022 = vmatprep.mubr.msk.f32.mxu0 %vm250_vm4, %v9697_v33 }
 0x170   :  { %6023 = vmatmul.mubr.msk.f32.gmra.mrb[18].mxu0 %vm250_vm4, %v9698_v56 }
 0x171   :  { %6025 = vmatprep.mubr.msk.f32.mxu0 %vm250_vm4, %v7831_v47 }
 0x174   :  { %6026 = vmatmul.mubr.msk.f32.gmra.mrb[20].mxu0 %vm250_vm4, %v7839_v52 }
 0x175   :  { %6028 = vmatprep.mubr.msk.f32.mxu0 %vm250_vm4, %v7847_v5 }
 0x178   :  { %6029 = vmatmul.mubr.msk.f32.gmra.mrb[22].mxu0 %vm250_vm4, %v7855_v27  ;;  %vm1822_vm4 = vcmask 523264  }
 0x21f   :  { %v5997_v55 = vpop.f32.mrb[0].mxu0 }
 0x220   :  { %v1763_v10 = vadd.f32 %v5997_v55, %v8073_v63  ;;  %v1615_v6 = vpop.f32.mrb[1].mxu0 }
 0x221   :  { %v1762_v45 = vadd.f32 %v8073_v63, %v1615_v6 }
 0x222   :  { %v1787_v52 = vmax.f32 %v1763_v10, 0.0 }
 0x223   :  { %v1786_v47 = vmax.f32 %v1762_v45, 0.0  ;;  %v6000_v31 = vpop.f32.mrb[2].mxu0 }
 0x224   :  { %v1765_v2 = vadd.f32 %v6000_v31, %v8073_v63  ;;  %v1625_v5 = vpop.f32.mrb[3].mxu0 }
 0x225   :  { %v1764_v57 = vadd.f32 %v8073_v63, %v1625_v5  ;;  %6047 = vmatprep.mubr.msk.f32.mxu1 %vm1822_vm4, %v1786_v47 }
 0x226   :  { %6048 = vmatmul.mubr.msk.f32.vlgmr.msra.gmra.mrb[0].mxu1 %vm1822_vm4, %v1787_v52  ;;  %v1789_v3 = vmax.f32 %v1765_v2, 0.0 }
 0x227   :  { %v1788_v27 = vmax.f32 %v1764_v57, 0.0  ;;  %v6003_v58 = vpop.f32.mrb[4].mxu0 }
 0x228   :  { %v1767_v4 = vadd.f32 %v6003_v58, %v8073_v63  ;;  %v1635_v8 = vpop.f32.mrb[5].mxu0  ;;  %v2355_v58 = vld [vmem:[%s9526_s1 + $0xb0] sm:$0xff] }
 0x229   :  { %v1766_v18 = vadd.f32 %v8073_v63, %v1635_v8  ;;  %6050 = vmatprep.mubr.msk.f32.mxu1 %vm1822_vm4, %v1788_v27  ;;  %v2354_v27 = vld [vmem:[%s9526_s1 + $0xa8] sm:$0xff] }
 0x22a   :  { %6051 = vmatmul.mubr.msk.f32.gmra.mrb[2].mxu1 %vm1822_vm4, %v1789_v3  ;;  %v1791_v35 = vmax.f32 %v1767_v4, 0.0  ;;  %v6451_v3 = vpack.c.bf16 %v2355_v58, %v2354_v27  ;;  %v2357_v4 = vld [vmem:[%s9526_s1 + $0xc0] sm:$0xff] }
 0x22b   :  { %v1790_v19 = vmax.f32 %v1766_v18, 0.0  ;;  %v6006_v20 = vpop.f32.mrb[6].mxu0  ;;  %v2358_v18 = vld [vmem:[%s9526_s1 + $0xc8] sm:$0xff] }
 0x22c   :  { %v1769_v36 = vadd.f32 %v6006_v20, %v8073_v63  ;;  %v1645_v37 = vpop.f32.mrb[7].mxu0  ;;  %6452 = vmatprep.subr.bf16.mxu1 %v6451_v3 }
 0x22d   :  { %v1768_v17 = vadd.f32 %v8073_v63, %v1645_v37  ;;  %6053 = vmatprep.mubr.msk.f32.mxu1 %vm1822_vm4, %v1790_v19  ;;  %6454 = vmatpush3.bf16.msra.mxu1 %v6451_v3  ;;  %v2359_v19 = vld [vmem:[%s9526_s1 + $0xd0] sm:$0xff] }
 0x22e   :  { %6054 = vmatmul.mubr.msk.f32.gmra.mrb[4].mxu1 %vm1822_vm4, %v1791_v35  ;;  %v1793_v42 = vmax.f32 %v1769_v36, 0.0  ;;  %v6459_v20 = vpack.c.bf16 %v2359_v19, %v2358_v18  ;;  %v2360_v35 = vld [vmem:[%s9526_s1 + $0xd8] sm:$0xff]  ;;  %v2361_v36 = vld [vmem:[%s9526_s1 + $0xe0] sm:$0xff] }
 0x22f   :  { %v1792_v28 = vmax.f32 %v1768_v17, 0.0  ;;  %v6009_v41 = vpop.f32.mrb[8].mxu0  ;;  %v6463_v37 = vpack.c.bf16 %v2361_v36, %v2360_v35  ;;  %v2297_v17 = vld [vmem:[%s9526_s1 + $0x68] sm:$0xff] }
 0x230   :  { %v1771_v13 = vadd.f32 %v6009_v41, %v8073_v63  ;;  %v1655_v46 = vpop.f32.mrb[9].mxu0 }
 0x231   :  { %v1770_v49 = vadd.f32 %v8073_v63, %v1655_v46  ;;  %6056 = vmatprep.mubr.msk.f32.mxu1 %vm1822_vm4, %v1792_v28  ;;  %v2298_v28 = vld [vmem:[%s9526_s1 + $0x70] sm:$0xff] }
 0x232   :  { %6057 = vmatmul.mubr.msk.f32.gmra.mrb[6].mxu1 %vm1822_vm4, %v1793_v42  ;;  %v1795_v54 = vmax.f32 %v1771_v13, 0.0  ;;  %v8153_v41 = vpack.c.bf16 %v2298_v28, %v2297_v17 }
 0x233   :  { %v1794_v50 = vmax.f32 %v1770_v49, 0.0  ;;  %v6012_v51 = vpop.f32.mrb[10].mxu0 }
 0x234   :  { %v1773_v14 = vadd.f32 %v6012_v51, %v8073_v63  ;;  %v1665_v15 = vpop.f32.mrb[11].mxu0 }
 0x235   :  { %v1772_v22 = vadd.f32 %v8073_v63, %v1665_v15  ;;  %6059 = vmatprep.mubr.msk.f32.mxu1 %vm1822_vm4, %v1794_v50 }
 0x236   :  { %6060 = vmatmul.mubr.msk.f32.gmra.mrb[8].mxu1 %vm1822_vm4, %v1795_v54  ;;  %v1797_v29 = vmax.f32 %v1773_v14, 0.0 }
 0x237   :  { %v1796_v23 = vmax.f32 %v1772_v22, 0.0  ;;  %v6015_v26 = vpop.f32.mrb[12].mxu0  ;;  %v2107_v22 = vpop.permute.xlu0 %2106 }
 0x238   :  { %v1775_v12 = vadd.f32 %v6015_v26, %v8073_v63  ;;  %v1675_v7 = vpop.f32.mrb[13].mxu0  ;;  %v2222_v26 = vpop.permute.xlu1 %2221 }
 0x239   :  { %v1774_v16 = vadd.f32 %v8073_v63, %v1675_v7  ;;  %6062 = vmatprep.mubr.msk.f32.mxu1 %vm1822_vm4, %v1796_v23 }
 0x23a   :  { %6063 = vmatmul.mubr.msk.f32.gmra.mrb[10].mxu1 %vm1822_vm4, %v1797_v29  ;;  %v1799_v40 = vmax.f32 %v1775_v12, 0.0 }
 0x23b   :  { %v1798_v21 = vmax.f32 %v1774_v16, 0.0  ;;  %v6018_v32 = vpop.f32.mrb[14].mxu0  ;;  %v2112_v7 = vpop.permute.xlu0 %2111 }
 0x23c   :  { %v1777_v39 = vadd.f32 %v6018_v32, %v8073_v63  ;;  %v1685_v60 = vpop.f32.mrb[15].mxu0  ;;  %v2117_v16 = vpop.permute.xlu1 %2116 }
 0x23d   :  { %v1776_v62 = vadd.f32 %v8073_v63, %v1685_v60  ;;  %6065 = vmatprep.mubr.msk.f32.mxu1 %vm1822_vm4, %v1798_v21 }
 0x23e   :  { %6066 = vmatmul.mubr.msk.f32.gmra.mrb[12].mxu1 %vm1822_vm4, %v1799_v40  ;;  %v1801_v44 = vmax.f32 %v1777_v39, 0.0 }
 0x23f   :  { %v1800_v30 = vmax.f32 %v1776_v62, 0.0  ;;  %v6021_v38 = vpop.f32.mrb[16].mxu0  ;;  %v2122_v39 = vpop.permute.xlu0 %2121 }
 0x240   :  { %v1779_v59 = vadd.f32 %v6021_v38, %v8073_v63  ;;  %v1695_v11 = vpop.f32.mrb[17].mxu0  ;;  %v2127_v62 = vpop.permute.xlu1 %2126 }
 0x241   :  { %v1778_v43 = vadd.f32 %v8073_v63, %v1695_v11  ;;  %6068 = vmatprep.mubr.msk.f32.mxu1 %vm1822_vm4, %v1800_v30 }
 0x242   :  { %6069 = vmatmul.mubr.msk.f32.gmra.mrb[14].mxu1 %vm1822_vm4, %v1801_v44  ;;  %v1803_v9 = vmax.f32 %v1779_v59, 0.0 }
 0x243   :  { %v1802_v48 = vmax.f32 %v1778_v43, 0.0  ;;  %v6024_v34 = vpop.f32.mrb[18].mxu0  ;;  %v2132_v44 = vpop.permute.xlu0 %2131  ;;  %v8179_v43 = vld [vmem:[%s9527_s2 + $0x1] ss:$0 sm:$0xff] }
 0x244   :  { %v1781_v25 = vadd.f32 %v6024_v34, %v8073_v63  ;;  %v1705_v61 = vpop.f32.mrb[19].mxu0  ;;  %v2137_v59 = vpop.permute.xlu1 %2136 }
 0x245   :  { %v1780_v33 = vadd.f32 %v8073_v63, %v1705_v61  ;;  %6071 = vmatprep.mubr.msk.f32.mxu1 %vm1822_vm4, %v1802_v48 }
 0x246   :  { %6072 = vmatmul.mubr.msk.f32.gmra.mrb[16].mxu1 %vm1822_vm4, %v1803_v9  ;;  %v1805_v0 = vmax.f32 %v1781_v25, 0.0 }
 0x247   :  { %v1804_v56 = vmax.f32 %v1780_v33, 0.0  ;;  %v6027_v1 = vpop.f32.mrb[20].mxu0  ;;  %v2142_v61 = vpop.permute.xlu0 %2141 }
 0x248   :  { %v1783_v24 = vadd.f32 %v6027_v1, %v8073_v63  ;;  %v1715_v55 = vpop.f32.mrb[21].mxu0  ;;  %v2147_v1 = vpop.permute.xlu1 %2146 }
 0x249   :  { %v1782_v10 = vadd.f32 %v8073_v63, %v1715_v55  ;;  %6074 = vmatprep.mubr.msk.f32.mxu1 %vm1822_vm4, %v1804_v56 }
 0x24a   :  { %6075 = vmatmul.mubr.msk.f32.gmra.mrb[18].mxu1 %vm1822_vm4, %v1805_v0  ;;  %v1807_v47 = vmax.f32 %v1783_v24, 0.0 }
 0x24b   :  { %v1806_v6 = vmax.f32 %v1782_v10, 0.0  ;;  %v6030_v45 = vpop.f32.mrb[22].mxu0 }
 0x24c   :  { %v1785_v31 = vadd.f32 %v6030_v45, %v8073_v63  ;;  %v1725_v52 = vpop.f32.mrb[23].mxu0 }
 0x24d   :  { %v1784_v2 = vadd.f32 %v8073_v63, %v1725_v52  ;;  %6077 = vmatprep.mubr.msk.f32.mxu1 %vm1822_vm4, %v1806_v6  ;;  %v2356_v63 = vld [vmem:[%s9526_s1 + $0xb8] sm:$0xff]  ;;  %v2152_v52 = vpop.permute.xlu0 %2151 }
 0x24e   :  { %6078 = vmatmul.mubr.msk.f32.gmra.mrb[20].mxu1 %vm1822_vm4, %v1807_v47  ;;  %v1809_v57 = vmax.f32 %v1785_v31, 0.0  ;;  %v6455_v8 = vpack.c.bf16 %v2357_v4, %v2356_v63  ;;  %v2299_v63 = vld [vmem:[%s9526_s1 + $0x78] sm:$0xff]  ;;  %v2300_v4 = vld [vmem:[%s9526_s1 + $0x80] sm:$0xff] }
 0x24f   :  { %v1808_v5 = vmax.f32 %v1784_v2, 0.0  ;;  %v6471_v36 = vpack.c.bf16 %v2300_v4, %v2299_v63 }
 0x250   :  { %6456 = vmatprep.subr.bf16.mxu1 %v6455_v8 }
 0x251   :  { %6080 = vmatprep.mubr.msk.f32.mxu1 %vm1822_vm4, %v1808_v5  ;;  %6458 = vmatpush3.bf16.msra.mxu1 %v6455_v8  ;;  %v2157_v5 = vpop.permute.xlu1 %2156 }
 0x252   :  { %6081 = vmatmul.mubr.msk.f32.gmra.mrb[22].mxu1 %vm1822_vm4, %v1809_v57  ;;  %6460 = vmatprep.subr.bf16.mxu1 %v6459_v20 }
 0x255   :  { %6462 = vmatpush3.bf16.msra.mxu1 %v6459_v20 }
 0x256   :  { %6464 = vmatprep.subr.bf16.mxu1 %v6463_v37 }
 0x259   :  { %6466 = vmatpush3.bf16.msra.mxu1 %v6463_v37 }
 0x25a   :  { %6468 = vmatprep.subr.bf16.mxu1 %v8153_v41 }
 0x2f9   :  { %v6049_v42 = vpop.f32.mrb[0].mxu1 }
 0x2fa   :  { %v1961_v13 = vpop.f32.mrb[1].mxu1  ;;  %v1967_v34 = vadd.f32 %v6049_v42, %v8179_v43 }
 0x2fb   :  { %v1962_v9 = vadd.f32 %v8179_v43, %v1961_v13  ;;  %v2301_v13 = vld [vmem:[%s9526_s1 + $0x88] sm:$0xff] }
 0x2fc   :  { %v8190_v0 = vmul.f32 %v2112_v7, %v1967_v34 }
 0x2fd   :  { %v6052_v46 = vpop.f32.mrb[2].mxu1  ;;  %v8192_v24 = vmul.f32 %v2107_v22, %v1962_v9  ;;  %v2167_v22 = vpop.permute.xlu1 %2166 }
 0x2fe   :  { %v1971_v49 = vpop.f32.mrb[3].mxu1  ;;  %v1977_v55 = vadd.f32 %v6052_v46, %v8179_v43  ;;  %v2306_v3 = vrot.slane %v8190_v0, 7  ;;  %v2302_v46 = vld [vmem:[%s9526_s1 + $0x90] sm:$0xff] }
 0x2ff   :  { %v1972_v33 = vadd.f32 %v8179_v43, %v1971_v49  ;;  %v2305_v58 = vrot.slane %v8192_v24, 7  ;;  %v2162_v49 = vpop.permute.xlu0 %2161 }
 0x300   :  { %v8204_v57 = vmul.f32 %v2122_v39, %v1977_v55 }
 0x301   :  { %v6055_v50 = vpop.f32.mrb[4].mxu1  ;;  %v8195_v6 = vmul.f32 %v2117_v16, %v1972_v33  ;;  %v2352_v28 = vsel %vm2329_vm0, %v2305_v58, %v2306_v3  ;;  %v2177_v33 = vpop.permute.xlu1 %2176 }
 0x302   :  { %v1981_v51 = vpop.f32.mrb[5].mxu1  ;;  %v1987_v27 = vadd.f32 %v6055_v50, %v8179_v43  ;;  %v2308_v42 = vrot.slane %v8204_v57, 7 }
 0x303   :  { %v1982_v45 = vadd.f32 %v8179_v43, %v1981_v51  ;;  %v2307_v20 = vrot.slane %v8195_v6, 7  ;;  %v2172_v9 = vpop.permute.xlu0 %2171 }
 0x304   :  { %v8224_v37 = vmul.f32 %v2132_v44, %v1987_v27 }
 0x305   :  { %v6058_v54 = vpop.f32.mrb[6].mxu1  ;;  %v8215_v8 = vmul.f32 %v2127_v62, %v1982_v45  ;;  %v2303_v62 = vld [vmem:[%s9526_s1 + $0x98] sm:$0xff]  ;;  %v2876_v45 = vld [vmem:[%s9526_s1 + $0xe8] sm:$0xff] }
 0x306   :  { %v1991_v14 = vpop.f32.mrb[7].mxu1  ;;  %v1997_v17 = vadd.f32 %v6058_v54, %v8179_v43  ;;  %v2351_v54 = vsel %vm2329_vm0, %v2306_v3, %v2307_v20  ;;  %v2310_v39 = vrot.slane %v8224_v37, 7 }
 0x307   :  { %v1992_v18 = vadd.f32 %v8179_v43, %v1991_v14  ;;  %v2309_v14 = vrot.slane %v8215_v8, 7 }
 0x308   :  { %v8246_v7 = vmul.f32 %v2142_v61, %v1997_v17 }
 0x309   :  { %v8156_v15 = vpop.f32.mrb[8].mxu1  ;;  %v8237_v50 = vmul.f32 %v2137_v59, %v1992_v18  ;;  %v2182_v18 = vpop.permute.xlu0 %2181 }
 0x30a   :  { %v2001_v23 = vpop.f32.mrb[9].mxu1  ;;  %v2007_v16 = vadd.f32 %v8156_v15, %v8179_v43  ;;  %v2349_v15 = vsel %vm2329_vm0, %v2308_v42, %v2309_v14 }
 0x30b   :  { %v2002_v51 = vadd.f32 %v8179_v43, %v2001_v23  ;;  %v2350_v23 = vsel %vm2329_vm0, %v2307_v20, %v2308_v42  ;;  %v2311_v34 = vrot.slane %v8237_v50, 7 }
 0x30c   :  { %v8268_v55 = vmul.f32 %v2152_v52, %v2007_v16 }
 0x30d   :  { %v8158_v29 = vpop.f32.mrb[10].mxu1  ;;  %v8259_v44 = vmul.f32 %v2147_v1, %v2002_v51 }
 0x30e   :  { %v8160_v12 = vpop.f32.mrb[11].mxu1  ;;  %v2017_v1 = vadd.f32 %v8158_v29, %v8179_v43  ;;  %v2347_v29 = vsel %vm2329_vm0, %v2310_v39, %v2311_v34  ;;  %v2314_v4 = vrot.slane %v8268_v55, 7 }
 0x30f   :  { %v2012_v59 = vadd.f32 %v8179_v43, %v8160_v12  ;;  %v2348_v12 = vsel %vm2329_vm0, %v2309_v14, %v2310_v39 }
 0x310   :  { %v8292_v63 = vmul.f32 %v2162_v49, %v2017_v1 }
 0x311   :  { %v8162_v21 = vpop.f32.mrb[12].mxu1  ;;  %v8281_v27 = vmul.f32 %v2157_v5, %v2012_v59 }
 0x312   :  { %v8164_v32 = vpop.f32.mrb[13].mxu1  ;;  %v2027_v5 = vadd.f32 %v8162_v21, %v8179_v43 }
 0x313   :  { %v2022_v52 = vadd.f32 %v8179_v43, %v8164_v32  ;;  %v2315_v17 = vrot.slane %v8281_v27, 7 }
 0x314   :  { %v8309_v21 = vmul.f32 %v2172_v9, %v2027_v5 }
 0x315   :  { %v8166_v40 = vpop.f32.mrb[14].mxu1  ;;  %v8299_v20 = vmul.f32 %v2167_v22, %v2022_v52  ;;  %v2343_v51 = vsel %vm2329_vm0, %v2314_v4, %v2315_v17 }
 0x316   :  { %v8168_v60 = vpop.f32.mrb[15].mxu1  ;;  %v2037_v42 = vadd.f32 %v8166_v40, %v8179_v43  ;;  %v2192_v40 = vpop.permute.xlu0 %2191 }
 0x318   :  { %v8325_v22 = vmul.f32 %v2182_v18, %v2037_v42 }
 0x319   :  { %v8170_v30 = vpop.f32.mrb[16].mxu1 }
 0x31a   :  { %v8172_v38 = vpop.f32.mrb[17].mxu1 }
 0x31b   :  { %v2042_v49 = vadd.f32 %v8179_v43, %v8172_v38  ;;  %v2318_v38 = vrot.slane %v8309_v21, 7 }
 0x31d   :  { %v8174_v11 = vpop.f32.mrb[18].mxu1 }
 0x31e   :  { %v8181_v48 = vpop.f32.mrb[19].mxu1  ;;  %v2057_v59 = vadd.f32 %v8174_v11, %v8179_v43 }
 0x31f   :  { %v2052_v39 = vadd.f32 %v8179_v43, %v8181_v48  ;;  %v2202_v48 = vpop.permute.xlu0 %2201 }
 0x320   :  { %v8357_v11 = vmul.f32 %v2202_v48, %v2057_v59  ;;  %v2881_v59 = vld [vmem:[%s9526_s1 + $0x110] sm:$0xff] }
 0x321   :  { %v8185_v25 = vpop.f32.mrb[20].mxu1 }
 0x322   :  { %v8188_v56 = vpop.f32.mrb[21].mxu1  ;;  %v2324_v18 = vrot.slane %v8357_v11, 7 }
 0x325   :  { %v6082_v10 = vpop.f32.mrb[22].mxu1 }
 0x326   :  { %v2077_v47 = vadd.f32 %v6082_v10, %v8179_v43  ;;  %v8199_v31 = vpop.f32.mrb[23].mxu1  ;;  %v2312_v10 = vrot.slane %v8246_v7, 7 }
 0x327   :  { %v2072_v52 = vadd.f32 %v8179_v43, %v8199_v31 }
 0x328   :  { %v8201_v2 = vmul.f32 %v2222_v26, %v2077_v47  ;;  %v6475_v26 = vpack.c.bf16 %v2302_v46, %v2301_v13  ;;  %v2877_v47 = vld [vmem:[%s9526_s1 + $0xf0] sm:$0xff]  ;;  %v2346_v32 = vsel %vm2329_vm0, %v2311_v34, %v2312_v10  ;;  %v2316_v13 = vrot.slane %v8292_v63, 7 }
 0x329   :  { %v8290_v3 = vpack.c.bf16 %v2877_v47, %v2876_v45  ;;  %v2320_v34 = vrot.slane %v8325_v22, 7 }
 0x32a   :  { %v2328_v19 = vrot.slane %v8201_v2, 7  ;;  %v2342_v16 = vsel %vm2329_vm0, %v2315_v17, %v2316_v13 }
 0x32c   :  { %v2353_v35 = vsel %vm2329_vm0, %v2328_v19, %v2305_v58  ;;  %v2313_v58 = vrot.slane %v8259_v44, 7 }
 0x32d   :  { %6099 = vmatprep.mubr.msk.f32.mxu1 %vm1822_vm4, %v2353_v35  ;;  %v2032_v35 = vadd.f32 %v8179_v43, %v8168_v60 }
 0x32e   :  { %6100 = vmatmul.mubr.msk.f32.vlgmr.msra.gmra.mrb[24].mxu1 %vm1822_vm4, %v2352_v28  ;;  %v2187_v28 = vpop.permute.xlu1 %2186  ;;  %v2344_v60 = vsel %vm2329_vm0, %v2313_v58, %v2314_v4 }
 0x32f   :  { %6102 = vmatprep.mubr.msk.f32.mxu1 %vm1822_vm4, %v2351_v54  ;;  %6470 = vmatpush3.bf16.msra.mxu1 %v8153_v41  ;;  %v2304_v41 = vld [vmem:[%s9526_s1 + $0xa0] sm:$0xff]  ;;  %v8316_v46 = vmul.f32 %v2177_v33, %v2032_v35  ;;  %v2317_v54 = vrot.slane %v8299_v20, 7 }
 0x330   :  { %6472 = vmatprep.subr.bf16.mxu1 %v6471_v36  ;;  %v6479_v61 = vpack.c.bf16 %v2304_v41, %v2303_v62 }
 0x331   :  { %v2341_v62 = vsel %vm2329_vm0, %v2316_v13, %v2317_v54  ;;  %v2319_v41 = vrot.slane %v8316_v46, 7 }
 0x332   :  { %6103 = vmatmul.mubr.msk.f32.gmra.mrb[26].mxu1 %vm1822_vm4, %v2350_v23  ;;  %v2197_v14 = vpop.permute.xlu1 %2196  ;;  %v8332_v23 = vmul.f32 %v2187_v28, %v2042_v49  ;;  %v2271_v49 = vrot.slane %v8201_v2, 6 }
 0x333   :  { %6105 = vmatprep.mubr.msk.f32.mxu1 %vm1822_vm4, %v2349_v15  ;;  %6474 = vmatpush3.bf16.msra.mxu1 %v6471_v36  ;;  %v2345_v36 = vsel %vm2329_vm0, %v2312_v10, %v2313_v58  ;;  %v2340_v15 = vsel %vm2329_vm0, %v2317_v54, %v2318_v38  ;;  %v8348_v9 = vmul.f32 %v2197_v14, %v2052_v39  ;;  %v2878_v14 = vld [vmem:[%s9526_s1 + $0xf8] sm:$0xff] }
 0x334   :  { %6476 = vmatprep.subr.bf16.mxu1 %v6475_v26  ;;  %v2339_v33 = vsel %vm2329_vm0, %v2318_v38, %v2319_v41  ;;  %v2321_v1 = vrot.slane %v8332_v23, 7  ;;  %v2067_v10 = vadd.f32 %v8185_v25, %v8179_v43  ;;  %v2338_v45 = vsel %vm2329_vm0, %v2319_v41, %v2320_v34  ;;  %v2212_v25 = vpop.permute.xlu0 %2211  ;;  %v2880_v41 = vld [vmem:[%s9526_s1 + $0x108] sm:$0xff] }
 0x335   :  { %v2323_v58 = vrot.slane %v8348_v9, 7  ;;  %v6491_v48 = vpack.c.bf16 %v2881_v59, %v2880_v41  ;;  %v2266_v41 = vrot.slane %v8348_v9, 6 }
 0x336   :  { %6106 = vmatmul.mubr.msk.f32.gmra.mrb[28].mxu1 %vm1822_vm4, %v2348_v12  ;;  %v2207_v12 = vpop.permute.xlu1 %2206 }
 0x337   :  { %6108 = vmatprep.mubr.msk.f32.mxu1 %vm1822_vm4, %v2347_v29  ;;  %6478 = vmatpush3.bf16.msra.mxu1 %v6475_v26  ;;  %v2047_v26 = vadd.f32 %v8170_v30, %v8179_v43  ;;  %v2337_v29 = vsel %vm2329_vm0, %v2320_v34, %v2321_v1  ;;  %v2252_v34 = vrot.slane %v8215_v8, 6 }
 0x338   :  { %6480 = vmatprep.subr.bf16.mxu1 %v6479_v61 }
 0x339   :  { %v8341_v30 = vmul.f32 %v2192_v40, %v2047_v26  ;;  %v2249_v40 = vrot.slane %v8190_v0, 6  ;;  %v2879_v26 = vld [vmem:[%s9526_s1 + $0x100] sm:$0xff] }
 0x33a   :  { %6109 = vmatmul.mubr.msk.f32.gmra.mrb[30].mxu1 %vm1822_vm4, %v2346_v32  ;;  %v2217_v5 = vpop.permute.xlu1 %2216  ;;  %v8373_v32 = vmul.f32 %v2212_v25, %v2067_v10  ;;  %v6487_v38 = vpack.c.bf16 %v2879_v26, %v2878_v14  ;;  %v2254_v10 = vrot.slane %v8237_v50, 6  ;;  %v2263_v26 = vrot.slane %v8325_v22, 6 }
 0x33b   :  { %6111 = vmatprep.mubr.msk.f32.mxu1 %vm1822_vm4, %v2345_v36  ;;  %6482 = vmatpush3.bf16.msra.mxu1 %v6479_v61  ;;  %v2062_v61 = vadd.f32 %v8179_v43, %v8188_v56  ;;  %v2322_v56 = vrot.slane %v8341_v30, 7  ;;  %v8378_v35 = vmul.f32 %v2217_v5, %v2072_v52  ;;  %v2334_v36 = vsel %vm2329_vm0, %v2323_v58, %v2324_v18 }
 0x33c   :  { %6484 = vmatprep.subr.bf16.mxu1 %v8290_v3  ;;  %v2326_v17 = vrot.slane %v8373_v32, 7  ;;  %v2255_v52 = vrot.slane %v8246_v7, 6  ;;  %v2256_v5 = vrot.slane %v8259_v44, 6 }
 0x33d   :  { %v8364_v47 = vmul.f32 %v2207_v12, %v2062_v61  ;;  %v2336_v4 = vsel %vm2329_vm0, %v2321_v1, %v2322_v56  ;;  %v2335_v43 = vsel %vm2329_vm0, %v2322_v56, %v2323_v58  ;;  %v2327_v42 = vrot.slane %v8378_v35, 7  ;;  %v2882_v1 = vld [vmem:[%s9526_s1 + $0x118] sm:$0xff]  ;;  %v2883_v12 = vld [vmem:[%s9526_s1 + $0x120] sm:$0xff]  ;;  %v3214_v58 = vld [vmem:[%s9526_s1 + $0x130] sm:$0xff] }
 0x33e   :  { %6112 = vmatmul.mubr.msk.f32.gmra.mrb[32].mxu1 %vm1822_vm4, %v2344_v60 }
 0x33f   :  { %6114 = vmatprep.mubr.msk.f32.mxu1 %vm1822_vm4, %v2343_v51  ;;  %v2325_v31 = vrot.slane %v8364_v47, 7  ;;  %v2331_v13 = vsel %vm2329_vm0, %v2326_v17, %v2327_v42  ;;  %v2248_v51 = vrot.slane %v8192_v24, 6  ;;  %v2330_v54 = vsel %vm2329_vm0, %v2327_v42, %v2328_v19 }
 0x340   :  { %v2250_v19 = vrot.slane %v8195_v6, 6 }
 0x341   :  { %v2333_v28 = vsel %vm2329_vm0, %v2324_v18, %v2325_v31  ;;  %v2332_v60 = vsel %vm2329_vm0, %v2325_v31, %v2326_v17  ;;  %v2295_v39 = vsel %vm2272_vm1, %v2248_v51, %v2249_v40  ;;  %v2289_v18 = vsel %vm2272_vm1, %v2254_v10, %v2255_v52 }
 0x342   :  { %6115 = vmatmul.mubr.msk.f32.gmra.mrb[34].mxu1 %vm1822_vm4, %v2342_v16  ;;  %v2296_v16 = vsel %vm2272_vm1, %v2271_v49, %v2248_v51  ;;  %v2288_v31 = vsel %vm2272_vm1, %v2255_v52, %v2256_v5  ;;  %v2261_v51 = vrot.slane %v8309_v21, 6  ;;  %v3216_v52 = vld [vmem:[%s9526_s1 + $0x140] sm:$0xff] }
 0x343   :  { %6117 = vmatprep.mubr.msk.f32.mxu1 %vm1822_vm4, %v2341_v62  ;;  %v2251_v62 = vrot.slane %v8204_v57, 6 }
 0x345   :  { %v2293_v61 = vsel %vm2272_vm1, %v2250_v19, %v2251_v62 }
 0x346   :  { %6118 = vmatmul.mubr.msk.f32.gmra.mrb[36].mxu1 %vm1822_vm4, %v2340_v15  ;;  %v2294_v15 = vsel %vm2272_vm1, %v2249_v40, %v2250_v19  ;;  %v2262_v40 = vrot.slane %v8316_v46, 6  ;;  %v2264_v19 = vrot.slane %v8332_v23, 6 }
 0x347   :  { %6120 = vmatprep.mubr.msk.f32.mxu1 %vm1822_vm4, %v2339_v33  ;;  %v2253_v33 = vrot.slane %v8224_v37, 6 }
 0x349   :  { %v2291_v56 = vsel %vm2272_vm1, %v2252_v34, %v2253_v33  ;;  %v2290_v25 = vsel %vm2272_vm1, %v2253_v33, %v2254_v10  ;;  %v2269_v33 = vrot.slane %v8373_v32, 6 }
 0x34a   :  { %6121 = vmatmul.mubr.msk.f32.gmra.mrb[38].mxu1 %vm1822_vm4, %v2338_v45  ;;  %v6495_v45 = vpack.c.bf16 %v2883_v12, %v2882_v1  ;;  %v2270_v12 = vrot.slane %v8378_v35, 6 }
 0x34b   :  { %6123 = vmatprep.mubr.msk.f32.mxu1 %vm1822_vm4, %v2337_v29  ;;  %v3213_v29 = vld [vmem:[%s9526_s1 + $0x128] sm:$0xff] }
 0x34c   :  { %v2274_v10 = vsel %vm2272_vm1, %v2269_v33, %v2270_v12 }
 0x34e   :  { %6124 = vmatmul.mubr.msk.f32.gmra.mrb[40].mxu1 %vm1822_vm4, %v2336_v4  ;;  %v6499_v4 = vpack.c.bf16 %v3214_v58, %v3213_v29  ;;  %v3217_v58 = vld [vmem:[%s9526_s1 + $0x148] sm:$0xff] }
 0x34f   :  { %6126 = vmatprep.mubr.msk.f32.mxu1 %vm1822_vm4, %v2335_v43  ;;  %v2257_v43 = vrot.slane %v8268_v55, 6 }
 0x351   :  { %v2287_v17 = vsel %vm2272_vm1, %v2256_v5, %v2257_v43  ;;  %v3219_v5 = vld [vmem:[%s9526_s1 + $0x158] sm:$0xff] }
 0x352   :  { %6127 = vmatmul.mubr.msk.f32.gmra.mrb[42].mxu1 %vm1822_vm4, %v2334_v36  ;;  %v2258_v36 = vrot.slane %v8281_v27, 6 }
 0x353   :  { %6129 = vmatprep.mubr.msk.f32.mxu1 %vm1822_vm4, %v2333_v28  ;;  %v2259_v28 = vrot.slane %v8292_v63, 6 }
 0x354   :  { %v2286_v42 = vsel %vm2272_vm1, %v2257_v43, %v2258_v36 }
 0x356   :  { %6130 = vmatmul.mubr.msk.f32.gmra.mrb[44].mxu1 %vm1822_vm4, %v2332_v60  ;;  %v2260_v60 = vrot.slane %v8299_v20, 6 }
 0x357   :  { %6132 = vmatprep.mubr.msk.f32.mxu1 %vm1822_vm4, %v2331_v13  ;;  %v2285_v13 = vsel %vm2272_vm1, %v2258_v36, %v2259_v28 }
 0x358   :  { %v2283_v14 = vsel %vm2272_vm1, %v2260_v60, %v2261_v51 }
 0x35a   :  { %6133 = vmatmul.mubr.msk.f32.gmra.mrb[46].mxu1 %vm1822_vm4, %v2330_v54  ;;  %v2284_v54 = vsel %vm2272_vm1, %v2259_v28, %v2260_v60  ;;  %v3166_v28 = vrot.slane %v8190_v0, 1  ;;  %v3552_v60 = vld [vmem:[%s9526_s1 + $0x178] sm:$0xff] }
 0x35b   :  { %6151 = vmatprep.mubr.msk.f32.mxu1 %vm1822_vm4, %v2296_v16  ;;  %v2282_v16 = vsel %vm2272_vm1, %v2261_v51, %v2262_v40 }
 0x35e   :  { %6152 = vmatmul.mubr.msk.f32.vlgmr.msra.gmra.mrb[24].mxu1 %vm1822_vm4, %v2295_v39  ;;  %v2265_v39 = vrot.slane %v8341_v30, 6 }
 0x35f   :  { %6154 = vmatprep.mubr.msk.f32.mxu1 %vm1822_vm4, %v2294_v15  ;;  %6486 = vmatpush3.bf16.msra.mxu1 %v8290_v3  ;;  %v2292_v3 = vsel %vm2272_vm1, %v2251_v62, %v2252_v34  ;;  %v2280_v62 = vsel %vm2272_vm1, %v2263_v26, %v2264_v19  ;;  %v2267_v15 = vrot.slane %v8357_v11, 6 }
 0x360   :  { %6488 = vmatprep.subr.bf16.mxu1 %v6487_v38  ;;  %v2279_v59 = vsel %vm2272_vm1, %v2264_v19, %v2265_v39  ;;  %v2278_v34 = vsel %vm2272_vm1, %v2265_v39, %v2266_v41  ;;  %v3555_v19 = vld [vmem:[%s9526_s1 + $0x190] sm:$0xff]  ;;  %v3170_v39 = vrot.slane %v8224_v37, 1 }
 0x362   :  { %6155 = vmatmul.mubr.msk.f32.gmra.mrb[26].mxu1 %vm1822_vm4, %v2293_v61  ;;  %v2277_v61 = vsel %vm2272_vm1, %v2266_v41, %v2267_v15 }
 0x363   :  { %6157 = vmatprep.mubr.msk.f32.mxu1 %vm1822_vm4, %v2292_v3  ;;  %6490 = vmatpush3.bf16.msra.mxu1 %v6487_v38  ;;  %v2281_v38 = vsel %vm2272_vm1, %v2262_v40, %v2263_v26  ;;  %v3169_v26 = vrot.slane %v8215_v8, 1 }
 0x364   :  { %6492 = vmatprep.subr.bf16.mxu1 %v6491_v48 }
 0x366   :  { %6158 = vmatmul.mubr.msk.f32.gmra.mrb[28].mxu1 %vm1822_vm4, %v2291_v56  ;;  %v3215_v56 = vld [vmem:[%s9526_s1 + $0x138] sm:$0xff] }
 0x367   :  { %6160 = vmatprep.mubr.msk.f32.mxu1 %vm1822_vm4, %v2290_v25  ;;  %6494 = vmatpush3.bf16.msra.mxu1 %v6491_v48  ;;  %v2268_v48 = vrot.slane %v8364_v47, 6  ;;  %v6503_v29 = vpack.c.bf16 %v3216_v52, %v3215_v56  ;;  %v3175_v56 = vrot.slane %v8281_v27, 1 }
 0x368   :  { %6496 = vmatprep.subr.bf16.mxu1 %v6495_v45 }
 0x369   :  { %v2276_v1 = vsel %vm2272_vm1, %v2267_v15, %v2268_v48  ;;  %v2275_v3 = vsel %vm2272_vm1, %v2268_v48, %v2269_v33  ;;  %v3556_v15 = vld [vmem:[%s9526_s1 + $0x198] sm:$0xff]  ;;  %v3207_v48 = vsel %vm224_vm2, %v3169_v26, %v3170_v39 }
 0x36a   :  { %6161 = vmatmul.mubr.msk.f32.gmra.mrb[30].mxu1 %vm1822_vm4, %v2289_v18  ;;  %v3220_v18 = vld [vmem:[%s9526_s1 + $0x160] sm:$0xff] }
 0x36b   :  { %6163 = vmatprep.mubr.msk.f32.mxu1 %vm1822_vm4, %v2288_v31  ;;  %6498 = vmatpush3.bf16.msra.mxu1 %v6495_v45  ;;  %v2273_v45 = vsel %vm2272_vm1, %v2270_v12, %v2271_v49  ;;  %v3218_v49 = vld [vmem:[%s9526_s1 + $0x150] sm:$0xff]  ;;  %v6511_v43 = vpack.c.bf16 %v3220_v18, %v3219_v5  ;;  %v3173_v12 = vrot.slane %v8259_v44, 1  ;;  %v3178_v5 = vrot.slane %v8309_v21, 1 }
 0x36c   :  { %6500 = vmatprep.subr.bf16.mxu1 %v6499_v4  ;;  %v6507_v25 = vpack.c.bf16 %v3218_v49, %v3217_v58  ;;  %v3551_v31 = vld [vmem:[%s9526_s1 + $0x170] sm:$0xff]  ;;  %v3177_v49 = vrot.slane %v8299_v20, 1 }
 0x36e   :  { %6164 = vmatmul.mubr.msk.f32.gmra.mrb[32].mxu1 %vm1822_vm4, %v2287_v17  ;;  %v3165_v17 = vrot.slane %v8192_v24, 1 }
 0x36f   :  { %6166 = vmatprep.mubr.msk.f32.mxu1 %vm1822_vm4, %v2286_v42  ;;  %v3167_v42 = vrot.slane %v8195_v6, 1 }
 0x370   :  { %v3211_v51 = vsel %vm224_vm2, %v3165_v17, %v3166_v28 }
 0x372   :  { %6167 = vmatmul.mubr.msk.f32.gmra.mrb[34].mxu1 %vm1822_vm4, %v2285_v13  ;;  %v3553_v13 = vld [vmem:[%s9526_s1 + $0x180] sm:$0xff] }
 0x373   :  { %6169 = vmatprep.mubr.msk.f32.mxu1 %vm1822_vm4, %v2284_v54  ;;  %v3168_v54 = vrot.slane %v8204_v57, 1  ;;  %v6519_v40 = vpack.c.bf16 %v3553_v13, %v3552_v60  ;;  %v3182_v60 = vrot.slane %v8341_v30, 1 }
 0x375   :  { %v3208_v41 = vsel %vm224_vm2, %v3168_v54, %v3169_v26  ;;  %v3185_v26 = vrot.slane %v8364_v47, 1 }
 0x376   :  { %6170 = vmatmul.mubr.msk.f32.gmra.mrb[36].mxu1 %vm1822_vm4, %v2283_v14  ;;  %v3210_v14 = vsel %vm224_vm2, %v3166_v28, %v3167_v42  ;;  %v3181_v28 = vrot.slane %v8332_v23, 1 }
 0x377   :  { %6172 = vmatprep.mubr.msk.f32.mxu1 %vm1822_vm4, %v2282_v16  ;;  %v3554_v16 = vld [vmem:[%s9526_s1 + $0x188] sm:$0xff] }
 0x37a   :  { %6173 = vmatmul.mubr.msk.f32.gmra.mrb[38].mxu1 %vm1822_vm4, %v2281_v38  ;;  %v3209_v38 = vsel %vm224_vm2, %v3167_v42, %v3168_v54  ;;  %v3195_v54 = vsel %vm224_vm2, %v3181_v28, %v3182_v60 }
 0x37b   :  { %6175 = vmatprep.mubr.msk.f32.mxu1 %vm1822_vm4, %v2280_v62  ;;  %v6523_v62 = vpack.c.bf16 %v3555_v19, %v3554_v16  ;;  %v3186_v19 = vrot.slane %v8373_v32, 1 }
 0x37e   :  { %6176 = vmatmul.mubr.msk.f32.gmra.mrb[40].mxu1 %vm1822_vm4, %v2279_v59  ;;  %v3171_v59 = vrot.slane %v8237_v50, 1 }
 0x37f   :  { %6178 = vmatprep.mubr.msk.f32.mxu1 %vm1822_vm4, %v2278_v34  ;;  %v3557_v34 = vld [vmem:[%s9526_s1 + $0x1a0] sm:$0xff] }
 0x380   :  { %v6527_v33 = vpack.c.bf16 %v3557_v34, %v3556_v15  ;;  %v3502_v34 = vrot.slane %v8192_v24, 2 }
 0x382   :  { %6179 = vmatmul.mubr.msk.f32.gmra.mrb[42].mxu1 %vm1822_vm4, %v2277_v61  ;;  %v3172_v61 = vrot.slane %v8246_v7, 1 }
 0x383   :  { %6181 = vmatprep.mubr.msk.f32.mxu1 %vm1822_vm4, %v2276_v1  ;;  %v3206_v1 = vsel %vm224_vm2, %v3170_v39, %v3171_v59  ;;  %v3187_v39 = vrot.slane %v8378_v35, 1 }
 0x386   :  { %6182 = vmatmul.mubr.msk.f32.gmra.mrb[44].mxu1 %vm1822_vm4, %v2275_v3  ;;  %v3205_v3 = vsel %vm224_vm2, %v3171_v59, %v3172_v61  ;;  %v3190_v59 = vsel %vm224_vm2, %v3186_v19, %v3187_v39 }
 0x387   :  { %6184 = vmatprep.mubr.msk.f32.mxu1 %vm1822_vm4, %v2274_v10  ;;  %v3174_v10 = vrot.slane %v8268_v55, 1 }
 0x389   :  { %v3203_v52 = vsel %vm224_vm2, %v3173_v12, %v3174_v10  ;;  %v3202_v58 = vsel %vm224_vm2, %v3174_v10, %v3175_v56 }
 0x38a   :  { %6185 = vmatmul.mubr.msk.f32.gmra.mrb[46].mxu1 %vm1822_vm4, %v2273_v45  ;;  %v3204_v45 = vsel %vm224_vm2, %v3172_v61, %v3173_v12  ;;  %v3505_v12 = vrot.slane %v8204_v57, 2 }
 0x38b   :  { %6203 = vmatprep.mubr.msk.f32.mxu1 %vm1822_vm4, %v8192_v24  ;;  %v8829_v24 = vld [vmem:[%s9527_s2 + $0x2] ss:$0 sm:$0xff] }
 0x38e   :  { %6204 = vmatmul.mubr.msk.f32.vlgmr.msra.gmra.mrb[24].mxu1 %vm1822_vm4, %v8190_v0 }
 0x38f   :  { %6206 = vmatprep.mubr.msk.f32.mxu1 %vm1822_vm4, %v8195_v6  ;;  %6502 = vmatpush3.bf16.msra.mxu1 %v6499_v4  ;;  %v3550_v4 = vld [vmem:[%s9526_s1 + $0x168] sm:$0xff] }
 0x390   :  { %6504 = vmatprep.subr.bf16.mxu1 %v6503_v29  ;;  %v6515_v36 = vpack.c.bf16 %v3551_v31, %v3550_v4  ;;  %v3199_v4 = vsel %vm224_vm2, %v3177_v49, %v3178_v5  ;;  %v3180_v31 = vrot.slane %v8325_v22, 1 }
 0x392   :  { %6207 = vmatmul.mubr.msk.f32.gmra.mrb[26].mxu1 %vm1822_vm4, %v8204_v57  ;;  %v3196_v13 = vsel %vm224_vm2, %v3180_v31, %v3181_v28  ;;  %v3508_v57 = vrot.slane %v8237_v50, 2 }
 0x393   :  { %6209 = vmatprep.mubr.msk.f32.mxu1 %vm1822_vm4, %v8215_v8  ;;  %6506 = vmatpush3.bf16.msra.mxu1 %v6503_v29  ;;  %v3176_v29 = vrot.slane %v8292_v63, 1 }
 0x394   :  { %6508 = vmatprep.subr.bf16.mxu1 %v6507_v25 }
 0x395   :  { %v3200_v18 = vsel %vm224_vm2, %v3176_v29, %v3177_v49 }
 0x396   :  { %6210 = vmatmul.mubr.msk.f32.gmra.mrb[28].mxu1 %vm1822_vm4, %v8224_v37 }
 0x397   :  { %6212 = vmatprep.mubr.msk.f32.mxu1 %vm1822_vm4, %v8237_v50  ;;  %6510 = vmatpush3.bf16.msra.mxu1 %v6507_v25  ;;  %v3201_v25 = vsel %vm224_vm2, %v3175_v56, %v3176_v29  ;;  %v3511_v50 = vrot.slane %v8268_v55, 2 }
 0x398   :  { %6512 = vmatprep.subr.bf16.mxu1 %v6511_v43 }
 0x39a   :  { %6213 = vmatmul.mubr.msk.f32.gmra.mrb[30].mxu1 %vm1822_vm4, %v8246_v7 }
 0x39b   :  { %6215 = vmatprep.mubr.msk.f32.mxu1 %vm1822_vm4, %v8259_v44  ;;  %6514 = vmatpush3.bf16.msra.mxu1 %v6511_v43  ;;  %v3179_v43 = vrot.slane %v8316_v46, 1 }
 0x39c   :  { %6516 = vmatprep.subr.bf16.mxu1 %v6515_v36 }
 0x39d   :  { %v3197_v42 = vsel %vm224_vm2, %v3179_v43, %v3180_v31 }
 0x39e   :  { %6216 = vmatmul.mubr.msk.f32.gmra.mrb[32].mxu1 %vm1822_vm4, %v8268_v55  ;;  %v3514_v55 = vrot.slane %v8299_v20, 2 }
 0x39f   :  { %6218 = vmatprep.mubr.msk.f32.mxu1 %vm1822_vm4, %v8281_v27 }
 0x3a2   :  { %6219 = vmatmul.mubr.msk.f32.gmra.mrb[34].mxu1 %vm1822_vm4, %v8292_v63 }
 0x3a3   :  { %6221 = vmatprep.mubr.msk.f32.mxu1 %vm1822_vm4, %v8299_v20  ;;  %v3517_v20 = vrot.slane %v8325_v22, 2 }
 0x3a6   :  { %6222 = vmatmul.mubr.msk.f32.gmra.mrb[36].mxu1 %vm1822_vm4, %v8309_v21 }
 0x3a7   :  { %6224 = vmatprep.mubr.msk.f32.mxu1 %vm1822_vm4, %v8316_v46 }
 0x3aa   :  { %6225 = vmatmul.mubr.msk.f32.gmra.mrb[38].mxu1 %vm1822_vm4, %v8325_v22  ;;  %v3520_v22 = vrot.slane %v8348_v9, 2 }
 0x3ab   :  { %6227 = vmatprep.mubr.msk.f32.mxu1 %vm1822_vm4, %v8332_v23 }
 0x3ae   :  { %6228 = vmatmul.mubr.msk.f32.gmra.mrb[40].mxu1 %vm1822_vm4, %v8341_v30 }
 0x3af   :  { %6230 = vmatprep.mubr.msk.f32.mxu1 %vm1822_vm4, %v8348_v9 }
 0x3b2   :  { %6231 = vmatmul.mubr.msk.f32.gmra.mrb[42].mxu1 %vm1822_vm4, %v8357_v11 }
 0x3b3   :  { %6233 = vmatprep.mubr.msk.f32.mxu1 %vm1822_vm4, %v8364_v47 }
 0x3b6   :  { %6234 = vmatmul.mubr.msk.f32.gmra.mrb[44].mxu1 %vm1822_vm4, %v8373_v32 }
 0x3b7   :  { %6236 = vmatprep.mubr.msk.f32.mxu1 %vm1822_vm4, %v8378_v35 }
 0x3ba   :  { %6237 = vmatmul.mubr.msk.f32.gmra.mrb[46].mxu1 %vm1822_vm4, %v8201_v2 }
 0x3bb   :  { %6255 = vmatprep.mubr.msk.f32.mxu1 %vm1822_vm4, %v3211_v51  ;;  %v3183_v51 = vrot.slane %v8348_v9, 1  ;;  %v3523_v9 = vrot.slane %v8373_v32, 2 }
 0x3be   :  { %6256 = vmatmul.mubr.msk.f32.vlgmr.msra.gmra.mrb[24].mxu1 %vm1822_vm4, %v3210_v14  ;;  %v3194_v14 = vsel %vm224_vm2, %v3182_v60, %v3183_v51 }
 0x3bf   :  { %6258 = vmatprep.mubr.msk.f32.mxu1 %vm1822_vm4, %v3209_v38  ;;  %6518 = vmatpush3.bf16.msra.mxu1 %v6515_v36  ;;  %v3198_v36 = vsel %vm224_vm2, %v3178_v5, %v3179_v43 }
 0x3c0   :  { %6520 = vmatprep.subr.bf16.mxu1 %v6519_v40 }
 0x3c2   :  { %6259 = vmatmul.mubr.msk.f32.gmra.mrb[26].mxu1 %vm1822_vm4, %v3208_v41  ;;  %v3188_v41 = vrot.slane %v8201_v2, 1 }
 0x3c3   :  { %6261 = vmatprep.mubr.msk.f32.mxu1 %vm1822_vm4, %v3207_v48  ;;  %6522 = vmatpush3.bf16.msra.mxu1 %v6519_v40  ;;  %v3184_v40 = vrot.slane %v8357_v11, 1  ;;  %v3503_v48 = vrot.slane %v8190_v0, 2 }
 0x3c4   :  { %6524 = vmatprep.subr.bf16.mxu1 %v6523_v62  ;;  %v3189_v15 = vsel %vm224_vm2, %v3187_v39, %v3188_v41  ;;  %v3212_v61 = vsel %vm224_vm2, %v3188_v41, %v3165_v17  ;;  %v3507_v17 = vrot.slane %v8224_v37, 2  ;;  %v3510_v37 = vrot.slane %v8259_v44, 2  ;;  %v8841_v39 = vld [vmem:[%s9527_s2 + $0x4] ss:$0 sm:$0xff] }
 0x3c5   :  { %v3193_v16 = vsel %vm224_vm2, %v3183_v51, %v3184_v40  ;;  %v3192_v38 = vsel %vm224_vm2, %v3184_v40, %v3185_v26  ;;  %v3513_v44 = vrot.slane %v8292_v63, 2  ;;  %v3516_v63 = vrot.slane %v8316_v46, 2 }
 0x3c6   :  { %6262 = vmatmul.mubr.msk.f32.gmra.mrb[28].mxu1 %vm1822_vm4, %v3206_v1  ;;  %v3548_v1 = vsel %vm789_vm3, %v3502_v34, %v3503_v48  ;;  %v3543_v56 = vsel %vm789_vm3, %v3507_v17, %v3508_v57  ;;  %v3519_v46 = vrot.slane %v8341_v30, 2  ;;  %v3522_v30 = vrot.slane %v8364_v47, 2 }
 0x3c7   :  { %6264 = vmatprep.mubr.msk.f32.mxu1 %vm1822_vm4, %v3205_v3  ;;  %6526 = vmatpush3.bf16.msra.mxu1 %v6523_v62  ;;  %v3191_v62 = vsel %vm224_vm2, %v3185_v26, %v3186_v19  ;;  %v3506_v3 = vrot.slane %v8215_v8, 2  ;;  %v3509_v8 = vrot.slane %v8246_v7, 2  ;;  %v3512_v7 = vrot.slane %v8281_v27, 2 }
 0x3c8   :  { %6528 = vmatprep.subr.bf16.mxu1 %v6527_v33  ;;  %v3515_v27 = vrot.slane %v8309_v21, 2  ;;  %v3537_v5 = vsel %vm789_vm3, %v3513_v44, %v3514_v55  ;;  %v3518_v21 = vrot.slane %v8332_v23, 2  ;;  %v3521_v23 = vrot.slane %v8357_v11, 2 }
 0x3c9   :  { %v3545_v10 = vsel %vm789_vm3, %v3505_v12, %v3506_v3  ;;  %v3541_v29 = vsel %vm789_vm3, %v3509_v8, %v3510_v37  ;;  %v3539_v49 = vsel %vm789_vm3, %v3511_v50, %v3512_v7  ;;  %v3531_v28 = vsel %vm789_vm3, %v3519_v46, %v3520_v22 }
 0x3ca   :  { %6265 = vmatmul.mubr.msk.f32.gmra.mrb[30].mxu1 %vm1822_vm4, %v3204_v45  ;;  %v3544_v45 = vsel %vm789_vm3, %v3506_v3, %v3507_v17  ;;  %v3535_v43 = vsel %vm789_vm3, %v3515_v27, %v3516_v63  ;;  %v3533_v31 = vsel %vm789_vm3, %v3517_v20, %v3518_v21  ;;  %v3529_v60 = vsel %vm789_vm3, %v3521_v23, %v3522_v30 }
 0x3cb   :  { %6267 = vmatprep.mubr.msk.f32.mxu1 %vm1822_vm4, %v3203_v52  ;;  %6530 = vmatpush3.bf16.msra.mxu1 %v6527_v33  ;;  %v3504_v33 = vrot.slane %v8195_v6, 2  ;;  %v3542_v52 = vsel %vm789_vm3, %v3508_v57, %v3509_v8  ;;  %v3524_v11 = vrot.slane %v8378_v35, 2  ;;  %v3525_v47 = vrot.slane %v8201_v2, 2 }
 0x3cc   :  { %v6899_v2 = vmov 0.0|0.0  }
 0x3cd   :  { %v3547_v0 = vsel %vm789_vm3, %v3503_v48, %v3504_v33  ;;  %v3546_v6 = vsel %vm789_vm3, %v3504_v33, %v3505_v12  ;;  %v3527_v51 = vsel %vm789_vm3, %v3523_v9, %v3524_v11  ;;  %v3526_v32 = vsel %vm789_vm3, %v3524_v11, %v3525_v47  ;;  %6531 = vmatprep.subr.bf16.mxu0 %v6899_v2 }
 0x3ce   :  { %6268 = vmatmul.mubr.msk.f32.gmra.mrb[32].mxu1 %vm1822_vm4, %v3202_v58  ;;  %v3540_v58 = vsel %vm789_vm3, %v3510_v37, %v3511_v50  ;;  %v3549_v35 = vsel %vm789_vm3, %v3525_v47, %v3502_v34  ;;  %6599 = vmatprep.subr.bf16.mxu1 %v6899_v2 }
 0x3cf   :  { %6270 = vmatprep.mubr.msk.f32.mxu1 %vm1822_vm4, %v3201_v25  ;;  %v3538_v25 = vsel %vm789_vm3, %v3512_v7, %v3513_v44 }
 0x3d2   :  { %6271 = vmatmul.mubr.msk.f32.gmra.mrb[34].mxu1 %vm1822_vm4, %v3200_v18  ;;  %v3536_v18 = vsel %vm789_vm3, %v3514_v55, %v3515_v27 }
 0x3d3   :  { %6273 = vmatprep.mubr.msk.f32.mxu1 %vm1822_vm4, %v3199_v4  ;;  %v3534_v4 = vsel %vm789_vm3, %v3516_v63, %v3517_v20 }
 0x3d6   :  { %6274 = vmatmul.mubr.msk.f32.gmra.mrb[36].mxu1 %vm1822_vm4, %v3198_v36  ;;  %v3532_v36 = vsel %vm789_vm3, %v3518_v21, %v3519_v46 }
 0x3d7   :  { %6276 = vmatprep.mubr.msk.f32.mxu1 %vm1822_vm4, %v3197_v42  ;;  %v3530_v42 = vsel %vm789_vm3, %v3520_v22, %v3521_v23 }
 0x3da   :  { %6277 = vmatmul.mubr.msk.f32.gmra.mrb[38].mxu1 %vm1822_vm4, %v3196_v13  ;;  %v3528_v13 = vsel %vm789_vm3, %v3522_v30, %v3523_v9 }
 0x3db   :  { %6279 = vmatprep.mubr.msk.f32.mxu1 %vm1822_vm4, %v3195_v54  ;;  %v4092_v54 = vld [vmem:[%s9529_s4 + $0x8] sm:$0xff] }
 0x3dc   :  { %5442 = vmatprep.mubr.msk.f32.mxu0 %vm1822_vm4, %v4092_v54 }
 0x3de   :  { %6280 = vmatmul.mubr.msk.f32.gmra.mrb[40].mxu1 %vm1822_vm4, %v3194_v14 }
 0x3df   :  { %6282 = vmatprep.mubr.msk.f32.mxu1 %vm1822_vm4, %v3193_v16  ;;  %v8835_v16 = vld [vmem:[%s9527_s2 + $0x3] ss:$0 sm:$0xff] }
 0x3e2   :  { %6283 = vmatmul.mubr.msk.f32.gmra.mrb[42].mxu1 %vm1822_vm4, %v3192_v38 }
 0x3e3   :  { %6285 = vmatprep.mubr.msk.f32.mxu1 %vm1822_vm4, %v3191_v62 }
 0x3e6   :  { %6286 = vmatmul.mubr.msk.f32.gmra.mrb[44].mxu1 %vm1822_vm4, %v3190_v59 }
 0x3e7   :  { %6288 = vmatprep.mubr.msk.f32.mxu1 %vm1822_vm4, %v3189_v15 }
 0x3ea   :  { %6289 = vmatmul.mubr.msk.f32.gmra.mrb[46].mxu1 %vm1822_vm4, %v3212_v61 }
 0x3eb   :  { %6307 = vmatprep.mubr.msk.f32.mxu1 %vm1822_vm4, %v3548_v1 }
 0x3ee   :  { %6308 = vmatmul.mubr.msk.f32.vlgmr.msra.gmra.mrb[24].mxu1 %vm1822_vm4, %v3547_v0 }
 0x3ef   :  { %6310 = vmatprep.mubr.msk.f32.mxu1 %vm1822_vm4, %v3546_v6 }
 0x3f2   :  { %6311 = vmatmul.mubr.msk.f32.gmra.mrb[26].mxu1 %vm1822_vm4, %v3545_v10 }
 0x3f3   :  { %6313 = vmatprep.mubr.msk.f32.mxu1 %vm1822_vm4, %v3544_v45 }
 0x3f6   :  { %6314 = vmatmul.mubr.msk.f32.gmra.mrb[28].mxu1 %vm1822_vm4, %v3543_v56 }
 0x3f7   :  { %6316 = vmatprep.mubr.msk.f32.mxu1 %vm1822_vm4, %v3542_v52 }
 0x3fa   :  { %6317 = vmatmul.mubr.msk.f32.gmra.mrb[30].mxu1 %vm1822_vm4, %v3541_v29 }
 0x3fb   :  { %6319 = vmatprep.mubr.msk.f32.mxu1 %vm1822_vm4, %v3540_v58 }
 0x3fe   :  { %6320 = vmatmul.mubr.msk.f32.gmra.mrb[32].mxu1 %vm1822_vm4, %v3539_v49 }
 0x3ff   :  { %6322 = vmatprep.mubr.msk.f32.mxu1 %vm1822_vm4, %v3538_v25 }
 0x402   :  { %6323 = vmatmul.mubr.msk.f32.gmra.mrb[34].mxu1 %vm1822_vm4, %v3537_v5 }
 0x403   :  { %6325 = vmatprep.mubr.msk.f32.mxu1 %vm1822_vm4, %v3536_v18 }
 0x406   :  { %6326 = vmatmul.mubr.msk.f32.gmra.mrb[36].mxu1 %vm1822_vm4, %v3535_v43 }
 0x407   :  { %6328 = vmatprep.mubr.msk.f32.mxu1 %vm1822_vm4, %v3534_v4 }
 0x40a   :  { %6329 = vmatmul.mubr.msk.f32.gmra.mrb[38].mxu1 %vm1822_vm4, %v3533_v31 }
 0x40b   :  { %6331 = vmatprep.mubr.msk.f32.mxu1 %vm1822_vm4, %v3532_v36 }
 0x40e   :  { %6332 = vmatmul.mubr.msk.f32.gmra.mrb[40].mxu1 %vm1822_vm4, %v3531_v28 }
 0x40f   :  { %6334 = vmatprep.mubr.msk.f32.mxu1 %vm1822_vm4, %v3530_v42 }
 0x412   :  { %6335 = vmatmul.mubr.msk.f32.gmra.mrb[42].mxu1 %vm1822_vm4, %v3529_v60 }
 0x413   :  { %6337 = vmatprep.mubr.msk.f32.mxu1 %vm1822_vm4, %v3528_v13 }
 0x416   :  { %6338 = vmatmul.mubr.msk.f32.gmra.mrb[44].mxu1 %vm1822_vm4, %v3527_v51 }
 0x417   :  { %6340 = vmatprep.mubr.msk.f32.mxu1 %vm1822_vm4, %v3526_v32 }
 0x41a   :  { %6341 = vmatmul.mubr.msk.f32.gmra.mrb[46].mxu1 %vm1822_vm4, %v3549_v35 }
 0x4c1   :  { %v6309_v40 = vpop.f32.mrb[24].mxu1 }
 0x4c2   :  { %v3844_v14 = vadd.f32 %v6309_v40, %v8829_v24  ;;  %v3696_v26 = vpop.f32.mrb[25].mxu1 }
 0x4c3   :  { %v3843_v19 = vadd.f32 %v8829_v24, %v3696_v26 }
 0x4c4   :  { %v3868_v38 = vmax.f32 %v3844_v14, 0.0 }
 0x4c5   :  { %v3867_v62 = vmax.f32 %v3843_v19, 0.0  ;;  %v6312_v41 = vpop.f32.mrb[26].mxu1 }
 0x4c6   :  { %v3896_v59 = vmul.f32 %v8835_v16, %v3868_v38  ;;  %v3846_v15 = vadd.f32 %v6312_v41, %v8829_v24  ;;  %v3706_v34 = vpop.f32.mrb[27].mxu1 }
 0x4c7   :  { %v3895_v48 = vmul.f32 %v8835_v16, %v3867_v62  ;;  %v3845_v61 = vadd.f32 %v8829_v24, %v3706_v34 }
 0x4c8   :  { %v8848_v33 = vadd.f32 %v8841_v39, %v3896_v59  ;;  %v3870_v1 = vmax.f32 %v3846_v15, 0.0 }
 0x4c9   :  { %v8851_v12 = vadd.f32 %v8841_v39, %v3895_v48  ;;  %v3869_v0 = vmax.f32 %v3845_v61, 0.0  ;;  %v6315_v3 = vpop.f32.mrb[28].mxu1 }
 0x4ca   :  { %v3948_v6 = vrot.slane %v8848_v33, 1  ;;  %v4020_v17 = vrot.slane %v8848_v33, 2  ;;  %v3898_v10 = vmul.f32 %v8835_v16, %v3870_v1  ;;  %v3848_v57 = vadd.f32 %v6315_v3, %v8829_v24  ;;  %v3716_v45 = vpop.f32.mrb[29].mxu1 }
 0x4cb   :  { %v3947_v8 = vrot.slane %v8851_v12, 1  ;;  %v4019_v56 = vrot.slane %v8851_v12, 2  ;;  %v3897_v37 = vmul.f32 %v8835_v16, %v3869_v0  ;;  %v3847_v52 = vadd.f32 %v8829_v24, %v3716_v45 }
 0x4cc   :  { %v8862_v50 = vadd.f32 %v8841_v39, %v3898_v10  ;;  %v3872_v29 = vmax.f32 %v3848_v57, 0.0 }
 0x4cd   :  { %v3993_v7 = vsel %vm224_vm2, %v3947_v8, %v3948_v6  ;;  %v8869_v58 = vadd.f32 %v8841_v39, %v3897_v37  ;;  %v3871_v44 = vmax.f32 %v3847_v52, 0.0  ;;  %v6318_v49 = vpop.f32.mrb[30].mxu1  ;;  %v4065_v55 = vsel %vm789_vm3, %v4019_v56, %v4020_v17 }
 0x4ce   :  { %v3995_v25 = vmax.f32 %v8851_v12, %v3993_v7  ;;  %v3950_v27 = vrot.slane %v8862_v50, 1  ;;  %v3900_v5 = vmul.f32 %v8835_v16, %v3872_v29  ;;  %v3726_v63 = vpop.f32.mrb[31].mxu1  ;;  %v4022_v18 = vrot.slane %v8862_v50, 2  ;;  %v4285_v12 = vld [vmem:[%s9526_s1 + $0x1f0] sm:$0xff] }
 0x4cf   :  { %v3949_v20 = vrot.slane %v8869_v58, 1  ;;  %v3899_v43 = vmul.f32 %v8835_v16, %v3871_v44  ;;  %v3850_v21 = vadd.f32 %v6318_v49, %v8829_v24  ;;  %v4021_v4 = vrot.slane %v8869_v58, 2 }
 0x4d0   :  { %v8884_v46 = vadd.f32 %v8841_v39, %v3900_v5  ;;  %v3849_v31 = vadd.f32 %v8829_v24, %v3726_v63  ;;  %v8887_v22 = vmax.f32 %v3995_v25, %v4065_v55 }
 0x4d1   :  { %v8891_v36 = vsel %vm224_vm2, %v3949_v20, %v3950_v27  ;;  %v8894_v23 = vadd.f32 %v8841_v39, %v3899_v43  ;;  %v3874_v28 = vmax.f32 %v3850_v21, 0.0  ;;  %v6321_v30 = vpop.f32.mrb[32].mxu1  ;;  %v3992_v42 = vsel %vm224_vm2, %v3948_v6, %v3949_v20 }
 0x4d2   :  { %v3997_v9 = vmax.f32 %v8869_v58, %v8891_v36  ;;  %v3952_v60 = vrot.slane %v8884_v46, 1  ;;  %v4024_v11 = vrot.slane %v8884_v46, 2  ;;  %v3873_v13 = vmax.f32 %v3849_v31, 0.0  ;;  %v3736_v47 = vpop.f32.mrb[33].mxu1 }
 0x4d3   :  { %v3951_v51 = vrot.slane %v8894_v23, 1  ;;  %v4023_v32 = vrot.slane %v8894_v23, 2  ;;  %v3902_v35 = vmul.f32 %v8835_v16, %v3874_v28  ;;  %v3852_v54 = vadd.f32 %v6321_v30, %v8829_v24 }
 0x4d4   :  { %v3901_v40 = vmul.f32 %v8835_v16, %v3873_v13  ;;  %v3851_v14 = vadd.f32 %v8829_v24, %v3736_v47  ;;  %v3996_v26 = vmax.f32 %v8848_v33, %v3992_v42  ;;  %v4064_v19 = vsel %vm789_vm3, %v4020_v17, %v4021_v4 }
 0x4d5   :  { %v8917_v38 = vsel %vm224_vm2, %v3951_v51, %v3952_v60  ;;  %v8920_v62 = vadd.f32 %v8841_v39, %v3902_v35  ;;  %v3876_v41 = vmax.f32 %v3852_v54, 0.0  ;;  %v6324_v59 = vpop.f32.mrb[34].mxu1  ;;  %v3990_v15 = vsel %vm224_vm2, %v3950_v27, %v3951_v51 }
 0x4d6   :  { %v3999_v34 = vmax.f32 %v8894_v23, %v8917_v38  ;;  %v8927_v48 = vadd.f32 %v8841_v39, %v3901_v40  ;;  %v3875_v61 = vmax.f32 %v3851_v14, 0.0  ;;  %v3854_v33 = vadd.f32 %v6324_v59, %v8829_v24  ;;  %v3746_v1 = vpop.f32.mrb[35].mxu1 }
 0x4d7   :  { %v3954_v0 = vrot.slane %v8920_v62, 1  ;;  %v4026_v3 = vrot.slane %v8920_v62, 2  ;;  %v3904_v6 = vmul.f32 %v8835_v16, %v3876_v41  ;;  %v3853_v17 = vadd.f32 %v8829_v24, %v3746_v1 }
 0x4d8   :  { %v3953_v10 = vrot.slane %v8927_v48, 1  ;;  %v4025_v57 = vrot.slane %v8927_v48, 2  ;;  %v3903_v45 = vmul.f32 %v8835_v16, %v3875_v61  ;;  %v3878_v37 = vmax.f32 %v3854_v33, 0.0 }
 0x4d9   :  { %v8938_v52 = vadd.f32 %v8841_v39, %v3904_v6  ;;  %v3877_v29 = vmax.f32 %v3853_v17, 0.0  ;;  %v4068_v7 = vmax.f32 %v3996_v26, %v4064_v19  ;;  %v6327_v44 = vpop.f32.mrb[36].mxu1  ;;  %v3998_v49 = vmax.f32 %v8862_v50, %v3990_v15 }
 0x4da   :  { %v8945_v55 = vsel %vm224_vm2, %v3953_v10, %v3954_v0  ;;  %v8948_v25 = vadd.f32 %v8841_v39, %v3903_v45  ;;  %v3906_v27 = vmul.f32 %v8835_v16, %v3878_v37  ;;  %v3856_v5 = vadd.f32 %v6327_v44, %v8829_v24  ;;  %v3756_v63 = vpop.f32.mrb[37].mxu1 }
 0x4db   :  { %v4001_v20 = vmax.f32 %v8927_v48, %v8945_v55  ;;  %v3956_v43 = vrot.slane %v8938_v52, 1  ;;  %v4028_v21 = vrot.slane %v8938_v52, 2  ;;  %v3905_v31 = vmul.f32 %v8835_v16, %v3877_v29 }
 0x4dc   :  { %v3955_v28 = vrot.slane %v8948_v25, 1  ;;  %v4027_v30 = vrot.slane %v8948_v25, 2  ;;  %v8960_v42 = vadd.f32 %v8841_v39, %v3906_v27  ;;  %v6532_v13 = vpack.c.bf16 %v4068_v7, %v8887_v22 }
 0x4dd   :  { %v8964_v47 = vadd.f32 %v8841_v39, %v3905_v31  ;;  %v3880_v51 = vmax.f32 %v3856_v5, 0.0  ;;  %v3855_v35 = vadd.f32 %v8829_v24, %v3756_v63  ;;  %v4062_v54 = vsel %vm789_vm3, %v4022_v18, %v4023_v32  ;;  %v6330_v40 = vpop.f32.mrb[38].mxu1 }
 0x4de   :  { %v8977_v14 = vsel %vm224_vm2, %v3955_v28, %v3956_v43  ;;  %v3958_v22 = vrot.slane %v8960_v42, 1  ;;  %v4030_v26 = vrot.slane %v8960_v42, 2  ;;  %6533 = vmatpush1.bf16.msra.mxu0 %v6532_v13  ;;  %v4063_v19 = vsel %vm789_vm3, %v4021_v4, %v4022_v18  ;;  %v3766_v41 = vpop.f32.mrb[39].mxu1 }
 0x4df   :  { %v4003_v59 = vmax.f32 %v8948_v25, %v8977_v14  ;;  %v3957_v15 = vrot.slane %v8964_v47, 1  ;;  %v4029_v61 = vrot.slane %v8964_v47, 2  ;;  %v3908_v33 = vmul.f32 %v8835_v16, %v3880_v51  ;;  %6534 = vmatprep.subr.bf16.mxu0 %v6899_v2 }
 0x4e0   :  { %v3879_v1 = vmax.f32 %v3855_v35, 0.0  ;;  %v4069_v50 = vmax.f32 %v3997_v9, %v4063_v19  ;;  %v4070_v6 = vmax.f32 %v3998_v49, %v4062_v54  ;;  %v3858_v18 = vadd.f32 %v6330_v40, %v8829_v24 }
 0x4e1   :  { %v9003_v4 = vsel %vm224_vm2, %v3957_v15, %v3958_v22  ;;  %v9006_v17 = vadd.f32 %v8841_v39, %v3908_v33  ;;  %v3857_v45 = vadd.f32 %v8829_v24, %v3766_v41  ;;  %v3988_v58 = vsel %vm224_vm2, %v3952_v60, %v3953_v10  ;;  %v6333_v36 = vpop.f32.mrb[40].mxu1 }
 0x4e2   :  { %v4005_v9 = vmax.f32 %v8964_v47, %v9003_v4  ;;  %v3907_v37 = vmul.f32 %v8835_v16, %v3879_v1  ;;  %v6535_v29 = vpack.c.bf16 %v4070_v6, %v4069_v50  ;;  %v3882_v7 = vmax.f32 %v3858_v18, 0.0  ;;  %v3776_v44 = vpop.f32.mrb[41].mxu1 }
 0x4e3   :  { %v3960_v49 = vrot.slane %v9006_v17, 1  ;;  %v4032_v27 = vrot.slane %v9006_v17, 2  ;;  %v3881_v5 = vmax.f32 %v3857_v45, 0.0  ;;  %v4000_v63 = vmax.f32 %v8884_v46, %v3988_v58 }
 0x4e4   :  { %v9020_v31 = vadd.f32 %v8841_v39, %v3907_v37  ;;  %6536 = vmatpush1.bf16.msra.mxu0 %v6535_v29  ;;  %v3910_v60 = vmul.f32 %v8835_v16, %v3882_v7  ;;  %v4060_v10 = vsel %vm789_vm3, %v4024_v11, %v4025_v57  ;;  %v4061_v13 = vsel %vm789_vm3, %v4023_v32, %v4024_v11 }
 0x4e5   :  { %v3909_v51 = vmul.f32 %v8835_v16, %v3881_v5  ;;  %6537 = vmatprep.subr.bf16.mxu0 %v6899_v2  ;;  %v4071_v35 = vmax.f32 %v3999_v34, %v4061_v13  ;;  %v4072_v54 = vmax.f32 %v4000_v63, %v4060_v10  ;;  %v3860_v40 = vadd.f32 %v6333_v36, %v8829_v24  ;;  %v6336_v19 = vpop.f32.mrb[42].mxu1 }
 0x4e6   :  { %v3959_v41 = vrot.slane %v9020_v31, 1  ;;  %v4031_v46 = vrot.slane %v9020_v31, 2  ;;  %v9044_v33 = vadd.f32 %v8841_v39, %v3910_v60  ;;  %v3859_v11 = vadd.f32 %v8829_v24, %v3776_v44  ;;  %v3786_v32 = vpop.f32.mrb[43].mxu1 }
 0x4e7   :  { %v9048_v1 = vadd.f32 %v8841_v39, %v3909_v51  ;;  %v6538_v50 = vpack.c.bf16 %v4072_v54, %v4071_v35  ;;  %v3884_v23 = vmax.f32 %v3860_v40, 0.0  ;;  %v3986_v38 = vsel %vm224_vm2, %v3954_v0, %v3955_v28 }
 0x4e8   :  { %v9058_v34 = vsel %vm224_vm2, %v3959_v41, %v3960_v49  ;;  %v3962_v6 = vrot.slane %v9044_v33, 1  ;;  %v4034_v18 = vrot.slane %v9044_v33, 2  ;;  %v3883_v45 = vmax.f32 %v3859_v11, 0.0 }
 0x4e9   :  { %v4007_v58 = vmax.f32 %v9020_v31, %v9058_v34  ;;  %v3961_v36 = vrot.slane %v9048_v1, 1  ;;  %v4033_v37 = vrot.slane %v9048_v1, 2  ;;  %6539 = vmatpush1.bf16.msra.mxu0 %v6538_v50  ;;  %v3912_v0 = vmul.f32 %v8835_v16, %v3884_v23  ;;  %v6339_v28 = vpop.f32.mrb[44].mxu1 }
 0x4ea   :  { %v3911_v29 = vmul.f32 %v8835_v16, %v3883_v45  ;;  %6540 = vmatprep.subr.bf16.mxu0 %v6899_v2  ;;  %v4002_v7 = vmax.f32 %v8920_v62, %v3986_v38  ;;  %v4058_v44 = vsel %vm789_vm3, %v4026_v3, %v4027_v30  ;;  %v4059_v5 = vsel %vm789_vm3, %v4025_v57, %v4026_v3  ;;  %v3796_v63 = vpop.f32.mrb[45].mxu1 }
 0x4eb   :  { %v9088_v60 = vsel %vm224_vm2, %v3961_v36, %v3962_v6  ;;  %v9091_v10 = vadd.f32 %v8841_v39, %v3912_v0  ;;  %v4073_v62 = vmax.f32 %v4001_v20, %v4059_v5  ;;  %v3862_v13 = vadd.f32 %v6336_v19, %v8829_v24 }
 0x4ec   :  { %v4009_v3 = vmax.f32 %v9048_v1, %v9088_v60  ;;  %v9100_v57 = vadd.f32 %v8841_v39, %v3911_v29  ;;  %v4074_v51 = vmax.f32 %v4002_v7, %v4058_v44  ;;  %v3861_v35 = vadd.f32 %v8829_v24, %v3786_v32 }
 0x4ed   :  { %v3964_v54 = vrot.slane %v9091_v10, 1  ;;  %v4036_v40 = vrot.slane %v9091_v10, 2  ;;  %v3886_v11 = vmax.f32 %v3862_v13, 0.0  ;;  %v3984_v48 = vsel %vm224_vm2, %v3956_v43, %v3957_v15  ;;  %v6342_v55 = vpop.f32.mrb[46].mxu1 }
 0x4ee   :  { %v3963_v20 = vrot.slane %v9100_v57, 1  ;;  %v4035_v19 = vrot.slane %v9100_v57, 2  ;;  %v6541_v50 = vpack.c.bf16 %v4074_v51, %v4073_v62  ;;  %v3885_v23 = vmax.f32 %v3861_v35, 0.0  ;;  %v3806_v32 = vpop.f32.mrb[47].mxu1 }
 0x4ef   :  { %v3914_v38 = vmul.f32 %v8835_v16, %v3886_v11  ;;  %v4004_v45 = vmax.f32 %v8938_v52, %v3984_v48  ;;  %v4056_v0 = vsel %vm789_vm3, %v4028_v21, %v4029_v61  ;;  %v4057_v43 = vsel %vm789_vm3, %v4027_v30, %v4028_v21 }
 0x4f0   :  { %v9131_v15 = vsel %vm224_vm2, %v3963_v20, %v3964_v54  ;;  %6542 = vmatpush1.bf16.msra.mxu0 %v6541_v50  ;;  %v3913_v29 = vmul.f32 %v8835_v16, %v3885_v23  ;;  %v4075_v7 = vmax.f32 %v4003_v59, %v4057_v43  ;;  %v3864_v52 = vadd.f32 %v6339_v28, %v8829_v24 }
 0x4f1   :  { %v4011_v44 = vmax.f32 %v9100_v57, %v9131_v15  ;;  %v9141_v21 = vadd.f32 %v8841_v39, %v3914_v38  ;;  %6543 = vmatprep.subr.bf16.mxu0 %v6899_v2  ;;  %v4076_v30 = vmax.f32 %v4004_v45, %v4056_v0  ;;  %v3863_v5 = vadd.f32 %v8829_v24, %v3796_v63 }
 0x4f2   :  { %v9146_v62 = vadd.f32 %v8841_v39, %v3913_v29  ;;  %v3888_v13 = vmax.f32 %v3864_v52, 0.0  ;;  %v3982_v25 = vsel %vm224_vm2, %v3958_v22, %v3959_v41  ;;  %v4054_v14 = vsel %vm789_vm3, %v4030_v26, %v4031_v46 }
 0x4f3   :  { %v3966_v59 = vrot.slane %v9141_v21, 1  ;;  %v4038_v28 = vrot.slane %v9141_v21, 2  ;;  %v6544_v63 = vpack.c.bf16 %v4076_v30, %v4075_v7  ;;  %v3887_v51 = vmax.f32 %v3863_v5, 0.0 }
 0x4f4   :  { %v3965_v35 = vrot.slane %v9146_v62, 1  ;;  %v4037_v11 = vrot.slane %v9146_v62, 2  ;;  %v3916_v48 = vmul.f32 %v8835_v16, %v3888_v13  ;;  %v4006_v22 = vmax.f32 %v8960_v42, %v3982_v25 }
 0x4f5   :  { %6545 = vmatpush1.bf16.msra.mxu0 %v6544_v63  ;;  %v3915_v41 = vmul.f32 %v8835_v16, %v3887_v51  ;;  %v4055_v50 = vsel %vm789_vm3, %v4029_v61, %v4030_v26  ;;  %v3866_v23 = vadd.f32 %v6342_v55, %v8829_v24  ;;  %v3865_v38 = vadd.f32 %v8829_v24, %v3806_v32 }
 0x4f6   :  { %v3975_v45 = vsel %vm224_vm2, %v3965_v35, %v3966_v59  ;;  %v9178_v0 = vadd.f32 %v8841_v39, %v3916_v48  ;;  %6546 = vmatprep.subr.bf16.mxu0 %v6899_v2  ;;  %v4077_v42 = vmax.f32 %v4005_v9, %v4055_v50  ;;  %v4078_v43 = vmax.f32 %v4006_v22, %v4054_v14 }
 0x4f7   :  { %v4013_v26 = vmax.f32 %v9146_v62, %v3975_v45  ;;  %v3943_v61 = vadd.f32 %v8841_v39, %v3915_v41  ;;  %v3890_v24 = vmax.f32 %v3866_v23, 0.0  ;;  %v3889_v55 = vmax.f32 %v3865_v38, 0.0 }
 0x4f8   :  { %v3968_v32 = vrot.slane %v9178_v0, 1  ;;  %v4040_v29 = vrot.slane %v9178_v0, 2  ;;  %v6547_v7 = vpack.c.bf16 %v4078_v43, %v4077_v42  ;;  %v3980_v47 = vsel %vm224_vm2, %v3960_v49, %v3961_v36 }
 0x4f9   :  { %v3967_v4 = vrot.slane %v3943_v61, 1  ;;  %v4039_v9 = vrot.slane %v3943_v61, 2  ;;  %v3918_v52 = vmul.f32 %v8835_v16, %v3890_v24  ;;  %v3917_v30 = vmul.f32 %v8835_v16, %v3889_v55  ;;  %v4286_v55 = vld [vmem:[%s9526_s1 + $0x1f8] sm:$0xff] }
 0x4fa   :  { %6548 = vmatpush1.bf16.msra.mxu0 %v6547_v7  ;;  %v4008_v5 = vmax.f32 %v9006_v17, %v3980_v47  ;;  %v4052_v13 = vsel %vm789_vm3, %v4032_v27, %v4033_v37  ;;  %v4053_v49 = vsel %vm789_vm3, %v4031_v46, %v4032_v27  ;;  %v3978_v16 = vsel %vm224_vm2, %v3962_v6, %v3963_v20  ;;  %v4094_v7 = vld [vmem:[%s9529_s4 + $0x18] sm:$0xff] }
 0x4fb   :  { %v3973_v36 = vsel %vm224_vm2, %v3967_v4, %v3968_v32  ;;  %v3946_v25 = vadd.f32 %v8841_v39, %v3918_v52  ;;  %v3945_v14 = vadd.f32 %v8841_v39, %v3917_v30  ;;  %6549 = vmatprep.subr.bf16.mxu0 %v6899_v2  ;;  %v4079_v17 = vmax.f32 %v4007_v58, %v4053_v49  ;;  %v4095_v52 = vld [vmem:[%s9529_s4 + $0x20] sm:$0xff]  ;;  %v4098_v30 = vld [vmem:[%s9529_s4 + $0x38] sm:$0xff] }
 0x4fc   :  { %v4015_v63 = vmax.f32 %v3943_v61, %v3973_v36  ;;  %v4080_v27 = vmax.f32 %v4008_v5, %v4052_v13  ;;  %v4010_v46 = vmax.f32 %v9044_v33, %v3978_v16  ;;  %v4050_v6 = vsel %vm789_vm3, %v4034_v18, %v4035_v19  ;;  %v4097_v5 = vld [vmem:[%s9529_s4 + $0x30] sm:$0xff]  ;;  %v4100_v13 = vld [vmem:[%s9529_s4 + $0x48] sm:$0xff]  ;;  %v4099_v49 = vld [vmem:[%s9529_s4 + $0x40] sm:$0xff] }
 0x4fd   :  { %v3970_v20 = vrot.slane %v3946_v25, 1  ;;  %v4042_v51 = vrot.slane %v3946_v25, 2  ;;  %v3969_v39 = vrot.slane %v3945_v14, 1  ;;  %v4041_v48 = vrot.slane %v3945_v14, 2  ;;  %v4102_v16 = vld [vmem:[%s9529_s4 + $0x58] sm:$0xff]  ;;  %v4101_v36 = vld [vmem:[%s9529_s4 + $0x50] sm:$0xff] }
 0x4fe   :  { %v6550_v22 = vpack.c.bf16 %v4080_v27, %v4079_v17  ;;  %v4051_v31 = vsel %vm789_vm3, %v4033_v37, %v4034_v18  ;;  %v4082_v34 = vmax.f32 %v4010_v46, %v4050_v6  ;;  %v3976_v58 = vsel %vm224_vm2, %v3964_v54, %v3965_v35  ;;  %v4106_v17 = vld [vmem:[%s9529_s4 + $0x78] sm:$0xff]  ;;  %v4108_v27 = vld [vmem:[%s9529_s4 + $0x88] sm:$0xff]  ;;  %v4107_v46 = vld [vmem:[%s9529_s4 + $0x80] sm:$0xff] }
 0x4ff   :  { %v3994_v41 = vsel %vm224_vm2, %v3970_v20, %v3947_v8  ;;  %v3971_v50 = vsel %vm224_vm2, %v3969_v39, %v3970_v20  ;;  %v4081_v33 = vmax.f32 %v4009_v3, %v4051_v31  ;;  %v4012_v18 = vmax.f32 %v9091_v10, %v3976_v58  ;;  %v4110_v6 = vld [vmem:[%s9529_s4 + $0x98] sm:$0xff]  ;;  %v4109_v20 = vld [vmem:[%s9529_s4 + $0x90] sm:$0xff]  ;;  %v4528_v31 = vld [vmem:[%s9526_s1 + $0x228] sm:$0xff] }
 0x500   :  { %v4018_v37 = vmax.f32 %v3946_v25, %v3994_v41  ;;  %v4017_v23 = vmax.f32 %v3945_v14, %v3971_v50  ;;  %6551 = vmatpush1.bf16.msra.mxu0 %v6550_v22  ;;  %v4048_v54 = vsel %vm789_vm3, %v4036_v40, %v4037_v11  ;;  %v4049_v8 = vsel %vm789_vm3, %v4035_v19, %v4036_v40  ;;  %v4104_v25 = vld [vmem:[%s9529_s4 + $0x68] sm:$0xff]  ;;  %v4103_v14 = vld [vmem:[%s9529_s4 + $0x60] sm:$0xff]  ;;  %v4113_v22 = vld [vmem:[%s9529_s4 + $0xb0] sm:$0xff] }
 0x501   :  { %6552 = vmatprep.subr.bf16.mxu0 %v6899_v2  ;;  %v6553_v1 = vpack.c.bf16 %v4082_v34, %v4081_v33  ;;  %v4083_v60 = vmax.f32 %v4011_v44, %v4049_v8  ;;  %v4084_v3 = vmax.f32 %v4012_v18, %v4048_v54  ;;  %v3974_v35 = vsel %vm224_vm2, %v3966_v59, %v3967_v4  ;;  %v4093_v4 = vld [vmem:[%s9529_s4 + $0x10] sm:$0xff]  ;;  %v4288_v41 = vld [vmem:[%s9526_s1 + $0x208] sm:$0xff]  ;;  %v4290_v18 = vld [vmem:[%s9526_s1 + $0x218] sm:$0xff] }
 0x502   :  { %v4014_v10 = vmax.f32 %v9141_v21, %v3974_v35  ;;  %v4046_v40 = vsel %vm789_vm3, %v4038_v28, %v4039_v9  ;;  %v4047_v57 = vsel %vm789_vm3, %v4037_v11, %v4038_v28  ;;  %v3972_v19 = vsel %vm224_vm2, %v3968_v32, %v3969_v39  ;;  %v4287_v32 = vld [vmem:[%s9526_s1 + $0x200] sm:$0xff]  ;;  %v4529_v34 = vld [vmem:[%s9526_s1 + $0x230] sm:$0xff]  ;;  %v4276_v54 = vld [vmem:[%s9526_s1 + $0x1a8] sm:$0xff] }
 0x503   :  { %v6556_v15 = vpack.c.bf16 %v4084_v3, %v4083_v60  ;;  %v4085_v44 = vmax.f32 %v4013_v26, %v4047_v57  ;;  %v4016_v59 = vmax.f32 %v9178_v0, %v3972_v19  ;;  %v4044_v38 = vsel %vm789_vm3, %v4040_v29, %v4041_v48  ;;  %v4111_v39 = vld [vmem:[%s9529_s4 + $0xa0] sm:$0xff]  ;;  %v4289_v50 = vld [vmem:[%s9526_s1 + $0x210] sm:$0xff] }
 0x504   :  { %6554 = vmatpush1.bf16.msra.mxu0 %v6553_v1  ;;  %v4086_v45 = vmax.f32 %v4014_v10, %v4046_v40  ;;  %v4045_v21 = vsel %vm789_vm3, %v4039_v9, %v4040_v29  ;;  %v4043_v62 = vsel %vm789_vm3, %v4041_v48, %v4042_v51  ;;  %v4066_v28 = vsel %vm789_vm3, %v4042_v51, %v4019_v56  ;;  %v4091_v29 = vld [vmem:[%s9529_s4] sm:$0xff]  ;;  %v4096_v9 = vld [vmem:[%s9529_s4 + $0x28] sm:$0xff]  ;;  %v4114_v48 = vld [vmem:[%s9529_s4 + $0xb8] sm:$0xff] }
 0x505   :  { %6555 = vmatprep.subr.bf16.mxu0 %v6899_v2  ;;  %v4087_v11 = vmax.f32 %v4015_v63, %v4045_v21  ;;  %v4088_v0 = vmax.f32 %v4016_v59, %v4044_v38  ;;  %v4089_v42 = vmax.f32 %v4017_v23, %v4043_v62  ;;  %v4090_v43 = vmax.f32 %v4018_v37, %v4066_v28  ;;  %v4105_v63 = vld [vmem:[%s9529_s4 + $0x70] sm:$0xff]  ;;  %v4112_v51 = vld [vmem:[%s9529_s4 + $0xa8] sm:$0xff]  ;;  %v4291_v37 = vld [vmem:[%s9526_s1 + $0x220] sm:$0xff] }
 0x506   :  { %v6559_v26 = vpack.c.bf16 %v4086_v45, %v4085_v44  ;;  %v6567_v56 = vpack.c.bf16 %v4285_v12, %v4284_v53  ;;  %v6571_v47 = vpack.c.bf16 %v4287_v32, %v4286_v55  ;;  %v9394_v58 = vpack.c.bf16 %v4529_v34, %v4528_v31  ;;  %v4277_v8 = vld [vmem:[%s9526_s1 + $0x1b0] sm:$0xff]  ;;  %v4278_v28 = vld [vmem:[%s9526_s1 + $0x1b8] sm:$0xff]  ;;  %v4283_v55 = vld [vmem:[%s9526_s1 + $0x1e0] sm:$0xff] }
 0x507   :  { %v6562_v61 = vpack.c.bf16 %v4088_v0, %v4087_v11  ;;  %v6565_v24 = vpack.c.bf16 %v4090_v43, %v4089_v42  ;;  %v6575_v33 = vpack.c.bf16 %v4289_v50, %v4288_v41  ;;  %v6579_v23 = vpack.c.bf16 %v4291_v37, %v4290_v18  ;;  %v4279_v11 = vld [vmem:[%s9526_s1 + $0x1c0] sm:$0xff] }
 0x508   :  { %6557 = vmatpush1.bf16.msra.mxu0 %v6556_v15  ;;  %6601 = vmatpush3.bf16.msra.mxu1 %v9394_v58  ;;  %v6583_v1 = vpack.c.bf16 %v4277_v8, %v4276_v54  ;;  %vm6900_vm2 = vmmov 0   ;;  %v9699_v60 = vmov 0.0   ;;  %v6587_v42 = vpack.c.bf16 %v4279_v11, %v4278_v28 }
 0x509   :  { %6558 = vmatprep.subr.bf16.mxu0 %v6899_v2  ;;  %6602 = vmatprep.subr.bf16.mxu1 %v6899_v2  ;;  %vm4530_vm3 = vcmask 130048  }
 0x50a   :  { %6397 = vmatprep.mubr.msk.f32.mxu1 %vm6900_vm2, %v9699_v60 }
 0x50b   :  { %6398 = vmatmul.mubr.f32.vlgmr.msra.gmra.mrb[48].mxu1 %v9699_v60 }
 0x50c   :  { %6560 = vmatpush1.bf16.msra.mxu0 %v6559_v26  ;;  %6604 = vmatpush3.bf16.msra.mxu1 %v9394_v58  ;;  %v4280_v26 = vld [vmem:[%s9526_s1 + $0x1c8] sm:$0xff] }
 0x50d   :  { %6561 = vmatprep.subr.bf16.mxu0 %v6899_v2  ;;  %6404 = vmatprep.mubr.msk.f32.mxu1 %vm6900_vm2, %v9699_v60 }
 0x50e   :  { %6605 = vmatprep.subr.bf16.mxu1 %v6899_v2 }
 0x510   :  { %6563 = vmatpush1.bf16.msra.mxu0 %v6562_v61  ;;  %v4281_v61 = vld [vmem:[%s9526_s1 + $0x1d0] sm:$0xff] }
 0x511   :  { %6564 = vmatprep.subr.bf16.mxu0 %v6899_v2  ;;  %v6591_v53 = vpack.c.bf16 %v4281_v61, %v4280_v26 }
 0x514   :  { %6566 = vmatpush1.bf16.msra.mxu0 %v6565_v24 }
 0x515   :  { %6568 = vmatprep.subr.bf16.mxu0 %v6567_v56 }
 0x517   :  { %4216 = vmatmul.mubr.f32.vlgmr.msra.gmra.mrb[24].mxu0 %v4091_v29 }
 0x518   :  { %5443 = vmatprep.mubr.msk.f32.mxu0 %vm1822_vm4, %v4094_v7  ;;  %6570 = vmatpush3.bf16.msra.mxu0 %v6567_v56  ;;  %v4282_v56 = vld [vmem:[%s9526_s1 + $0x1d8] sm:$0xff] }
 0x519   :  { %6572 = vmatprep.subr.bf16.mxu0 %v6571_v47  ;;  %v6595_v29 = vpack.c.bf16 %v4283_v55, %v4282_v56 }
 0x51b   :  { %4221 = vmatmul.mubr.f32.gmra.mrb[26].mxu0 %v4093_v4 }
 0x51c   :  { %5444 = vmatprep.mubr.msk.f32.mxu0 %vm1822_vm4, %v4096_v9  ;;  %6574 = vmatpush3.bf16.msra.mxu0 %v6571_v47 }
 0x51d   :  { %6576 = vmatprep.subr.bf16.mxu0 %v6575_v33 }
 0x51f   :  { %4226 = vmatmul.mubr.f32.gmra.mrb[28].mxu0 %v4095_v52 }
 0x520   :  { %5445 = vmatprep.mubr.msk.f32.mxu0 %vm1822_vm4, %v4098_v30  ;;  %6578 = vmatpush3.bf16.msra.mxu0 %v6575_v33 }
 0x521   :  { %6580 = vmatprep.subr.bf16.mxu0 %v6579_v23 }
 0x523   :  { %4231 = vmatmul.mubr.f32.gmra.mrb[30].mxu0 %v4097_v5 }
 0x524   :  { %5446 = vmatprep.mubr.msk.f32.mxu0 %vm1822_vm4, %v4100_v13  ;;  %6582 = vmatpush3.bf16.msra.mxu0 %v6579_v23 }
 0x525   :  { %6584 = vmatprep.subr.bf16.mxu0 %v6583_v1 }
 0x527   :  { %4236 = vmatmul.mubr.f32.gmra.mrb[32].mxu0 %v4099_v49  ;;  %v5466_v49 = vld [vmem:[%s9527_s2 + $0x5] ss:$0 sm:$0xff]  ;;  %s6901_s2 = smov 80  }
 0x528   :  { %5447 = vmatprep.mubr.msk.f32.mxu0 %vm1822_vm4, %v4102_v16 }
 0x52b   :  { %4241 = vmatmul.mubr.f32.gmra.mrb[34].mxu0 %v4101_v36 }
 0x52c   :  { %5448 = vmatprep.mubr.msk.f32.mxu0 %vm1822_vm4, %v4104_v25 }
 0x52f   :  { %4246 = vmatmul.mubr.f32.gmra.mrb[36].mxu0 %v4103_v14 }
 0x530   :  { %5449 = vmatprep.mubr.msk.f32.mxu0 %vm1822_vm4, %v4106_v17 }
 0x533   :  { %4251 = vmatmul.mubr.f32.gmra.mrb[38].mxu0 %v4105_v63 }
 0x534   :  { %5450 = vmatprep.mubr.msk.f32.mxu0 %vm1822_vm4, %v4108_v27 }
 0x537   :  { %4256 = vmatmul.mubr.f32.gmra.mrb[40].mxu0 %v4107_v46 }
 0x538   :  { %5451 = vmatprep.mubr.msk.f32.mxu0 %vm1822_vm4, %v4110_v6 }
 0x53b   :  { %4261 = vmatmul.mubr.f32.gmra.mrb[42].mxu0 %v4109_v20 }
 0x53c   :  { %5452 = vmatprep.mubr.msk.f32.mxu0 %vm1822_vm4, %v4112_v51 }
 0x53f   :  { %4266 = vmatmul.mubr.f32.gmra.mrb[44].mxu0 %v4111_v39 }
 0x540   :  { %5453 = vmatprep.mubr.msk.f32.mxu0 %vm1822_vm4, %v4114_v48 }
 0x543   :  { %4271 = vmatmul.mubr.f32.gmra.mrb[46].mxu0 %v4113_v22 }
 0x5de   :  { %v4600_v5 = vpop.f32.mrb[48].mxu1 }
 0x5df   :  { %v6399_v13 = vpop.f32.mrb[49].mxu1 }
 0x5ea   :  { %v4217_v3 = vpop.f32.mrb[24].mxu0 }
 0x5eb   :  { %v4219_v35 = vpop.f32.mrb[25].mxu0 }
 0x5ee   :  { %v4222_v10 = vpop.f32.mrb[26].mxu0 }
 0x5ef   :  { %v4224_v40 = vpop.f32.mrb[27].mxu0 }
 0x5f2   :  { %v4227_v57 = vpop.f32.mrb[28].mxu0 }
 0x5f3   :  { %v4229_v19 = vpop.f32.mrb[29].mxu0 }
 0x5f6   :  { %v4232_v15 = vpop.f32.mrb[30].mxu0 }
 0x5f7   :  { %v4234_v44 = vpop.f32.mrb[31].mxu0 }
 0x5fa   :  { %v4237_v59 = vpop.f32.mrb[32].mxu0 }
 0x5fb   :  { %v4239_v38 = vpop.f32.mrb[33].mxu0 }
 0x5fe   :  { %v4242_v45 = vpop.f32.mrb[34].mxu0 }
 0x5ff   :  { %v4244_v21 = vpop.f32.mrb[35].mxu0 }
 0x602   :  { %v4247_v62 = vpop.f32.mrb[36].mxu0 }
 0x603   :  { %v4249_v0 = vpop.f32.mrb[37].mxu0  ;;  %6359 = vmatprep.mubr.msk.f32.mxu0 %vm1822_vm4, %v4247_v62 }
 0x606   :  { %v4252_v43 = vpop.f32.mrb[38].mxu0 }
 0x607   :  { %v4254_v24 = vpop.f32.mrb[39].mxu0  ;;  %6360 = vmatmul.mubr.msk.f32.vlgmr.msra.gmra.mrb[48].mxu0 %vm1822_vm4, %v4252_v43 }
 0x608   :  { %6586 = vmatpush3.bf16.msra.mxu0 %v6583_v1 }
 0x609   :  { %6588 = vmatprep.subr.bf16.mxu0 %v6587_v42 }
 0x60a   :  { %v4257_v12 = vpop.f32.mrb[40].mxu0 }
 0x60b   :  { %v4259_v32 = vpop.f32.mrb[41].mxu0  ;;  %6362 = vmatprep.mubr.msk.f32.mxu0 %vm1822_vm4, %v4257_v12 }
 0x60c   :  { %6590 = vmatpush3.bf16.msra.mxu0 %v6587_v42 }
 0x60d   :  { %6592 = vmatprep.subr.bf16.mxu0 %v6591_v53 }
 0x60e   :  { %v4262_v7 = vpop.f32.mrb[42].mxu0 }
 0x60f   :  { %v4264_v47 = vpop.f32.mrb[43].mxu0  ;;  %6363 = vmatmul.mubr.msk.f32.gmra.mrb[50].mxu0 %vm1822_vm4, %v4262_v7 }
 0x610   :  { %6594 = vmatpush3.bf16.msra.mxu0 %v6591_v53 }
 0x611   :  { %6596 = vmatprep.subr.bf16.mxu0 %v6595_v29 }
 0x612   :  { %v4267_v4 = vpop.f32.mrb[44].mxu0 }
 0x613   :  { %v4269_v9 = vpop.f32.mrb[45].mxu0  ;;  %6365 = vmatprep.mubr.msk.f32.mxu0 %vm1822_vm4, %v4267_v4 }
 0x614   :  { %6598 = vmatpush3.bf16.msra.mxu0 %v6595_v29 }
 0x615   :  { %6611 = vmatprep.subr.bf16.mxu0 %v6899_v2 }
 0x616   :  { %v4272_v52 = vpop.f32.mrb[46].mxu0 }
 0x617   :  { %v4274_v30 = vpop.f32.mrb[47].mxu0  ;;  %6366 = vmatmul.mubr.msk.f32.gmra.mrb[52].mxu0 %vm1822_vm4, %v4272_v52 }
 0x618   :  { %6384 = vmatprep.mubr.msk.f32.mxu0 %vm1822_vm4, %v4217_v3 }
 0x61b   :  { %6385 = vmatmul.mubr.msk.f32.vlgmr.msra.gmra.mrb[48].mxu0 %vm1822_vm4, %v4222_v10 }
 0x61c   :  { %6387 = vmatprep.mubr.msk.f32.mxu0 %vm1822_vm4, %v4227_v57  ;;  %6613 = vmatpush3.bf16.msra.mxu0 %v9394_v58 }
 0x61f   :  { %6388 = vmatmul.mubr.msk.f32.gmra.mrb[50].mxu0 %vm1822_vm4, %v4232_v15 }
 0x620   :  { %6390 = vmatprep.mubr.msk.f32.mxu0 %vm1822_vm4, %v4237_v59 }
 0x623   :  { %6391 = vmatmul.mubr.msk.f32.gmra.mrb[52].mxu0 %vm1822_vm4, %v4242_v45 }
 0x624   :  { %6425 = vmatprep.mubr.msk.f32.mxu0 %vm6900_vm2, %v9699_v60 }
 0x6ee   :  { %v6386_v16 = vpop.f32.mrb[48].mxu0 }
 0x6ef   :  { %v4523_v36 = vadd.f32 %v6386_v16, %v5466_v49  ;;  %v4489_v25 = vpop.f32.mrb[49].mxu0 }
 0x6f0   :  { %v4522_v14 = vadd.f32 %v5466_v49, %v4489_v25 }
 0x6f2   :  { %v4604_v17 = vadd.f32 %v4600_v5, %v4522_v14  ;;  %v6389_v63 = vpop.f32.mrb[50].mxu0 }
 0x6f3   :  { %v9460_v27 = vadd.f32 %v6389_v63, %v5466_v49  ;;  %v4499_v46 = vpop.f32.mrb[51].mxu0 }
 0x6f4   :  { %6825 = vtanh.f32 %v4604_v17  ;;  %v9462_v6 = vadd.f32 %v5466_v49, %v4499_v46  ;;  %v5467_v31 = vmul.f32 -1.442695, %v4604_v17 }
 0x6f6   :  { %v6392_v20 = vpop.f32.mrb[52].mxu0  ;;  %6827 = vpow2.f32 %v5467_v31 }
 0x6f7   :  { %v9464_v51 = vadd.f32 %v6392_v20, %v5466_v49  ;;  %v4509_v39 = vpop.f32.mrb[53].mxu0 }
 0x6f8   :  { %v9466_v48 = vadd.f32 %v5466_v49, %v4509_v39 }
 0x6fe   :  { %v6826_v22 = vpop.eup %6825 }
 0x6ff   :  { %4614 = vrot.lane.b32.xlu0 %v6826_v22, %s6901_s2 }
 0x700   :  { %v6828_v34 = vpop.eup %6827 }
 0x701   :  { %v4608_v41 = vadd.f32 1.0, %v6828_v34 }
 0x703   :  { %6829 = vrcp.f32 %v4608_v41 }
 0x70d   :  { %v6830_v50 = vpop.eup %6829 }
 0x70e   :  { %v4612_v37 = vmul.f32 0.0, %v6830_v50 }
 0x771   :  { %v4615_v33 = vpop.permute.xlu0 %4614 }
 0x772   :  { %v4617_v18 = vmul.f32 %v6830_v50, %v4615_v33 }
 0x774   :  { %4619 = vrot.lane.b32.xlu1 %v4617_v18, %s6902_s22 }
 0x7e6   :  { %v4620_v23 = vpop.permute.xlu1 %4619 }
 0x7e7   :  { %v4622_v54 = vadd.f32 %v4620_v23, %v4612_v37 }
 0x7e9   :  { %6831 = vtanh.f32 %v4622_v54 }
 0x7f3   :  { %v6832_v8 = vpop.eup %6831 }
 0x7f4   :  { %4625 = vrot.lane.b32.xlu0 %v6832_v8, %s6902_s22 }
 0x866   :  { %v4626_v1 = vpop.permute.xlu0 %4625 }
 0x867   :  { %v4628_v3 = vmul.f32 %v6830_v50, %v4626_v1 }
 0x869   :  { %4630 = vrot.lane.b32.xlu1 %v4628_v3, %s6903_s23 }
 0x8db   :  { %v4631_v35 = vpop.permute.xlu1 %4630 }
 0x8dc   :  { %6405 = vmatmul.mubr.msk.f32.vlgmr.msra.gmra.mrb[50].mxu1 %vm4530_vm3, %v4631_v35 }
 0x8dd   :  { %6607 = vmatpush3.bf16.msra.mxu1 %v9394_v58  ;;  %6411 = vmatprep.mubr.msk.f32.mxu1 %vm6900_vm2, %v9699_v60 }
 0x8de   :  { %6608 = vmatprep.subr.bf16.mxu1 %v6899_v2 }
 0x9af   :  { %v4700_v10 = vpop.f32.mrb[50].mxu1 }
 0x9b0   :  { %v4704_v40 = vadd.f32 %v4700_v10, %v4523_v36  ;;  %v6406_v57 = vpop.f32.mrb[51].mxu1 }
 0x9b2   :  { %6833 = vtanh.f32 %v4704_v40  ;;  %v5469_v15 = vmul.f32 -1.442695, %v4704_v40 }
 0x9b4   :  { %6835 = vpow2.f32 %v5469_v15 }
 0x9bc   :  { %v6834_v19 = vpop.eup %6833 }
 0x9bd   :  { %4714 = vrot.lane.b32.xlu0 %v6834_v19, %s6901_s2 }
 0x9be   :  { %v6836_v44 = vpop.eup %6835 }
 0x9bf   :  { %v4708_v59 = vadd.f32 1.0, %v6836_v44 }
 0x9c1   :  { %6837 = vrcp.f32 %v4708_v59 }
 0x9cb   :  { %v6838_v38 = vpop.eup %6837 }
 0x9cc   :  { %v4712_v62 = vmul.f32 %v6838_v38, %v4622_v54 }
 0xa2f   :  { %v4715_v45 = vpop.permute.xlu0 %4714 }
 0xa30   :  { %v4717_v21 = vmul.f32 %v6838_v38, %v4715_v45 }
 0xa32   :  { %4719 = vrot.lane.b32.xlu1 %v4717_v21, %s6902_s22 }
 0xaa4   :  { %v4720_v28 = vpop.permute.xlu1 %4719 }
 0xaa5   :  { %v4722_v11 = vadd.f32 %v4720_v28, %v4712_v62 }
 0xaa7   :  { %6839 = vtanh.f32 %v4722_v11 }
 0xab1   :  { %v6840_v0 = vpop.eup %6839 }
 0xab2   :  { %4725 = vrot.lane.b32.xlu0 %v6840_v0, %s6902_s22 }
 0xb24   :  { %v4726_v42 = vpop.permute.xlu0 %4725 }
 0xb25   :  { %v4728_v43 = vmul.f32 %v6838_v38, %v4726_v42 }
 0xb27   :  { %4730 = vrot.lane.b32.xlu1 %v4728_v43, %s6903_s23 }
 0xb99   :  { %v4731_v26 = vpop.permute.xlu1 %4730 }
 0xb9a   :  { %6412 = vmatmul.mubr.msk.f32.vlgmr.msra.gmra.mrb[52].mxu1 %vm4530_vm3, %v4731_v26 }
 0xb9b   :  { %6610 = vmatpush3.bf16.msra.mxu1 %v9394_v58  ;;  %6418 = vmatprep.mubr.msk.f32.mxu1 %vm6900_vm2, %v9699_v60 }
 0xb9c   :  { %6614 = vmatprep.subr.bf16.mxu1 %v6899_v2 }
 0xc6d   :  { %v4800_v61 = vpop.f32.mrb[52].mxu1 }
 0xc6e   :  { %v4804_v24 = vadd.f32 %v4800_v61, %v9462_v6  ;;  %v6413_v53 = vpop.f32.mrb[53].mxu1 }
 0xc70   :  { %6841 = vtanh.f32 %v4804_v24  ;;  %v5471_v56 = vmul.f32 -1.442695, %v4804_v24 }
 0xc72   :  { %6843 = vpow2.f32 %v5471_v56 }
 0xc7a   :  { %v6842_v12 = vpop.eup %6841 }
 0xc7b   :  { %4814 = vrot.lane.b32.xlu0 %v6842_v12, %s6901_s2 }
 0xc7c   :  { %v6844_v55 = vpop.eup %6843 }
 0xc7d   :  { %v4808_v32 = vadd.f32 1.0, %v6844_v55 }
 0xc7f   :  { %6845 = vrcp.f32 %v4808_v32 }
 0xc89   :  { %v6846_v29 = vpop.eup %6845 }
 0xc8a   :  { %v4812_v4 = vmul.f32 %v6846_v29, %v4722_v11 }
 0xced   :  { %v4815_v7 = vpop.permute.xlu0 %4814 }
 0xcee   :  { %v4817_v47 = vmul.f32 %v6846_v29, %v4815_v7 }
 0xcf0   :  { %4819 = vrot.lane.b32.xlu1 %v4817_v47, %s6902_s22 }
 0xd62   :  { %v4820_v2 = vpop.permute.xlu1 %4819 }
 0xd63   :  { %v4822_v9 = vadd.f32 %v4820_v2, %v4812_v4 }
 0xd65   :  { %6847 = vtanh.f32 %v4822_v9 }
 0xd6f   :  { %v6848_v52 = vpop.eup %6847 }
 0xd70   :  { %4825 = vrot.lane.b32.xlu0 %v6848_v52, %s6902_s22 }
 0xde2   :  { %v4826_v30 = vpop.permute.xlu0 %4825 }
 0xde3   :  { %v4828_v5 = vmul.f32 %v6846_v29, %v4826_v30 }
 0xde5   :  { %4830 = vrot.lane.b32.xlu1 %v4828_v5, %s6903_s23 }
 0xe57   :  { %v4831_v13 = vpop.permute.xlu1 %4830 }
 0xe58   :  { %6419 = vmatmul.mubr.msk.f32.vlgmr.msra.gmra.mrb[54].mxu1 %vm4530_vm3, %v4831_v13 }
 0xe59   :  { %6616 = vmatpush3.bf16.msra.mxu1 %v9394_v58  ;;  %6432 = vmatprep.mubr.msk.f32.mxu1 %vm6900_vm2, %v9699_v60 }
 0xf2b   :  { %v4900_v49 = vpop.f32.mrb[54].mxu1 }
 0xf2c   :  { %v4904_v16 = vadd.f32 %v4900_v49, %v9460_v27  ;;  %v6420_v36 = vpop.f32.mrb[55].mxu1 }
 0xf2e   :  { %6849 = vtanh.f32 %v4904_v16  ;;  %v5473_v14 = vmul.f32 -1.442695, %v4904_v16 }
 0xf30   :  { %6851 = vpow2.f32 %v5473_v14 }
 0xf38   :  { %v6850_v25 = vpop.eup %6849 }
 0xf39   :  { %4914 = vrot.lane.b32.xlu0 %v6850_v25, %s6901_s2 }
 0xf3a   :  { %v6852_v17 = vpop.eup %6851 }
 0xf3b   :  { %v4908_v63 = vadd.f32 1.0, %v6852_v17 }
 0xf3d   :  { %6853 = vrcp.f32 %v4908_v63 }
 0xf47   :  { %v6854_v46 = vpop.eup %6853 }
 0xf48   :  { %v4912_v58 = vmul.f32 %v6854_v46, %v4822_v9 }
 0xfab   :  { %v4915_v6 = vpop.permute.xlu0 %4914 }
 0xfac   :  { %v4917_v20 = vmul.f32 %v6854_v46, %v4915_v6 }
 0xfae   :  { %4919 = vrot.lane.b32.xlu1 %v4917_v20, %s6902_s22 }
0x1020   :  { %v4920_v60 = vpop.permute.xlu1 %4919 }
0x1021   :  { %v4922_v39 = vadd.f32 %v4920_v60, %v4912_v58 }
0x1023   :  { %6855 = vtanh.f32 %v4922_v39 }
0x102d   :  { %v6856_v27 = vpop.eup %6855 }
0x102e   :  { %4925 = vrot.lane.b32.xlu0 %v6856_v27, %s6902_s22 }
0x10a0   :  { %v4926_v22 = vpop.permute.xlu0 %4925 }
0x10a1   :  { %v4928_v31 = vmul.f32 %v6854_v46, %v4926_v22 }
0x10a3   :  { %4930 = vrot.lane.b32.xlu1 %v4928_v31, %s6903_s23 }
0x1115   :  { %v4931_v34 = vpop.permute.xlu1 %4930 }
0x1116   :  { %6426 = vmatmul.mubr.msk.f32.vlgmr.msra.gmra.mrb[54].mxu0 %vm4530_vm3, %v4931_v34 }
0x11e9   :  { %v5000_v41 = vpop.f32.mrb[54].mxu0 }
0x11ea   :  { %v5004_v50 = vadd.f32 %v5000_v41, %v9466_v48  ;;  %v6427_v33 = vpop.f32.mrb[55].mxu0 }
0x11ec   :  { %6857 = vtanh.f32 %v5004_v50  ;;  %v5475_v37 = vmul.f32 -1.442695, %v5004_v50 }
0x11ee   :  { %6859 = vpow2.f32 %v5475_v37 }
0x11f6   :  { %v6858_v18 = vpop.eup %6857 }
0x11f7   :  { %5014 = vrot.lane.b32.xlu0 %v6858_v18, %s6901_s2 }
0x11f8   :  { %v6860_v23 = vpop.eup %6859 }
0x11f9   :  { %v5008_v54 = vadd.f32 1.0, %v6860_v23 }
0x11fb   :  { %6861 = vrcp.f32 %v5008_v54 }
0x1205   :  { %v6862_v8 = vpop.eup %6861 }
0x1206   :  { %v5012_v35 = vmul.f32 %v6862_v8, %v4922_v39 }
0x1269   :  { %v5015_v1 = vpop.permute.xlu0 %5014 }
0x126a   :  { %v5017_v3 = vmul.f32 %v6862_v8, %v5015_v1 }
0x126c   :  { %5019 = vrot.lane.b32.xlu1 %v5017_v3, %s6902_s22 }
0x12de   :  { %v5020_v10 = vpop.permute.xlu1 %5019 }
0x12df   :  { %v5022_v40 = vadd.f32 %v5020_v10, %v5012_v35 }
0x12e1   :  { %6863 = vtanh.f32 %v5022_v40 }
0x12eb   :  { %v6864_v48 = vpop.eup %6863 }
0x12ec   :  { %5025 = vrot.lane.b32.xlu0 %v6864_v48, %s6902_s22 }
0x135e   :  { %v5026_v57 = vpop.permute.xlu0 %5025 }
0x135f   :  { %v5028_v19 = vmul.f32 %v6862_v8, %v5026_v57 }
0x1361   :  { %5030 = vrot.lane.b32.xlu1 %v5028_v19, %s6903_s23 }
0x13d3   :  { %v5031_v15 = vpop.permute.xlu1 %5030 }
0x13d4   :  { %6433 = vmatmul.mubr.msk.f32.vlgmr.msra.gmra.mrb[56].mxu1 %vm4530_vm3, %v5031_v15 }
0x14a7   :  { %v5100_v44 = vpop.f32.mrb[56].mxu1 }
0x14a8   :  { %v5104_v59 = vadd.f32 %v5100_v44, %v9464_v51  ;;  %v6434_v38 = vpop.f32.mrb[57].mxu1 }
0x14aa   :  { %6865 = vtanh.f32 %v5104_v59  ;;  %v5477_v21 = vmul.f32 -1.442695, %v5104_v59 }
0x14ac   :  { %6867 = vpow2.f32 %v5477_v21 }
0x14b4   :  { %v6866_v45 = vpop.eup %6865 }
0x14b5   :  { %5114 = vrot.lane.b32.xlu0 %v6866_v45, %s6901_s2 }
0x14b6   :  { %v6868_v62 = vpop.eup %6867 }
0x14b7   :  { %v5108_v28 = vadd.f32 1.0, %v6868_v62 }
0x14b9   :  { %6869 = vrcp.f32 %v5108_v28 }
0x14c3   :  { %v6870_v11 = vpop.eup %6869 }
0x14c4   :  { %v5112_v43 = vmul.f32 %v6870_v11, %v5022_v40 }
0x1527   :  { %v5115_v0 = vpop.permute.xlu0 %5114 }
0x1528   :  { %v5117_v42 = vmul.f32 %v6870_v11, %v5115_v0 }
0x152a   :  { %5119 = vrot.lane.b32.xlu1 %v5117_v42, %s6902_s22 }
0x159c   :  { %v5120_v26 = vpop.permute.xlu1 %5119 }
0x159d   :  { %v5122_v61 = vadd.f32 %v5120_v26, %v5112_v43 }
0x159f   :  { %6871 = vtanh.f32 %v5122_v61 }
0x15a9   :  { %v6872_v51 = vpop.eup %6871 }
0x15aa   :  { %5125 = vrot.lane.b32.xlu0 %v6872_v51, %s6902_s22 }
0x161c   :  { %v5126_v24 = vpop.permute.xlu0 %5125 }
0x161d   :  { %v5128_v53 = vmul.f32 %v6870_v11, %v5126_v24 }
0x161f   :  { %5130 = vrot.lane.b32.xlu1 %v5128_v53, %s6903_s23 }
0x1691   :  { %v5131_v12 = vpop.permute.xlu1 %5130 }
0x1692   :  { %v5133_v56 = vsel %vm4530_vm3, %v5131_v12, 0.0 }
0x1693   :  { %5134 = vst [vmem:[#allocation2] sm:$0xff] %v5133_v56 }
0x1694   :  { %6884 = shalt.err (!%p6881_p4)
}
0x1695   :  { %s6885_s4 = scalar_lea.hbm %s9530_s5, 128 }
0x1696   :  { %p6886_p5 = scmp.ne.s32.totalorder %s9530_s5, %s6885_s4  ;;  %p6889_p6 = scmp.lt.u32.totalorder %s6885_s4, %s9530_s5 }
0x1698   :  { %p6891_p7 = pnand %p6889_p6, %p6886_p5 }
0x169a   :  { %6894 = shalt.err (!%p6891_p7)
}
0x169b   :  { %5144 = dma.vmem_to_hbm [thread:$0]  %s5142_s25, 128, %s9530_s5, [#allocation3]  }
0x169c   :  { %6895 = dma.done.wait [#allocation3], 128  }
0x169d   :  { %6896 = vsyncadd [#allocation3], 4294967168 }
0x169e   :  { %5148 = vsyncpa [#allocation3], 1 }

</bundles_post_ra>
